<compile_context>
chip_gen: v7x
topology: tpu7x:2x2x1
jax: 0.10.0
libtpu: 0.0.40
codegen_flags: <defaults>
</compile_context>

<pallas_src>
import jax
import jax.numpy as jnp
from jax import lax
from jax.experimental import pallas as pl
from jax.experimental.pallas import tpu as pltpu


def _round_up(x, m):
    return (x + m - 1) // m * m


# ----------------------------------------------------------------------------
# Pallas kernel: bidirectional GRU recurrence + final linear in one call
# ----------------------------------------------------------------------------
def encoder_rnn_kernel(lens_ref, x_ref,
                       wi_ref, bi_ref,
                       wh_f_ref, bh_f_ref,
                       wh_b_ref, bh_b_ref,
                       wlin_ref, blin_ref,
                       out_ref, proj_ref):
    Bp = lens_ref.shape[0]
    T = x_ref.shape[0] // Bp
    Hp = wh_f_ref.shape[0]
    H3 = 3 * Hp

    # ---- big MXU-shaped input projection for BOTH directions at once -------
    # (T*Bp, I) bf16 @ (I, 6*Hp) bf16 -> (T*Bp, 6*Hp) f32, bias folded in.
    proj_ref[...] = (
        jnp.dot(x_ref[...], wi_ref[...], preferred_element_type=jnp.float32)
        + bi_ref[...])

    # ---- loop-invariant loads / broadcasts hoisted out of the recurrence ---
    lens = lens_ref[...]                                  # (Bp, 1) int32
    wh_f = wh_f_ref[...]                                  # (Hp, 3Hp) bf16
    wh_b = wh_b_ref[...]
    bh_f = jnp.broadcast_to(bh_f_ref[...], (Bp, H3))      # (Bp, 3Hp) f32
    bh_b = jnp.broadcast_to(bh_b_ref[...], (Bp, H3))

    def gru_cell(gi, h, wh, bh):
        # gi = x_t @ W_i + b_i (precomputed). Gate order [r | z | n] on lanes.
        gh = jnp.dot(h.astype(jnp.bfloat16), wh,
                     preferred_element_type=jnp.float32) + bh
        r = jax.nn.sigmoid(gi[:, :Hp] + gh[:, :Hp])
        z = jax.nn.sigmoid(gi[:, Hp:2 * Hp] + gh[:, Hp:2 * Hp])
        n = jnp.tanh(gi[:, 2 * Hp:] + r * gh[:, 2 * Hp:])
        return (1.0 - z) * n + z * h

    def step(s, carry):
        h_f, h_b = carry                                  # (Bp, Hp) f32 each
        tf = s
        tb = T - 1 - s
        pf = proj_ref[pl.ds(pl.multiple_of(tf * Bp, Bp), Bp), :]   # (Bp, 6Hp)
        pb = proj_ref[pl.ds(pl.multiple_of(tb * Bp, Bp), Bp), :]
        hf_new = gru_cell(pf[:, :H3], h_f, wh_f, bh_f)
        hb_new = gru_cell(pb[:, H3:], h_b, wh_b, bh_b)
        # pack_padded_sequence semantics: freeze forward state at t >= len;
        # backward recurrence only runs for t < len (starts at t = len-1).
        h_f = jnp.where(lens > tf, hf_new, h_f)
        h_b = jnp.where(lens > tb, hb_new, h_b)
        return h_f, h_b

    h0 = jnp.zeros((Bp, Hp), jnp.float32)
    h_f, h_b = lax.fori_loop(0, T, step, (h0, h0), unroll=(T <= 64))

    # cat(h[0], h[1]) -> Linear.  2*Hp is 128-lane aligned; padded lanes are 0
    # and the corresponding wlin rows are 0, so no extra masking is needed.
    h_cat = jnp.concatenate([h_f, h_b], axis=-1)          # (Bp, 2Hp)
    out_ref[...] = (
        jnp.dot(h_cat.astype(jnp.bfloat16), wlin_ref[...],
                preferred_element_type=jnp.float32)
        + blin_ref[...])


# ----------------------------------------------------------------------------
# Wrapper
# ----------------------------------------------------------------------------
def encoder_rnn_forward(audioes, lengths, params):
    """audioes: (B, T, I) f32 batch_first, lengths: (B,) int -> (B, E) f32."""
    B, T, I = audioes.shape
    H, E = params["H"], params["E"]
    Hp = params["wh_f"].shape[0]
    Ep = params["wlin"].shape[-1]
    Bp = _round_up(max(B, 1), 16)          # sublane pad (bf16 packs 16 rows)

    # time-major, batch-padded, bf16 input (accumulation stays f32 in-kernel)
    x = jnp.transpose(audioes, (1, 0, 2)).astype(jnp.bfloat16)      # (T, B, I)
    x = jnp.pad(x, ((0, 0), (0, Bp - B), (0, 0)))
    x2d = x.reshape(T * Bp, I)                                       # (T*Bp, I)
    lens2d = jnp.pad(jnp.asarray(lengths, jnp.int32), (0, Bp - B)).reshape(Bp, 1)

    operands = (lens2d, x2d,
                params["wi_cat"], params["bi_cat"],
                params["wh_f"], params["bh_f"],
                params["wh_b"], params["bh_b"],
                params["wlin"], params["blin"])

    # VMEM budget: operands + f32 projection scratch + output, with headroom;
    # capped at 48 MiB so it is safe on v5e/v6e (128 MiB) and v7x (64 MiB).
    resident = sum(int(a.size) * a.dtype.itemsize for a in operands)
    resident += T * Bp * 6 * Hp * 4 + Bp * Ep * 4
    vmem_limit = int(min(max(2 * resident + (2 << 20), 16 << 20), 48 << 20))

    vmem = pl.BlockSpec(memory_space=pltpu.MemorySpace.VMEM)
    out = pl.pallas_call(
        encoder_rnn_kernel,
        out_shape=jax.ShapeDtypeStruct((Bp, Ep), jnp.float32),
        in_specs=[vmem] * len(operands),
        out_specs=vmem,
        scratch_shapes=[pltpu.VMEM((T * Bp, 6 * Hp), jnp.float32)],
        compiler_params=pltpu.CompilerParams(vmem_limit_bytes=vmem_limit),
    )(*operands)
    return out[:B, :E]


# ----------------------------------------------------------------------------
# Deterministic parameter construction (PyTorch-shaped, then fused + padded)
# ----------------------------------------------------------------------------
def make_params(key, input_size, hidden_size, embed_size):
    H, E, I = hidden_size, embed_size, input_size
    Hp = _round_up(H, 128)                 # lane-dense hidden
    Ep = _round_up(E, 128)                 # lane-dense output
    s_gru = 1.0 / float(H) ** 0.5
    s_lin = 1.0 / float(2 * H) ** 0.5
    keys = jax.random.split(key, 10)

    def U(k, shape, s):
        return jax.random.uniform(k, shape, jnp.float32, -s, s)

    # PyTorch GRU parameter shapes (gate order r, z, n along dim 0).
    w_ih_f = U(keys[0], (3 * H, I), s_gru)
    w_hh_f = U(keys[1], (3 * H, H), s_gru)
    b_ih_f = U(keys[2], (3 * H,), s_gru)
    b_hh_f = U(keys[3], (3 * H,), s_gru)
    w_ih_b = U(keys[4], (3 * H, I), s_gru)
    w_hh_b = U(keys[5], (3 * H, H), s_gru)
    b_ih_b = U(keys[6], (3 * H,), s_gru)
    b_hh_b = U(keys[7], (3 * H,), s_gru)
    w_lin = U(keys[8], (E, 2 * H), s_lin)
    b_lin = U(keys[9], (E,), s_lin)

    def pack_dir(w_ih, w_hh, b_ih, b_hh):
        wi = jnp.zeros((I, 3 * Hp), jnp.float32)
        wh = jnp.zeros((Hp, 3 * Hp), jnp.float32)
        bi = jnp.zeros((1, 3 * Hp), jnp.float32)
        bh = jnp.zeros((1, 3 * Hp), jnp.float32)
        for g in range(3):                 # r, z, n -> lane blocks of Hp
            wi = wi.at[:, g * Hp:g * Hp + H].set(w_ih[g * H:(g + 1) * H].T)
            wh = wh.at[:H, g * Hp:g * Hp + H].set(w_hh[g * H:(g + 1) * H].T)
            bi = bi.at[0, g * Hp:g * Hp + H].set(b_ih[g * H:(g + 1) * H])
            bh = bh.at[0, g * Hp:g * Hp + H].set(b_hh[g * H:(g + 1) * H])
        return wi, wh, bi, bh

    wi_f, wh_f, bi_f, bh_f = pack_dir(w_ih_f, w_hh_f, b_ih_f, b_hh_f)
    wi_b, wh_b, bi_b, bh_b = pack_dir(w_ih_b, w_hh_b, b_ih_b, b_hh_b)

    # Linear on cat(h_fwd, h_bwd): rows [0:H] <- fwd part, [Hp:Hp+H] <- bwd.
    wlin = jnp.zeros((2 * Hp, Ep), jnp.float32)
    wlin = wlin.at[:H, :E].set(w_lin[:, :H].T)
    wlin = wlin.at[Hp:Hp + H, :E].set(w_lin[:, H:].T)
    blin = jnp.zeros((1, Ep), jnp.float32).at[0, :E].set(b_lin)

    return dict(
        H=H, E=E,
        wi_cat=jnp.concatenate([wi_f, wi_b], axis=1).astype(jnp.bfloat16),
        bi_cat=jnp.concatenate([bi_f, bi_b], axis=1),
        wh_f=wh_f.astype(jnp.bfloat16), bh_f=bh_f,
        wh_b=wh_b.astype(jnp.bfloat16), bh_b=bh_b,
        wlin=wlin.astype(jnp.bfloat16), blin=blin,
    )


# ----------------------------------------------------------------------------
# Pure-JAX reference (same math & precision policy) for correctness check
# ----------------------------------------------------------------------------
def ref_forward(audioes, lengths, params):
    B, T, I = audioes.shape
    E = params["E"]
    Hp, H3 = params["wh_f"].shape
    f32 = jnp.float32

    x = audioes.astype(jnp.bfloat16).astype(f32)
    wi = params["wi_cat"].astype(f32)
    bi = params["bi_cat"]
    wh_f = params["wh_f"].astype(f32)
    bh_f = params["bh_f"]
    wh_b = params["wh_b"].astype(f32)
    bh_b = params["bh_b"]
    wlin = params["wlin"].astype(f32)
    blin = params["blin"]
    lens = jnp.asarray(lengths, jnp.int32).reshape(B, 1)

    def cell(gi, h, wh, bh):
        gh = h.astype(jnp.bfloat16).astype(f32) @ wh + bh
        r = jax.nn.sigmoid(gi[:, :Hp] + gh[:, :Hp])
        z = jax.nn.sigmoid(gi[:, Hp:2 * Hp] + gh[:, Hp:2 * Hp])
        n = jnp.tanh(gi[:, 2 * Hp:] + r * gh[:, 2 * Hp:])
        return (1.0 - z) * n + z * h

    proj = (x.reshape(B * T, I) @ wi + bi).reshape(B, T, 2 * H3)

    h_f = jnp.zeros((B, Hp), f32)
    for t in range(T):
        h_f = jnp.where(lens > t, cell(proj[:, t, :H3], h_f, wh_f, bh_f), h_f)

    h_b = jnp.zeros((B, Hp), f32)
    for t in range(T - 1, -1, -1):
        h_b = jnp.where(lens > t, cell(proj[:, t, H3:], h_b, wh_b, bh_b), h_b)

    h_cat = jnp.concatenate([h_f, h_b], axis=-1).astype(jnp.bfloat16).astype(f32)
    return (h_cat @ wlin + blin)[:, :E]


# ----------------------------------------------------------------------------
if __name__ == "__main__":
    B, T = 2, 8           # batch, (max) sequence length
    INPUT_SIZE = 16       # input_SIZE
    HIDDEN = 32           # hidden_size
    EMBED = 32            # embed_size

    key = jax.random.PRNGKey(0)
    k_param, k_x = jax.random.split(key)

    params = make_params(k_param, INPUT_SIZE, HIDDEN, EMBED)
    audioes = jax.random.normal(k_x, (B, T, INPUT_SIZE), jnp.float32)
    lengths = jnp.array([8, 5], dtype=jnp.int32)   # sorted desc (pack_padded)

    out = jax.block_until_ready(encoder_rnn_forward(audioes, lengths, params))
    ref = jax.block_until_ready(ref_forward(audioes, lengths, params))

    assert out.shape == (B, EMBED)
    assert jnp.allclose(out, ref, rtol=5e-3, atol=5e-3), "mismatch vs reference"

    print("KERNEL_OK")
</pallas_src>

<mosaic_0001>
module attributes {stable_mosaic.version = 11 : i64} {
  func.func @encoder_rnn_kernel(%arg0: memref<16x1xi32, #tpu.memory_space<vmem>>, %arg1: memref<128x16xbf16, #tpu.memory_space<vmem>>, %arg2: memref<16x768xbf16, #tpu.memory_space<vmem>>, %arg3: memref<1x768xf32, #tpu.memory_space<vmem>>, %arg4: memref<128x384xbf16, #tpu.memory_space<vmem>>, %arg5: memref<1x384xf32, #tpu.memory_space<vmem>>, %arg6: memref<128x384xbf16, #tpu.memory_space<vmem>>, %arg7: memref<1x384xf32, #tpu.memory_space<vmem>>, %arg8: memref<256x128xbf16, #tpu.memory_space<vmem>>, %arg9: memref<1x128xf32, #tpu.memory_space<vmem>>, %arg10: memref<16x128xf32, #tpu.memory_space<vmem>>, %arg11: memref<128x768xf32, #tpu.memory_space<vmem>>) attributes {dimension_semantics = [], scalar_prefetch = 0 : i64, scratch_operands = 1 : i64, tpu.core_type = #tpu.core_type<tc>} {
    %c0 = arith.constant 0 : index
    %c0_0 = arith.constant 0 : index
    %0 = vector.load %arg1[%c0, %c0_0] : memref<128x16xbf16, #tpu.memory_space<vmem>>, vector<128x16xbf16>
    %c0_1 = arith.constant 0 : index
    %c0_2 = arith.constant 0 : index
    %1 = vector.load %arg2[%c0_1, %c0_2] : memref<16x768xbf16, #tpu.memory_space<vmem>>, vector<16x768xbf16>
    %cst = arith.constant dense<0.000000e+00> : vector<128x768xf32>
    %2 = tpu.matmul %0, %1, %cst {dimension_numbers = #tpu.dot_dimension_numbers<[1], [0], [0], [1], [0, 0, 1, 1], [], []>} : vector<128x16xbf16>, vector<16x768xbf16>, vector<128x768xf32> -> vector<128x768xf32>
    %c0_3 = arith.constant 0 : index
    %c0_4 = arith.constant 0 : index
    %3 = vector.load %arg3[%c0_3, %c0_4] : memref<1x768xf32, #tpu.memory_space<vmem>>, vector<1x768xf32>
    %4 = vector.broadcast %3 : vector<1x768xf32> to vector<128x768xf32>
    %5 = arith.addf %2, %4 : vector<128x768xf32>
    %c0_5 = arith.constant 0 : index
    %c0_6 = arith.constant 0 : index
    %6 = vector.load %arg11[%c0_5, %c0_6] : memref<128x768xf32, #tpu.memory_space<vmem>>, vector<128x768xf32>
    tpu.vector_store %arg11[%c0_5, %c0_6], %5 {strides = array<i32>} : memref<128x768xf32, #tpu.memory_space<vmem>>, vector<128x768xf32>,
    %c0_7 = arith.constant 0 : index
    %c0_8 = arith.constant 0 : index
    %7 = vector.load %arg0[%c0_7, %c0_8] : memref<16x1xi32, #tpu.memory_space<vmem>>, vector<16x1xi32>
    %c0_9 = arith.constant 0 : index
    %c0_10 = arith.constant 0 : index
    %8 = vector.load %arg4[%c0_9, %c0_10] : memref<128x384xbf16, #tpu.memory_space<vmem>>, vector<128x384xbf16>
    %c0_11 = arith.constant 0 : index
    %c0_12 = arith.constant 0 : index
    %9 = vector.load %arg6[%c0_11, %c0_12] : memref<128x384xbf16, #tpu.memory_space<vmem>>, vector<128x384xbf16>
    %c0_13 = arith.constant 0 : index
    %c0_14 = arith.constant 0 : index
    %10 = vector.load %arg5[%c0_13, %c0_14] : memref<1x384xf32, #tpu.memory_space<vmem>>, vector<1x384xf32>
    %11 = vector.shape_cast %10 : vector<1x384xf32> to vector<1x384xf32>
    %12 = vector.broadcast %11 : vector<1x384xf32> to vector<16x384xf32>
    %c0_15 = arith.constant 0 : index
    %c0_16 = arith.constant 0 : index
    %13 = vector.load %arg7[%c0_15, %c0_16] : memref<1x384xf32, #tpu.memory_space<vmem>>, vector<1x384xf32>
    %14 = vector.shape_cast %13 : vector<1x384xf32> to vector<1x384xf32>
    %15 = vector.broadcast %14 : vector<1x384xf32> to vector<16x384xf32>
    %cst_17 = arith.constant 0.000000e+00 : f32
    %16 = vector.broadcast %cst_17 : f32 to vector<16x128xf32>
    %c0_i32 = arith.constant 0 : i32
    %c7_i32 = arith.constant 7 : i32
    %17 = arith.subi %c7_i32, %c0_i32 : i32
    %c16_i32 = arith.constant 16 : i32
    %18 = arith.muli %c0_i32, %c16_i32 : i32
    %19 = tpu.assume_multiple %18, 16 : i32
    %20 = arith.index_cast %19 : i32 to index
    %c0_18 = arith.constant 0 : index
    %21 = vector.load %arg11[%20, %c0_18] : memref<128x768xf32, #tpu.memory_space<vmem>>, vector<16x768xf32>
    %c16_i32_19 = arith.constant 16 : i32
    %22 = arith.muli %17, %c16_i32_19 : i32
    %23 = tpu.assume_multiple %22, 16 : i32
    %24 = arith.index_cast %23 : i32 to index
    %c0_20 = arith.constant 0 : index
    %25 = vector.load %arg11[%24, %c0_20] : memref<128x768xf32, #tpu.memory_space<vmem>>, vector<16x768xf32>
    %26 = vector.extract_strided_slice %21 {offsets = [0, 0], sizes = [16, 384], strides = [1, 1]} : vector<16x768xf32> to vector<16x384xf32>
    %27 = arith.truncf %16 : vector<16x128xf32> to vector<16x128xbf16>
    %cst_21 = arith.constant dense<0.000000e+00> : vector<16x384xf32>
    %28 = tpu.matmul %27, %8, %cst_21 {dimension_numbers = #tpu.dot_dimension_numbers<[1], [0], [0], [1], [0, 0, 1, 1], [], []>} : vector<16x128xbf16>, vector<128x384xbf16>, vector<16x384xf32> -> vector<16x384xf32>
    %29 = arith.addf %28, %12 : vector<16x384xf32>
    %30 = vector.extract_strided_slice %26 {offsets = [0, 0], sizes = [16, 128], strides = [1, 1]} : vector<16x384xf32> to vector<16x128xf32>
    %31 = vector.extract_strided_slice %29 {offsets = [0, 0], sizes = [16, 128], strides = [1, 1]} : vector<16x384xf32> to vector<16x128xf32>
    %32 = arith.addf %30, %31 : vector<16x128xf32>
    %33 = arith.negf %32 : vector<16x128xf32>
    %34 = math.exp %33 : vector<16x128xf32>
    %cst_22 = arith.constant 1.000000e+00 : f32
    %35 = vector.broadcast %cst_22 : f32 to vector<16x128xf32>
    %36 = arith.addf %35, %34 : vector<16x128xf32>
    %37 = arith.divf %35, %36 : vector<16x128xf32>
    %38 = vector.extract_strided_slice %26 {offsets = [0, 128], sizes = [16, 128], strides = [1, 1]} : vector<16x384xf32> to vector<16x128xf32>
    %39 = vector.extract_strided_slice %29 {offsets = [0, 128], sizes = [16, 128], strides = [1, 1]} : vector<16x384xf32> to vector<16x128xf32>
    %40 = arith.addf %38, %39 : vector<16x128xf32>
    %41 = arith.negf %40 : vector<16x128xf32>
    %42 = math.exp %41 : vector<16x128xf32>
    %cst_23 = arith.constant 1.000000e+00 : f32
    %43 = vector.broadcast %cst_23 : f32 to vector<16x128xf32>
    %44 = arith.addf %43, %42 : vector<16x128xf32>
    %45 = arith.divf %43, %44 : vector<16x128xf32>
    %46 = vector.extract_strided_slice %26 {offsets = [0, 256], sizes = [16, 128], strides = [1, 1]} : vector<16x384xf32> to vector<16x128xf32>
    %47 = vector.extract_strided_slice %29 {offsets = [0, 256], sizes = [16, 128], strides = [1, 1]} : vector<16x384xf32> to vector<16x128xf32>
    %48 = arith.mulf %37, %47 : vector<16x128xf32>
    %49 = arith.addf %46, %48 : vector<16x128xf32>
    %50 = math.tanh %49 : vector<16x128xf32>
    %cst_24 = arith.constant 1.000000e+00 : f32
    %51 = vector.broadcast %cst_24 : f32 to vector<16x128xf32>
    %52 = arith.subf %51, %45 : vector<16x128xf32>
    %53 = arith.mulf %52, %50 : vector<16x128xf32>
    %54 = arith.mulf %45, %16 : vector<16x128xf32>
    %55 = arith.addf %53, %54 : vector<16x128xf32>
    %56 = vector.extract_strided_slice %25 {offsets = [0, 384], sizes = [16, 384], strides = [1, 1]} : vector<16x768xf32> to vector<16x384xf32>
    %57 = arith.truncf %16 : vector<16x128xf32> to vector<16x128xbf16>
    %cst_25 = arith.constant dense<0.000000e+00> : vector<16x384xf32>
    %58 = tpu.matmul %57, %9, %cst_25 {dimension_numbers = #tpu.dot_dimension_numbers<[1], [0], [0], [1], [0, 0, 1, 1], [], []>} : vector<16x128xbf16>, vector<128x384xbf16>, vector<16x384xf32> -> vector<16x384xf32>
    %59 = arith.addf %58, %15 : vector<16x384xf32>
    %60 = vector.extract_strided_slice %56 {offsets = [0, 0], sizes = [16, 128], strides = [1, 1]} : vector<16x384xf32> to vector<16x128xf32>
    %61 = vector.extract_strided_slice %59 {offsets = [0, 0], sizes = [16, 128], strides = [1, 1]} : vector<16x384xf32> to vector<16x128xf32>
    %62 = arith.addf %60, %61 : vector<16x128xf32>
    %63 = arith.negf %62 : vector<16x128xf32>
    %64 = math.exp %63 : vector<16x128xf32>
    %cst_26 = arith.constant 1.000000e+00 : f32
    %65 = vector.broadcast %cst_26 : f32 to vector<16x128xf32>
    %66 = arith.addf %65, %64 : vector<16x128xf32>
    %67 = arith.divf %65, %66 : vector<16x128xf32>
    %68 = vector.extract_strided_slice %56 {offsets = [0, 128], sizes = [16, 128], strides = [1, 1]} : vector<16x384xf32> to vector<16x128xf32>
    %69 = vector.extract_strided_slice %59 {offsets = [0, 128], sizes = [16, 128], strides = [1, 1]} : vector<16x384xf32> to vector<16x128xf32>
    %70 = arith.addf %68, %69 : vector<16x128xf32>
    %71 = arith.negf %70 : vector<16x128xf32>
    %72 = math.exp %71 : vector<16x128xf32>
    %cst_27 = arith.constant 1.000000e+00 : f32
    %73 = vector.broadcast %cst_27 : f32 to vector<16x128xf32>
    %74 = arith.addf %73, %72 : vector<16x128xf32>
    %75 = arith.divf %73, %74 : vector<16x128xf32>
    %76 = vector.extract_strided_slice %56 {offsets = [0, 256], sizes = [16, 128], strides = [1, 1]} : vector<16x384xf32> to vector<16x128xf32>
    %77 = vector.extract_strided_slice %59 {offsets = [0, 256], sizes = [16, 128], strides = [1, 1]} : vector<16x384xf32> to vector<16x128xf32>
    %78 = arith.mulf %67, %77 : vector<16x128xf32>
    %79 = arith.addf %76, %78 : vector<16x128xf32>
    %80 = math.tanh %79 : vector<16x128xf32>
    %cst_28 = arith.constant 1.000000e+00 : f32
    %81 = vector.broadcast %cst_28 : f32 to vector<16x128xf32>
    %82 = arith.subf %81, %75 : vector<16x128xf32>
    %83 = arith.mulf %82, %80 : vector<16x128xf32>
    %84 = arith.mulf %75, %16 : vector<16x128xf32>
    %85 = arith.addf %83, %84 : vector<16x128xf32>
    %86 = vector.broadcast %c0_i32 : i32 to vector<16x1xi32>
    %87 = arith.cmpi sgt, %7, %86 : vector<16x1xi32>
    %88 = vector.shape_cast %87 : vector<16x1xi1> to vector<16x1xi1>
    %89 = vector.broadcast %88 : vector<16x1xi1> to vector<16x128xi1>
    %90 = arith.select %89, %55, %16 : vector<16x128xi1>, vector<16x128xf32>
    %91 = vector.broadcast %17 : i32 to vector<16x1xi32>
    %92 = arith.cmpi sgt, %7, %91 : vector<16x1xi32>
    %93 = vector.shape_cast %92 : vector<16x1xi1> to vector<16x1xi1>
    %94 = vector.broadcast %93 : vector<16x1xi1> to vector<16x128xi1>
    %95 = arith.select %94, %85, %16 : vector<16x128xi1>, vector<16x128xf32>
    %c1_i32 = arith.constant 1 : i32
    %c7_i32_29 = arith.constant 7 : i32
    %96 = arith.subi %c7_i32_29, %c1_i32 : i32
    %c16_i32_30 = arith.constant 16 : i32
    %97 = arith.muli %c1_i32, %c16_i32_30 : i32
    %98 = tpu.assume_multiple %97, 16 : i32
    %99 = arith.index_cast %98 : i32 to index
    %c0_31 = arith.constant 0 : index
    %100 = vector.load %arg11[%99, %c0_31] : memref<128x768xf32, #tpu.memory_space<vmem>>, vector<16x768xf32>
    %c16_i32_32 = arith.constant 16 : i32
    %101 = arith.muli %96, %c16_i32_32 : i32
    %102 = tpu.assume_multiple %101, 16 : i32
    %103 = arith.index_cast %102 : i32 to index
    %c0_33 = arith.constant 0 : index
    %104 = vector.load %arg11[%103, %c0_33] : memref<128x768xf32, #tpu.memory_space<vmem>>, vector<16x768xf32>
    %105 = vector.extract_strided_slice %100 {offsets = [0, 0], sizes = [16, 384], strides = [1, 1]} : vector<16x768xf32> to vector<16x384xf32>
    %106 = arith.truncf %90 : vector<16x128xf32> to vector<16x128xbf16>
    %cst_34 = arith.constant dense<0.000000e+00> : vector<16x384xf32>
    %107 = tpu.matmul %106, %8, %cst_34 {dimension_numbers = #tpu.dot_dimension_numbers<[1], [0], [0], [1], [0, 0, 1, 1], [], []>} : vector<16x128xbf16>, vector<128x384xbf16>, vector<16x384xf32> -> vector<16x384xf32>
    %108 = arith.addf %107, %12 : vector<16x384xf32>
    %109 = vector.extract_strided_slice %105 {offsets = [0, 0], sizes = [16, 128], strides = [1, 1]} : vector<16x384xf32> to vector<16x128xf32>
    %110 = vector.extract_strided_slice %108 {offsets = [0, 0], sizes = [16, 128], strides = [1, 1]} : vector<16x384xf32> to vector<16x128xf32>
    %111 = arith.addf %109, %110 : vector<16x128xf32>
    %112 = arith.negf %111 : vector<16x128xf32>
    %113 = math.exp %112 : vector<16x128xf32>
    %cst_35 = arith.constant 1.000000e+00 : f32
    %114 = vector.broadcast %cst_35 : f32 to vector<16x128xf32>
    %115 = arith.addf %114, %113 : vector<16x128xf32>
    %116 = arith.divf %114, %115 : vector<16x128xf32>
    %117 = vector.extract_strided_slice %105 {offsets = [0, 128], sizes = [16, 128], strides = [1, 1]} : vector<16x384xf32> to vector<16x128xf32>
    %118 = vector.extract_strided_slice %108 {offsets = [0, 128], sizes = [16, 128], strides = [1, 1]} : vector<16x384xf32> to vector<16x128xf32>
    %119 = arith.addf %117, %118 : vector<16x128xf32>
    %120 = arith.negf %119 : vector<16x128xf32>
    %121 = math.exp %120 : vector<16x128xf32>
    %cst_36 = arith.constant 1.000000e+00 : f32
    %122 = vector.broadcast %cst_36 : f32 to vector<16x128xf32>
    %123 = arith.addf %122, %121 : vector<16x128xf32>
    %124 = arith.divf %122, %123 : vector<16x128xf32>
    %125 = vector.extract_strided_slice %105 {offsets = [0, 256], sizes = [16, 128], strides = [1, 1]} : vector<16x384xf32> to vector<16x128xf32>
    %126 = vector.extract_strided_slice %108 {offsets = [0, 256], sizes = [16, 128], strides = [1, 1]} : vector<16x384xf32> to vector<16x128xf32>
    %127 = arith.mulf %116, %126 : vector<16x128xf32>
    %128 = arith.addf %125, %127 : vector<16x128xf32>
    %129 = math.tanh %128 : vector<16x128xf32>
    %cst_37 = arith.constant 1.000000e+00 : f32
    %130 = vector.broadcast %cst_37 : f32 to vector<16x128xf32>
    %131 = arith.subf %130, %124 : vector<16x128xf32>
    %132 = arith.mulf %131, %129 : vector<16x128xf32>
    %133 = arith.mulf %124, %90 : vector<16x128xf32>
    %134 = arith.addf %132, %133 : vector<16x128xf32>
    %135 = vector.extract_strided_slice %104 {offsets = [0, 384], sizes = [16, 384], strides = [1, 1]} : vector<16x768xf32> to vector<16x384xf32>
    %136 = arith.truncf %95 : vector<16x128xf32> to vector<16x128xbf16>
    %cst_38 = arith.constant dense<0.000000e+00> : vector<16x384xf32>
    %137 = tpu.matmul %136, %9, %cst_38 {dimension_numbers = #tpu.dot_dimension_numbers<[1], [0], [0], [1], [0, 0, 1, 1], [], []>} : vector<16x128xbf16>, vector<128x384xbf16>, vector<16x384xf32> -> vector<16x384xf32>
    %138 = arith.addf %137, %15 : vector<16x384xf32>
    %139 = vector.extract_strided_slice %135 {offsets = [0, 0], sizes = [16, 128], strides = [1, 1]} : vector<16x384xf32> to vector<16x128xf32>
    %140 = vector.extract_strided_slice %138 {offsets = [0, 0], sizes = [16, 128], strides = [1, 1]} : vector<16x384xf32> to vector<16x128xf32>
    %141 = arith.addf %139, %140 : vector<16x128xf32>
    %142 = arith.negf %141 : vector<16x128xf32>
    %143 = math.exp %142 : vector<16x128xf32>
    %cst_39 = arith.constant 1.000000e+00 : f32
    %144 = vector.broadcast %cst_39 : f32 to vector<16x128xf32>
    %145 = arith.addf %144, %143 : vector<16x128xf32>
    %146 = arith.divf %144, %145 : vector<16x128xf32>
    %147 = vector.extract_strided_slice %135 {offsets = [0, 128], sizes = [16, 128], strides = [1, 1]} : vector<16x384xf32> to vector<16x128xf32>
    %148 = vector.extract_strided_slice %138 {offsets = [0, 128], sizes = [16, 128], strides = [1, 1]} : vector<16x384xf32> to vector<16x128xf32>
    %149 = arith.addf %147, %148 : vector<16x128xf32>
    %150 = arith.negf %149 : vector<16x128xf32>
    %151 = math.exp %150 : vector<16x128xf32>
    %cst_40 = arith.constant 1.000000e+00 : f32
    %152 = vector.broadcast %cst_40 : f32 to vector<16x128xf32>
    %153 = arith.addf %152, %151 : vector<16x128xf32>
    %154 = arith.divf %152, %153 : vector<16x128xf32>
    %155 = vector.extract_strided_slice %135 {offsets = [0, 256], sizes = [16, 128], strides = [1, 1]} : vector<16x384xf32> to vector<16x128xf32>
    %156 = vector.extract_strided_slice %138 {offsets = [0, 256], sizes = [16, 128], strides = [1, 1]} : vector<16x384xf32> to vector<16x128xf32>
    %157 = arith.mulf %146, %156 : vector<16x128xf32>
    %158 = arith.addf %155, %157 : vector<16x128xf32>
    %159 = math.tanh %158 : vector<16x128xf32>
    %cst_41 = arith.constant 1.000000e+00 : f32
    %160 = vector.broadcast %cst_41 : f32 to vector<16x128xf32>
    %161 = arith.subf %160, %154 : vector<16x128xf32>
    %162 = arith.mulf %161, %159 : vector<16x128xf32>
    %163 = arith.mulf %154, %95 : vector<16x128xf32>
    %164 = arith.addf %162, %163 : vector<16x128xf32>
    %165 = vector.broadcast %c1_i32 : i32 to vector<16x1xi32>
    %166 = arith.cmpi sgt, %7, %165 : vector<16x1xi32>
    %167 = vector.shape_cast %166 : vector<16x1xi1> to vector<16x1xi1>
    %168 = vector.broadcast %167 : vector<16x1xi1> to vector<16x128xi1>
    %169 = arith.select %168, %134, %90 : vector<16x128xi1>, vector<16x128xf32>
    %170 = vector.broadcast %96 : i32 to vector<16x1xi32>
    %171 = arith.cmpi sgt, %7, %170 : vector<16x1xi32>
    %172 = vector.shape_cast %171 : vector<16x1xi1> to vector<16x1xi1>
    %173 = vector.broadcast %172 : vector<16x1xi1> to vector<16x128xi1>
    %174 = arith.select %173, %164, %95 : vector<16x128xi1>, vector<16x128xf32>
    %c2_i32 = arith.constant 2 : i32
    %c7_i32_42 = arith.constant 7 : i32
    %175 = arith.subi %c7_i32_42, %c2_i32 : i32
    %c16_i32_43 = arith.constant 16 : i32
    %176 = arith.muli %c2_i32, %c16_i32_43 : i32
    %177 = tpu.assume_multiple %176, 16 : i32
    %178 = arith.index_cast %177 : i32 to index
    %c0_44 = arith.constant 0 : index
    %179 = vector.load %arg11[%178, %c0_44] : memref<128x768xf32, #tpu.memory_space<vmem>>, vector<16x768xf32>
    %c16_i32_45 = arith.constant 16 : i32
    %180 = arith.muli %175, %c16_i32_45 : i32
    %181 = tpu.assume_multiple %180, 16 : i32
    %182 = arith.index_cast %181 : i32 to index
    %c0_46 = arith.constant 0 : index
    %183 = vector.load %arg11[%182, %c0_46] : memref<128x768xf32, #tpu.memory_space<vmem>>, vector<16x768xf32>
    %184 = vector.extract_strided_slice %179 {offsets = [0, 0], sizes = [16, 384], strides = [1, 1]} : vector<16x768xf32> to vector<16x384xf32>
    %185 = arith.truncf %169 : vector<16x128xf32> to vector<16x128xbf16>
    %cst_47 = arith.constant dense<0.000000e+00> : vector<16x384xf32>
    %186 = tpu.matmul %185, %8, %cst_47 {dimension_numbers = #tpu.dot_dimension_numbers<[1], [0], [0], [1], [0, 0, 1, 1], [], []>} : vector<16x128xbf16>, vector<128x384xbf16>, vector<16x384xf32> -> vector<16x384xf32>
    %187 = arith.addf %186, %12 : vector<16x384xf32>
    %188 = vector.extract_strided_slice %184 {offsets = [0, 0], sizes = [16, 128], strides = [1, 1]} : vector<16x384xf32> to vector<16x128xf32>
    %189 = vector.extract_strided_slice %187 {offsets = [0, 0], sizes = [16, 128], strides = [1, 1]} : vector<16x384xf32> to vector<16x128xf32>
    %190 = arith.addf %188, %189 : vector<16x128xf32>
    %191 = arith.negf %190 : vector<16x128xf32>
    %192 = math.exp %191 : vector<16x128xf32>
    %cst_48 = arith.constant 1.000000e+00 : f32
    %193 = vector.broadcast %cst_48 : f32 to vector<16x128xf32>
    %194 = arith.addf %193, %192 : vector<16x128xf32>
    %195 = arith.divf %193, %194 : vector<16x128xf32>
    %196 = vector.extract_strided_slice %184 {offsets = [0, 128], sizes = [16, 128], strides = [1, 1]} : vector<16x384xf32> to vector<16x128xf32>
    %197 = vector.extract_strided_slice %187 {offsets = [0, 128], sizes = [16, 128], strides = [1, 1]} : vector<16x384xf32> to vector<16x128xf32>
    %198 = arith.addf %196, %197 : vector<16x128xf32>
    %199 = arith.negf %198 : vector<16x128xf32>
    %200 = math.exp %199 : vector<16x128xf32>
    %cst_49 = arith.constant 1.000000e+00 : f32
    %201 = vector.broadcast %cst_49 : f32 to vector<16x128xf32>
    %202 = arith.addf %201, %200 : vector<16x128xf32>
    %203 = arith.divf %201, %202 : vector<16x128xf32>
    %204 = vector.extract_strided_slice %184 {offsets = [0, 256], sizes = [16, 128], strides = [1, 1]} : vector<16x384xf32> to vector<16x128xf32>
    %205 = vector.extract_strided_slice %187 {offsets = [0, 256], sizes = [16, 128], strides = [1, 1]} : vector<16x384xf32> to vector<16x128xf32>
    %206 = arith.mulf %195, %205 : vector<16x128xf32>
    %207 = arith.addf %204, %206 : vector<16x128xf32>
    %208 = math.tanh %207 : vector<16x128xf32>
    %cst_50 = arith.constant 1.000000e+00 : f32
    %209 = vector.broadcast %cst_50 : f32 to vector<16x128xf32>
    %210 = arith.subf %209, %203 : vector<16x128xf32>
    %211 = arith.mulf %210, %208 : vector<16x128xf32>
    %212 = arith.mulf %203, %169 : vector<16x128xf32>
    %213 = arith.addf %211, %212 : vector<16x128xf32>
    %214 = vector.extract_strided_slice %183 {offsets = [0, 384], sizes = [16, 384], strides = [1, 1]} : vector<16x768xf32> to vector<16x384xf32>
    %215 = arith.truncf %174 : vector<16x128xf32> to vector<16x128xbf16>
    %cst_51 = arith.constant dense<0.000000e+00> : vector<16x384xf32>
    %216 = tpu.matmul %215, %9, %cst_51 {dimension_numbers = #tpu.dot_dimension_numbers<[1], [0], [0], [1], [0, 0, 1, 1], [], []>} : vector<16x128xbf16>, vector<128x384xbf16>, vector<16x384xf32> -> vector<16x384xf32>
    %217 = arith.addf %216, %15 : vector<16x384xf32>
    %218 = vector.extract_strided_slice %214 {offsets = [0, 0], sizes = [16, 128], strides = [1, 1]} : vector<16x384xf32> to vector<16x128xf32>
    %219 = vector.extract_strided_slice %217 {offsets = [0, 0], sizes = [16, 128], strides = [1, 1]} : vector<16x384xf32> to vector<16x128xf32>
    %220 = arith.addf %218, %219 : vector<16x128xf32>
    %221 = arith.negf %220 : vector<16x128xf32>
    %222 = math.exp %221 : vector<16x128xf32>
    %cst_52 = arith.constant 1.000000e+00 : f32
    %223 = vector.broadcast %cst_52 : f32 to vector<16x128xf32>
    %224 = arith.addf %223, %222 : vector<16x128xf32>
    %225 = arith.divf %223, %224 : vector<16x128xf32>
    %226 = vector.extract_strided_slice %214 {offsets = [0, 128], sizes = [16, 128], strides = [1, 1]} : vector<16x384xf32> to vector<16x128xf32>
    %227 = vector.extract_strided_slice %217 {offsets = [0, 128], sizes = [16, 128], strides = [1, 1]} : vector<16x384xf32> to vector<16x128xf32>
    %228 = arith.addf %226, %227 : vector<16x128xf32>
    %229 = arith.negf %228 : vector<16x128xf32>
    %230 = math.exp %229 : vector<16x128xf32>
    %cst_53 = arith.constant 1.000000e+00 : f32
    %231 = vector.broadcast %cst_53 : f32 to vector<16x128xf32>
    %232 = arith.addf %231, %230 : vector<16x128xf32>
    %233 = arith.divf %231, %232 : vector<16x128xf32>
    %234 = vector.extract_strided_slice %214 {offsets = [0, 256], sizes = [16, 128], strides = [1, 1]} : vector<16x384xf32> to vector<16x128xf32>
    %235 = vector.extract_strided_slice %217 {offsets = [0, 256], sizes = [16, 128], strides = [1, 1]} : vector<16x384xf32> to vector<16x128xf32>
    %236 = arith.mulf %225, %235 : vector<16x128xf32>
    %237 = arith.addf %234, %236 : vector<16x128xf32>
    %238 = math.tanh %237 : vector<16x128xf32>
    %cst_54 = arith.constant 1.000000e+00 : f32
    %239 = vector.broadcast %cst_54 : f32 to vector<16x128xf32>
    %240 = arith.subf %239, %233 : vector<16x128xf32>
    %241 = arith.mulf %240, %238 : vector<16x128xf32>
    %242 = arith.mulf %233, %174 : vector<16x128xf32>
    %243 = arith.addf %241, %242 : vector<16x128xf32>
    %244 = vector.broadcast %c2_i32 : i32 to vector<16x1xi32>
    %245 = arith.cmpi sgt, %7, %244 : vector<16x1xi32>
    %246 = vector.shape_cast %245 : vector<16x1xi1> to vector<16x1xi1>
    %247 = vector.broadcast %246 : vector<16x1xi1> to vector<16x128xi1>
    %248 = arith.select %247, %213, %169 : vector<16x128xi1>, vector<16x128xf32>
    %249 = vector.broadcast %175 : i32 to vector<16x1xi32>
    %250 = arith.cmpi sgt, %7, %249 : vector<16x1xi32>
    %251 = vector.shape_cast %250 : vector<16x1xi1> to vector<16x1xi1>
    %252 = vector.broadcast %251 : vector<16x1xi1> to vector<16x128xi1>
    %253 = arith.select %252, %243, %174 : vector<16x128xi1>, vector<16x128xf32>
    %c3_i32 = arith.constant 3 : i32
    %c7_i32_55 = arith.constant 7 : i32
    %254 = arith.subi %c7_i32_55, %c3_i32 : i32
    %c16_i32_56 = arith.constant 16 : i32
    %255 = arith.muli %c3_i32, %c16_i32_56 : i32
    %256 = tpu.assume_multiple %255, 16 : i32
    %257 = arith.index_cast %256 : i32 to index
    %c0_57 = arith.constant 0 : index
    %258 = vector.load %arg11[%257, %c0_57] : memref<128x768xf32, #tpu.memory_space<vmem>>, vector<16x768xf32>
    %c16_i32_58 = arith.constant 16 : i32
    %259 = arith.muli %254, %c16_i32_58 : i32
    %260 = tpu.assume_multiple %259, 16 : i32
    %261 = arith.index_cast %260 : i32 to index
    %c0_59 = arith.constant 0 : index
    %262 = vector.load %arg11[%261, %c0_59] : memref<128x768xf32, #tpu.memory_space<vmem>>, vector<16x768xf32>
    %263 = vector.extract_strided_slice %258 {offsets = [0, 0], sizes = [16, 384], strides = [1, 1]} : vector<16x768xf32> to vector<16x384xf32>
    %264 = arith.truncf %248 : vector<16x128xf32> to vector<16x128xbf16>
    %cst_60 = arith.constant dense<0.000000e+00> : vector<16x384xf32>
    %265 = tpu.matmul %264, %8, %cst_60 {dimension_numbers = #tpu.dot_dimension_numbers<[1], [0], [0], [1], [0, 0, 1, 1], [], []>} : vector<16x128xbf16>, vector<128x384xbf16>, vector<16x384xf32> -> vector<16x384xf32>
    %266 = arith.addf %265, %12 : vector<16x384xf32>
    %267 = vector.extract_strided_slice %263 {offsets = [0, 0], sizes = [16, 128], strides = [1, 1]} : vector<16x384xf32> to vector<16x128xf32>
    %268 = vector.extract_strided_slice %266 {offsets = [0, 0], sizes = [16, 128], strides = [1, 1]} : vector<16x384xf32> to vector<16x128xf32>
    %269 = arith.addf %267, %268 : vector<16x128xf32>
    %270 = arith.negf %269 : vector<16x128xf32>
    %271 = math.exp %270 : vector<16x128xf32>
    %cst_61 = arith.constant 1.000000e+00 : f32
    %272 = vector.broadcast %cst_61 : f32 to vector<16x128xf32>
    %273 = arith.addf %272, %271 : vector<16x128xf32>
    %274 = arith.divf %272, %273 : vector<16x128xf32>
    %275 = vector.extract_strided_slice %263 {offsets = [0, 128], sizes = [16, 128], strides = [1, 1]} : vector<16x384xf32> to vector<16x128xf32>
    %276 = vector.extract_strided_slice %266 {offsets = [0, 128], sizes = [16, 128], strides = [1, 1]} : vector<16x384xf32> to vector<16x128xf32>
    %277 = arith.addf %275, %276 : vector<16x128xf32>
    %278 = arith.negf %277 : vector<16x128xf32>
    %279 = math.exp %278 : vector<16x128xf32>
    %cst_62 = arith.constant 1.000000e+00 : f32
    %280 = vector.broadcast %cst_62 : f32 to vector<16x128xf32>
    %281 = arith.addf %280, %279 : vector<16x128xf32>
    %282 = arith.divf %280, %281 : vector<16x128xf32>
    %283 = vector.extract_strided_slice %263 {offsets = [0, 256], sizes = [16, 128], strides = [1, 1]} : vector<16x384xf32> to vector<16x128xf32>
    %284 = vector.extract_strided_slice %266 {offsets = [0, 256], sizes = [16, 128], strides = [1, 1]} : vector<16x384xf32> to vector<16x128xf32>
    %285 = arith.mulf %274, %284 : vector<16x128xf32>
    %286 = arith.addf %283, %285 : vector<16x128xf32>
    %287 = math.tanh %286 : vector<16x128xf32>
    %cst_63 = arith.constant 1.000000e+00 : f32
    %288 = vector.broadcast %cst_63 : f32 to vector<16x128xf32>
    %289 = arith.subf %288, %282 : vector<16x128xf32>
    %290 = arith.mulf %289, %287 : vector<16x128xf32>
    %291 = arith.mulf %282, %248 : vector<16x128xf32>
    %292 = arith.addf %290, %291 : vector<16x128xf32>
    %293 = vector.extract_strided_slice %262 {offsets = [0, 384], sizes = [16, 384], strides = [1, 1]} : vector<16x768xf32> to vector<16x384xf32>
    %294 = arith.truncf %253 : vector<16x128xf32> to vector<16x128xbf16>
    %cst_64 = arith.constant dense<0.000000e+00> : vector<16x384xf32>
    %295 = tpu.matmul %294, %9, %cst_64 {dimension_numbers = #tpu.dot_dimension_numbers<[1], [0], [0], [1], [0, 0, 1, 1], [], []>} : vector<16x128xbf16>, vector<128x384xbf16>, vector<16x384xf32> -> vector<16x384xf32>
    %296 = arith.addf %295, %15 : vector<16x384xf32>
    %297 = vector.extract_strided_slice %293 {offsets = [0, 0], sizes = [16, 128], strides = [1, 1]} : vector<16x384xf32> to vector<16x128xf32>
    %298 = vector.extract_strided_slice %296 {offsets = [0, 0], sizes = [16, 128], strides = [1, 1]} : vector<16x384xf32> to vector<16x128xf32>
    %299 = arith.addf %297, %298 : vector<16x128xf32>
    %300 = arith.negf %299 : vector<16x128xf32>
    %301 = math.exp %300 : vector<16x128xf32>
    %cst_65 = arith.constant 1.000000e+00 : f32
    %302 = vector.broadcast %cst_65 : f32 to vector<16x128xf32>
    %303 = arith.addf %302, %301 : vector<16x128xf32>
    %304 = arith.divf %302, %303 : vector<16x128xf32>
    %305 = vector.extract_strided_slice %293 {offsets = [0, 128], sizes = [16, 128], strides = [1, 1]} : vector<16x384xf32> to vector<16x128xf32>
    %306 = vector.extract_strided_slice %296 {offsets = [0, 128], sizes = [16, 128], strides = [1, 1]} : vector<16x384xf32> to vector<16x128xf32>
    %307 = arith.addf %305, %306 : vector<16x128xf32>
    %308 = arith.negf %307 : vector<16x128xf32>
    %309 = math.exp %308 : vector<16x128xf32>
    %cst_66 = arith.constant 1.000000e+00 : f32
    %310 = vector.broadcast %cst_66 : f32 to vector<16x128xf32>
    %311 = arith.addf %310, %309 : vector<16x128xf32>
    %312 = arith.divf %310, %311 : vector<16x128xf32>
    %313 = vector.extract_strided_slice %293 {offsets = [0, 256], sizes = [16, 128], strides = [1, 1]} : vector<16x384xf32> to vector<16x128xf32>
    %314 = vector.extract_strided_slice %296 {offsets = [0, 256], sizes = [16, 128], strides = [1, 1]} : vector<16x384xf32> to vector<16x128xf32>
    %315 = arith.mulf %304, %314 : vector<16x128xf32>
    %316 = arith.addf %313, %315 : vector<16x128xf32>
    %317 = math.tanh %316 : vector<16x128xf32>
    %cst_67 = arith.constant 1.000000e+00 : f32
    %318 = vector.broadcast %cst_67 : f32 to vector<16x128xf32>
    %319 = arith.subf %318, %312 : vector<16x128xf32>
    %320 = arith.mulf %319, %317 : vector<16x128xf32>
    %321 = arith.mulf %312, %253 : vector<16x128xf32>
    %322 = arith.addf %320, %321 : vector<16x128xf32>
    %323 = vector.broadcast %c3_i32 : i32 to vector<16x1xi32>
    %324 = arith.cmpi sgt, %7, %323 : vector<16x1xi32>
    %325 = vector.shape_cast %324 : vector<16x1xi1> to vector<16x1xi1>
    %326 = vector.broadcast %325 : vector<16x1xi1> to vector<16x128xi1>
    %327 = arith.select %326, %292, %248 : vector<16x128xi1>, vector<16x128xf32>
    %328 = vector.broadcast %254 : i32 to vector<16x1xi32>
    %329 = arith.cmpi sgt, %7, %328 : vector<16x1xi32>
    %330 = vector.shape_cast %329 : vector<16x1xi1> to vector<16x1xi1>
    %331 = vector.broadcast %330 : vector<16x1xi1> to vector<16x128xi1>
    %332 = arith.select %331, %322, %253 : vector<16x128xi1>, vector<16x128xf32>
    %c4_i32 = arith.constant 4 : i32
    %c7_i32_68 = arith.constant 7 : i32
    %333 = arith.subi %c7_i32_68, %c4_i32 : i32
    %c16_i32_69 = arith.constant 16 : i32
    %334 = arith.muli %c4_i32, %c16_i32_69 : i32
    %335 = tpu.assume_multiple %334, 16 : i32
    %336 = arith.index_cast %335 : i32 to index
    %c0_70 = arith.constant 0 : index
    %337 = vector.load %arg11[%336, %c0_70] : memref<128x768xf32, #tpu.memory_space<vmem>>, vector<16x768xf32>
    %c16_i32_71 = arith.constant 16 : i32
    %338 = arith.muli %333, %c16_i32_71 : i32
    %339 = tpu.assume_multiple %338, 16 : i32
    %340 = arith.index_cast %339 : i32 to index
    %c0_72 = arith.constant 0 : index
    %341 = vector.load %arg11[%340, %c0_72] : memref<128x768xf32, #tpu.memory_space<vmem>>, vector<16x768xf32>
    %342 = vector.extract_strided_slice %337 {offsets = [0, 0], sizes = [16, 384], strides = [1, 1]} : vector<16x768xf32> to vector<16x384xf32>
    %343 = arith.truncf %327 : vector<16x128xf32> to vector<16x128xbf16>
    %cst_73 = arith.constant dense<0.000000e+00> : vector<16x384xf32>
    %344 = tpu.matmul %343, %8, %cst_73 {dimension_numbers = #tpu.dot_dimension_numbers<[1], [0], [0], [1], [0, 0, 1, 1], [], []>} : vector<16x128xbf16>, vector<128x384xbf16>, vector<16x384xf32> -> vector<16x384xf32>
    %345 = arith.addf %344, %12 : vector<16x384xf32>
    %346 = vector.extract_strided_slice %342 {offsets = [0, 0], sizes = [16, 128], strides = [1, 1]} : vector<16x384xf32> to vector<16x128xf32>
    %347 = vector.extract_strided_slice %345 {offsets = [0, 0], sizes = [16, 128], strides = [1, 1]} : vector<16x384xf32> to vector<16x128xf32>
    %348 = arith.addf %346, %347 : vector<16x128xf32>
    %349 = arith.negf %348 : vector<16x128xf32>
    %350 = math.exp %349 : vector<16x128xf32>
    %cst_74 = arith.constant 1.000000e+00 : f32
    %351 = vector.broadcast %cst_74 : f32 to vector<16x128xf32>
    %352 = arith.addf %351, %350 : vector<16x128xf32>
    %353 = arith.divf %351, %352 : vector<16x128xf32>
    %354 = vector.extract_strided_slice %342 {offsets = [0, 128], sizes = [16, 128], strides = [1, 1]} : vector<16x384xf32> to vector<16x128xf32>
    %355 = vector.extract_strided_slice %345 {offsets = [0, 128], sizes = [16, 128], strides = [1, 1]} : vector<16x384xf32> to vector<16x128xf32>
    %356 = arith.addf %354, %355 : vector<16x128xf32>
    %357 = arith.negf %356 : vector<16x128xf32>
    %358 = math.exp %357 : vector<16x128xf32>
    %cst_75 = arith.constant 1.000000e+00 : f32
    %359 = vector.broadcast %cst_75 : f32 to vector<16x128xf32>
    %360 = arith.addf %359, %358 : vector<16x128xf32>
    %361 = arith.divf %359, %360 : vector<16x128xf32>
    %362 = vector.extract_strided_slice %342 {offsets = [0, 256], sizes = [16, 128], strides = [1, 1]} : vector<16x384xf32> to vector<16x128xf32>
    %363 = vector.extract_strided_slice %345 {offsets = [0, 256], sizes = [16, 128], strides = [1, 1]} : vector<16x384xf32> to vector<16x128xf32>
    %364 = arith.mulf %353, %363 : vector<16x128xf32>
    %365 = arith.addf %362, %364 : vector<16x128xf32>
    %366 = math.tanh %365 : vector<16x128xf32>
    %cst_76 = arith.constant 1.000000e+00 : f32
    %367 = vector.broadcast %cst_76 : f32 to vector<16x128xf32>
    %368 = arith.subf %367, %361 : vector<16x128xf32>
    %369 = arith.mulf %368, %366 : vector<16x128xf32>
    %370 = arith.mulf %361, %327 : vector<16x128xf32>
    %371 = arith.addf %369, %370 : vector<16x128xf32>
    %372 = vector.extract_strided_slice %341 {offsets = [0, 384], sizes = [16, 384], strides = [1, 1]} : vector<16x768xf32> to vector<16x384xf32>
    %373 = arith.truncf %332 : vector<16x128xf32> to vector<16x128xbf16>
    %cst_77 = arith.constant dense<0.000000e+00> : vector<16x384xf32>
    %374 = tpu.matmul %373, %9, %cst_77 {dimension_numbers = #tpu.dot_dimension_numbers<[1], [0], [0], [1], [0, 0, 1, 1], [], []>} : vector<16x128xbf16>, vector<128x384xbf16>, vector<16x384xf32> -> vector<16x384xf32>
    %375 = arith.addf %374, %15 : vector<16x384xf32>
    %376 = vector.extract_strided_slice %372 {offsets = [0, 0], sizes = [16, 128], strides = [1, 1]} : vector<16x384xf32> to vector<16x128xf32>
    %377 = vector.extract_strided_slice %375 {offsets = [0, 0], sizes = [16, 128], strides = [1, 1]} : vector<16x384xf32> to vector<16x128xf32>
    %378 = arith.addf %376, %377 : vector<16x128xf32>
    %379 = arith.negf %378 : vector<16x128xf32>
    %380 = math.exp %379 : vector<16x128xf32>
    %cst_78 = arith.constant 1.000000e+00 : f32
    %381 = vector.broadcast %cst_78 : f32 to vector<16x128xf32>
    %382 = arith.addf %381, %380 : vector<16x128xf32>
    %383 = arith.divf %381, %382 : vector<16x128xf32>
    %384 = vector.extract_strided_slice %372 {offsets = [0, 128], sizes = [16, 128], strides = [1, 1]} : vector<16x384xf32> to vector<16x128xf32>
    %385 = vector.extract_strided_slice %375 {offsets = [0, 128], sizes = [16, 128], strides = [1, 1]} : vector<16x384xf32> to vector<16x128xf32>
    %386 = arith.addf %384, %385 : vector<16x128xf32>
    %387 = arith.negf %386 : vector<16x128xf32>
    %388 = math.exp %387 : vector<16x128xf32>
    %cst_79 = arith.constant 1.000000e+00 : f32
    %389 = vector.broadcast %cst_79 : f32 to vector<16x128xf32>
    %390 = arith.addf %389, %388 : vector<16x128xf32>
    %391 = arith.divf %389, %390 : vector<16x128xf32>
    %392 = vector.extract_strided_slice %372 {offsets = [0, 256], sizes = [16, 128], strides = [1, 1]} : vector<16x384xf32> to vector<16x128xf32>
    %393 = vector.extract_strided_slice %375 {offsets = [0, 256], sizes = [16, 128], strides = [1, 1]} : vector<16x384xf32> to vector<16x128xf32>
    %394 = arith.mulf %383, %393 : vector<16x128xf32>
    %395 = arith.addf %392, %394 : vector<16x128xf32>
    %396 = math.tanh %395 : vector<16x128xf32>
    %cst_80 = arith.constant 1.000000e+00 : f32
    %397 = vector.broadcast %cst_80 : f32 to vector<16x128xf32>
    %398 = arith.subf %397, %391 : vector<16x128xf32>
    %399 = arith.mulf %398, %396 : vector<16x128xf32>
    %400 = arith.mulf %391, %332 : vector<16x128xf32>
    %401 = arith.addf %399, %400 : vector<16x128xf32>
    %402 = vector.broadcast %c4_i32 : i32 to vector<16x1xi32>
    %403 = arith.cmpi sgt, %7, %402 : vector<16x1xi32>
    %404 = vector.shape_cast %403 : vector<16x1xi1> to vector<16x1xi1>
    %405 = vector.broadcast %404 : vector<16x1xi1> to vector<16x128xi1>
    %406 = arith.select %405, %371, %327 : vector<16x128xi1>, vector<16x128xf32>
    %407 = vector.broadcast %333 : i32 to vector<16x1xi32>
    %408 = arith.cmpi sgt, %7, %407 : vector<16x1xi32>
    %409 = vector.shape_cast %408 : vector<16x1xi1> to vector<16x1xi1>
    %410 = vector.broadcast %409 : vector<16x1xi1> to vector<16x128xi1>
    %411 = arith.select %410, %401, %332 : vector<16x128xi1>, vector<16x128xf32>
    %c5_i32 = arith.constant 5 : i32
    %c7_i32_81 = arith.constant 7 : i32
    %412 = arith.subi %c7_i32_81, %c5_i32 : i32
    %c16_i32_82 = arith.constant 16 : i32
    %413 = arith.muli %c5_i32, %c16_i32_82 : i32
    %414 = tpu.assume_multiple %413, 16 : i32
    %415 = arith.index_cast %414 : i32 to index
    %c0_83 = arith.constant 0 : index
    %416 = vector.load %arg11[%415, %c0_83] : memref<128x768xf32, #tpu.memory_space<vmem>>, vector<16x768xf32>
    %c16_i32_84 = arith.constant 16 : i32
    %417 = arith.muli %412, %c16_i32_84 : i32
    %418 = tpu.assume_multiple %417, 16 : i32
    %419 = arith.index_cast %418 : i32 to index
    %c0_85 = arith.constant 0 : index
    %420 = vector.load %arg11[%419, %c0_85] : memref<128x768xf32, #tpu.memory_space<vmem>>, vector<16x768xf32>
    %421 = vector.extract_strided_slice %416 {offsets = [0, 0], sizes = [16, 384], strides = [1, 1]} : vector<16x768xf32> to vector<16x384xf32>
    %422 = arith.truncf %406 : vector<16x128xf32> to vector<16x128xbf16>
    %cst_86 = arith.constant dense<0.000000e+00> : vector<16x384xf32>
    %423 = tpu.matmul %422, %8, %cst_86 {dimension_numbers = #tpu.dot_dimension_numbers<[1], [0], [0], [1], [0, 0, 1, 1], [], []>} : vector<16x128xbf16>, vector<128x384xbf16>, vector<16x384xf32> -> vector<16x384xf32>
    %424 = arith.addf %423, %12 : vector<16x384xf32>
    %425 = vector.extract_strided_slice %421 {offsets = [0, 0], sizes = [16, 128], strides = [1, 1]} : vector<16x384xf32> to vector<16x128xf32>
    %426 = vector.extract_strided_slice %424 {offsets = [0, 0], sizes = [16, 128], strides = [1, 1]} : vector<16x384xf32> to vector<16x128xf32>
    %427 = arith.addf %425, %426 : vector<16x128xf32>
    %428 = arith.negf %427 : vector<16x128xf32>
    %429 = math.exp %428 : vector<16x128xf32>
    %cst_87 = arith.constant 1.000000e+00 : f32
    %430 = vector.broadcast %cst_87 : f32 to vector<16x128xf32>
    %431 = arith.addf %430, %429 : vector<16x128xf32>
    %432 = arith.divf %430, %431 : vector<16x128xf32>
    %433 = vector.extract_strided_slice %421 {offsets = [0, 128], sizes = [16, 128], strides = [1, 1]} : vector<16x384xf32> to vector<16x128xf32>
    %434 = vector.extract_strided_slice %424 {offsets = [0, 128], sizes = [16, 128], strides = [1, 1]} : vector<16x384xf32> to vector<16x128xf32>
    %435 = arith.addf %433, %434 : vector<16x128xf32>
    %436 = arith.negf %435 : vector<16x128xf32>
    %437 = math.exp %436 : vector<16x128xf32>
    %cst_88 = arith.constant 1.000000e+00 : f32
    %438 = vector.broadcast %cst_88 : f32 to vector<16x128xf32>
    %439 = arith.addf %438, %437 : vector<16x128xf32>
    %440 = arith.divf %438, %439 : vector<16x128xf32>
    %441 = vector.extract_strided_slice %421 {offsets = [0, 256], sizes = [16, 128], strides = [1, 1]} : vector<16x384xf32> to vector<16x128xf32>
    %442 = vector.extract_strided_slice %424 {offsets = [0, 256], sizes = [16, 128], strides = [1, 1]} : vector<16x384xf32> to vector<16x128xf32>
    %443 = arith.mulf %432, %442 : vector<16x128xf32>
    %444 = arith.addf %441, %443 : vector<16x128xf32>
    %445 = math.tanh %444 : vector<16x128xf32>
    %cst_89 = arith.constant 1.000000e+00 : f32
    %446 = vector.broadcast %cst_89 : f32 to vector<16x128xf32>
    %447 = arith.subf %446, %440 : vector<16x128xf32>
    %448 = arith.mulf %447, %445 : vector<16x128xf32>
    %449 = arith.mulf %440, %406 : vector<16x128xf32>
    %450 = arith.addf %448, %449 : vector<16x128xf32>
    %451 = vector.extract_strided_slice %420 {offsets = [0, 384], sizes = [16, 384], strides = [1, 1]} : vector<16x768xf32> to vector<16x384xf32>
    %452 = arith.truncf %411 : vector<16x128xf32> to vector<16x128xbf16>
    %cst_90 = arith.constant dense<0.000000e+00> : vector<16x384xf32>
    %453 = tpu.matmul %452, %9, %cst_90 {dimension_numbers = #tpu.dot_dimension_numbers<[1], [0], [0], [1], [0, 0, 1, 1], [], []>} : vector<16x128xbf16>, vector<128x384xbf16>, vector<16x384xf32> -> vector<16x384xf32>
    %454 = arith.addf %453, %15 : vector<16x384xf32>
    %455 = vector.extract_strided_slice %451 {offsets = [0, 0], sizes = [16, 128], strides = [1, 1]} : vector<16x384xf32> to vector<16x128xf32>
    %456 = vector.extract_strided_slice %454 {offsets = [0, 0], sizes = [16, 128], strides = [1, 1]} : vector<16x384xf32> to vector<16x128xf32>
    %457 = arith.addf %455, %456 : vector<16x128xf32>
    %458 = arith.negf %457 : vector<16x128xf32>
    %459 = math.exp %458 : vector<16x128xf32>
    %cst_91 = arith.constant 1.000000e+00 : f32
    %460 = vector.broadcast %cst_91 : f32 to vector<16x128xf32>
    %461 = arith.addf %460, %459 : vector<16x128xf32>
    %462 = arith.divf %460, %461 : vector<16x128xf32>
    %463 = vector.extract_strided_slice %451 {offsets = [0, 128], sizes = [16, 128], strides = [1, 1]} : vector<16x384xf32> to vector<16x128xf32>
    %464 = vector.extract_strided_slice %454 {offsets = [0, 128], sizes = [16, 128], strides = [1, 1]} : vector<16x384xf32> to vector<16x128xf32>
    %465 = arith.addf %463, %464 : vector<16x128xf32>
    %466 = arith.negf %465 : vector<16x128xf32>
    %467 = math.exp %466 : vector<16x128xf32>
    %cst_92 = arith.constant 1.000000e+00 : f32
    %468 = vector.broadcast %cst_92 : f32 to vector<16x128xf32>
    %469 = arith.addf %468, %467 : vector<16x128xf32>
    %470 = arith.divf %468, %469 : vector<16x128xf32>
    %471 = vector.extract_strided_slice %451 {offsets = [0, 256], sizes = [16, 128], strides = [1, 1]} : vector<16x384xf32> to vector<16x128xf32>
    %472 = vector.extract_strided_slice %454 {offsets = [0, 256], sizes = [16, 128], strides = [1, 1]} : vector<16x384xf32> to vector<16x128xf32>
    %473 = arith.mulf %462, %472 : vector<16x128xf32>
    %474 = arith.addf %471, %473 : vector<16x128xf32>
    %475 = math.tanh %474 : vector<16x128xf32>
    %cst_93 = arith.constant 1.000000e+00 : f32
    %476 = vector.broadcast %cst_93 : f32 to vector<16x128xf32>
    %477 = arith.subf %476, %470 : vector<16x128xf32>
    %478 = arith.mulf %477, %475 : vector<16x128xf32>
    %479 = arith.mulf %470, %411 : vector<16x128xf32>
    %480 = arith.addf %478, %479 : vector<16x128xf32>
    %481 = vector.broadcast %c5_i32 : i32 to vector<16x1xi32>
    %482 = arith.cmpi sgt, %7, %481 : vector<16x1xi32>
    %483 = vector.shape_cast %482 : vector<16x1xi1> to vector<16x1xi1>
    %484 = vector.broadcast %483 : vector<16x1xi1> to vector<16x128xi1>
    %485 = arith.select %484, %450, %406 : vector<16x128xi1>, vector<16x128xf32>
    %486 = vector.broadcast %412 : i32 to vector<16x1xi32>
    %487 = arith.cmpi sgt, %7, %486 : vector<16x1xi32>
    %488 = vector.shape_cast %487 : vector<16x1xi1> to vector<16x1xi1>
    %489 = vector.broadcast %488 : vector<16x1xi1> to vector<16x128xi1>
    %490 = arith.select %489, %480, %411 : vector<16x128xi1>, vector<16x128xf32>
    %c6_i32 = arith.constant 6 : i32
    %c7_i32_94 = arith.constant 7 : i32
    %491 = arith.subi %c7_i32_94, %c6_i32 : i32
    %c16_i32_95 = arith.constant 16 : i32
    %492 = arith.muli %c6_i32, %c16_i32_95 : i32
    %493 = tpu.assume_multiple %492, 16 : i32
    %494 = arith.index_cast %493 : i32 to index
    %c0_96 = arith.constant 0 : index
    %495 = vector.load %arg11[%494, %c0_96] : memref<128x768xf32, #tpu.memory_space<vmem>>, vector<16x768xf32>
    %c16_i32_97 = arith.constant 16 : i32
    %496 = arith.muli %491, %c16_i32_97 : i32
    %497 = tpu.assume_multiple %496, 16 : i32
    %498 = arith.index_cast %497 : i32 to index
    %c0_98 = arith.constant 0 : index
    %499 = vector.load %arg11[%498, %c0_98] : memref<128x768xf32, #tpu.memory_space<vmem>>, vector<16x768xf32>
    %500 = vector.extract_strided_slice %495 {offsets = [0, 0], sizes = [16, 384], strides = [1, 1]} : vector<16x768xf32> to vector<16x384xf32>
    %501 = arith.truncf %485 : vector<16x128xf32> to vector<16x128xbf16>
    %cst_99 = arith.constant dense<0.000000e+00> : vector<16x384xf32>
    %502 = tpu.matmul %501, %8, %cst_99 {dimension_numbers = #tpu.dot_dimension_numbers<[1], [0], [0], [1], [0, 0, 1, 1], [], []>} : vector<16x128xbf16>, vector<128x384xbf16>, vector<16x384xf32> -> vector<16x384xf32>
    %503 = arith.addf %502, %12 : vector<16x384xf32>
    %504 = vector.extract_strided_slice %500 {offsets = [0, 0], sizes = [16, 128], strides = [1, 1]} : vector<16x384xf32> to vector<16x128xf32>
    %505 = vector.extract_strided_slice %503 {offsets = [0, 0], sizes = [16, 128], strides = [1, 1]} : vector<16x384xf32> to vector<16x128xf32>
    %506 = arith.addf %504, %505 : vector<16x128xf32>
    %507 = arith.negf %506 : vector<16x128xf32>
    %508 = math.exp %507 : vector<16x128xf32>
    %cst_100 = arith.constant 1.000000e+00 : f32
    %509 = vector.broadcast %cst_100 : f32 to vector<16x128xf32>
    %510 = arith.addf %509, %508 : vector<16x128xf32>
    %511 = arith.divf %509, %510 : vector<16x128xf32>
    %512 = vector.extract_strided_slice %500 {offsets = [0, 128], sizes = [16, 128], strides = [1, 1]} : vector<16x384xf32> to vector<16x128xf32>
    %513 = vector.extract_strided_slice %503 {offsets = [0, 128], sizes = [16, 128], strides = [1, 1]} : vector<16x384xf32> to vector<16x128xf32>
    %514 = arith.addf %512, %513 : vector<16x128xf32>
    %515 = arith.negf %514 : vector<16x128xf32>
    %516 = math.exp %515 : vector<16x128xf32>
    %cst_101 = arith.constant 1.000000e+00 : f32
    %517 = vector.broadcast %cst_101 : f32 to vector<16x128xf32>
    %518 = arith.addf %517, %516 : vector<16x128xf32>
    %519 = arith.divf %517, %518 : vector<16x128xf32>
    %520 = vector.extract_strided_slice %500 {offsets = [0, 256], sizes = [16, 128], strides = [1, 1]} : vector<16x384xf32> to vector<16x128xf32>
    %521 = vector.extract_strided_slice %503 {offsets = [0, 256], sizes = [16, 128], strides = [1, 1]} : vector<16x384xf32> to vector<16x128xf32>
    %522 = arith.mulf %511, %521 : vector<16x128xf32>
    %523 = arith.addf %520, %522 : vector<16x128xf32>
    %524 = math.tanh %523 : vector<16x128xf32>
    %cst_102 = arith.constant 1.000000e+00 : f32
    %525 = vector.broadcast %cst_102 : f32 to vector<16x128xf32>
    %526 = arith.subf %525, %519 : vector<16x128xf32>
    %527 = arith.mulf %526, %524 : vector<16x128xf32>
    %528 = arith.mulf %519, %485 : vector<16x128xf32>
    %529 = arith.addf %527, %528 : vector<16x128xf32>
    %530 = vector.extract_strided_slice %499 {offsets = [0, 384], sizes = [16, 384], strides = [1, 1]} : vector<16x768xf32> to vector<16x384xf32>
    %531 = arith.truncf %490 : vector<16x128xf32> to vector<16x128xbf16>
    %cst_103 = arith.constant dense<0.000000e+00> : vector<16x384xf32>
    %532 = tpu.matmul %531, %9, %cst_103 {dimension_numbers = #tpu.dot_dimension_numbers<[1], [0], [0], [1], [0, 0, 1, 1], [], []>} : vector<16x128xbf16>, vector<128x384xbf16>, vector<16x384xf32> -> vector<16x384xf32>
    %533 = arith.addf %532, %15 : vector<16x384xf32>
    %534 = vector.extract_strided_slice %530 {offsets = [0, 0], sizes = [16, 128], strides = [1, 1]} : vector<16x384xf32> to vector<16x128xf32>
    %535 = vector.extract_strided_slice %533 {offsets = [0, 0], sizes = [16, 128], strides = [1, 1]} : vector<16x384xf32> to vector<16x128xf32>
    %536 = arith.addf %534, %535 : vector<16x128xf32>
    %537 = arith.negf %536 : vector<16x128xf32>
    %538 = math.exp %537 : vector<16x128xf32>
    %cst_104 = arith.constant 1.000000e+00 : f32
    %539 = vector.broadcast %cst_104 : f32 to vector<16x128xf32>
    %540 = arith.addf %539, %538 : vector<16x128xf32>
    %541 = arith.divf %539, %540 : vector<16x128xf32>
    %542 = vector.extract_strided_slice %530 {offsets = [0, 128], sizes = [16, 128], strides = [1, 1]} : vector<16x384xf32> to vector<16x128xf32>
    %543 = vector.extract_strided_slice %533 {offsets = [0, 128], sizes = [16, 128], strides = [1, 1]} : vector<16x384xf32> to vector<16x128xf32>
    %544 = arith.addf %542, %543 : vector<16x128xf32>
    %545 = arith.negf %544 : vector<16x128xf32>
    %546 = math.exp %545 : vector<16x128xf32>
    %cst_105 = arith.constant 1.000000e+00 : f32
    %547 = vector.broadcast %cst_105 : f32 to vector<16x128xf32>
    %548 = arith.addf %547, %546 : vector<16x128xf32>
    %549 = arith.divf %547, %548 : vector<16x128xf32>
    %550 = vector.extract_strided_slice %530 {offsets = [0, 256], sizes = [16, 128], strides = [1, 1]} : vector<16x384xf32> to vector<16x128xf32>
    %551 = vector.extract_strided_slice %533 {offsets = [0, 256], sizes = [16, 128], strides = [1, 1]} : vector<16x384xf32> to vector<16x128xf32>
    %552 = arith.mulf %541, %551 : vector<16x128xf32>
    %553 = arith.addf %550, %552 : vector<16x128xf32>
    %554 = math.tanh %553 : vector<16x128xf32>
    %cst_106 = arith.constant 1.000000e+00 : f32
    %555 = vector.broadcast %cst_106 : f32 to vector<16x128xf32>
    %556 = arith.subf %555, %549 : vector<16x128xf32>
    %557 = arith.mulf %556, %554 : vector<16x128xf32>
    %558 = arith.mulf %549, %490 : vector<16x128xf32>
    %559 = arith.addf %557, %558 : vector<16x128xf32>
    %560 = vector.broadcast %c6_i32 : i32 to vector<16x1xi32>
    %561 = arith.cmpi sgt, %7, %560 : vector<16x1xi32>
    %562 = vector.shape_cast %561 : vector<16x1xi1> to vector<16x1xi1>
    %563 = vector.broadcast %562 : vector<16x1xi1> to vector<16x128xi1>
    %564 = arith.select %563, %529, %485 : vector<16x128xi1>, vector<16x128xf32>
    %565 = vector.broadcast %491 : i32 to vector<16x1xi32>
    %566 = arith.cmpi sgt, %7, %565 : vector<16x1xi32>
    %567 = vector.shape_cast %566 : vector<16x1xi1> to vector<16x1xi1>
    %568 = vector.broadcast %567 : vector<16x1xi1> to vector<16x128xi1>
    %569 = arith.select %568, %559, %490 : vector<16x128xi1>, vector<16x128xf32>
    %c7_i32_107 = arith.constant 7 : i32
    %c7_i32_108 = arith.constant 7 : i32
    %570 = arith.subi %c7_i32_108, %c7_i32_107 : i32
    %c16_i32_109 = arith.constant 16 : i32
    %571 = arith.muli %c7_i32_107, %c16_i32_109 : i32
    %572 = tpu.assume_multiple %571, 16 : i32
    %573 = arith.index_cast %572 : i32 to index
    %c0_110 = arith.constant 0 : index
    %574 = vector.load %arg11[%573, %c0_110] : memref<128x768xf32, #tpu.memory_space<vmem>>, vector<16x768xf32>
    %c16_i32_111 = arith.constant 16 : i32
    %575 = arith.muli %570, %c16_i32_111 : i32
    %576 = tpu.assume_multiple %575, 16 : i32
    %577 = arith.index_cast %576 : i32 to index
    %c0_112 = arith.constant 0 : index
    %578 = vector.load %arg11[%577, %c0_112] : memref<128x768xf32, #tpu.memory_space<vmem>>, vector<16x768xf32>
    %579 = vector.extract_strided_slice %574 {offsets = [0, 0], sizes = [16, 384], strides = [1, 1]} : vector<16x768xf32> to vector<16x384xf32>
    %580 = arith.truncf %564 : vector<16x128xf32> to vector<16x128xbf16>
    %cst_113 = arith.constant dense<0.000000e+00> : vector<16x384xf32>
    %581 = tpu.matmul %580, %8, %cst_113 {dimension_numbers = #tpu.dot_dimension_numbers<[1], [0], [0], [1], [0, 0, 1, 1], [], []>} : vector<16x128xbf16>, vector<128x384xbf16>, vector<16x384xf32> -> vector<16x384xf32>
    %582 = arith.addf %581, %12 : vector<16x384xf32>
    %583 = vector.extract_strided_slice %579 {offsets = [0, 0], sizes = [16, 128], strides = [1, 1]} : vector<16x384xf32> to vector<16x128xf32>
    %584 = vector.extract_strided_slice %582 {offsets = [0, 0], sizes = [16, 128], strides = [1, 1]} : vector<16x384xf32> to vector<16x128xf32>
    %585 = arith.addf %583, %584 : vector<16x128xf32>
    %586 = arith.negf %585 : vector<16x128xf32>
    %587 = math.exp %586 : vector<16x128xf32>
    %cst_114 = arith.constant 1.000000e+00 : f32
    %588 = vector.broadcast %cst_114 : f32 to vector<16x128xf32>
    %589 = arith.addf %588, %587 : vector<16x128xf32>
    %590 = arith.divf %588, %589 : vector<16x128xf32>
    %591 = vector.extract_strided_slice %579 {offsets = [0, 128], sizes = [16, 128], strides = [1, 1]} : vector<16x384xf32> to vector<16x128xf32>
    %592 = vector.extract_strided_slice %582 {offsets = [0, 128], sizes = [16, 128], strides = [1, 1]} : vector<16x384xf32> to vector<16x128xf32>
    %593 = arith.addf %591, %592 : vector<16x128xf32>
    %594 = arith.negf %593 : vector<16x128xf32>
    %595 = math.exp %594 : vector<16x128xf32>
    %cst_115 = arith.constant 1.000000e+00 : f32
    %596 = vector.broadcast %cst_115 : f32 to vector<16x128xf32>
    %597 = arith.addf %596, %595 : vector<16x128xf32>
    %598 = arith.divf %596, %597 : vector<16x128xf32>
    %599 = vector.extract_strided_slice %579 {offsets = [0, 256], sizes = [16, 128], strides = [1, 1]} : vector<16x384xf32> to vector<16x128xf32>
    %600 = vector.extract_strided_slice %582 {offsets = [0, 256], sizes = [16, 128], strides = [1, 1]} : vector<16x384xf32> to vector<16x128xf32>
    %601 = arith.mulf %590, %600 : vector<16x128xf32>
    %602 = arith.addf %599, %601 : vector<16x128xf32>
    %603 = math.tanh %602 : vector<16x128xf32>
    %cst_116 = arith.constant 1.000000e+00 : f32
    %604 = vector.broadcast %cst_116 : f32 to vector<16x128xf32>
    %605 = arith.subf %604, %598 : vector<16x128xf32>
    %606 = arith.mulf %605, %603 : vector<16x128xf32>
    %607 = arith.mulf %598, %564 : vector<16x128xf32>
    %608 = arith.addf %606, %607 : vector<16x128xf32>
    %609 = vector.extract_strided_slice %578 {offsets = [0, 384], sizes = [16, 384], strides = [1, 1]} : vector<16x768xf32> to vector<16x384xf32>
    %610 = arith.truncf %569 : vector<16x128xf32> to vector<16x128xbf16>
    %cst_117 = arith.constant dense<0.000000e+00> : vector<16x384xf32>
    %611 = tpu.matmul %610, %9, %cst_117 {dimension_numbers = #tpu.dot_dimension_numbers<[1], [0], [0], [1], [0, 0, 1, 1], [], []>} : vector<16x128xbf16>, vector<128x384xbf16>, vector<16x384xf32> -> vector<16x384xf32>
    %612 = arith.addf %611, %15 : vector<16x384xf32>
    %613 = vector.extract_strided_slice %609 {offsets = [0, 0], sizes = [16, 128], strides = [1, 1]} : vector<16x384xf32> to vector<16x128xf32>
    %614 = vector.extract_strided_slice %612 {offsets = [0, 0], sizes = [16, 128], strides = [1, 1]} : vector<16x384xf32> to vector<16x128xf32>
    %615 = arith.addf %613, %614 : vector<16x128xf32>
    %616 = arith.negf %615 : vector<16x128xf32>
    %617 = math.exp %616 : vector<16x128xf32>
    %cst_118 = arith.constant 1.000000e+00 : f32
    %618 = vector.broadcast %cst_118 : f32 to vector<16x128xf32>
    %619 = arith.addf %618, %617 : vector<16x128xf32>
    %620 = arith.divf %618, %619 : vector<16x128xf32>
    %621 = vector.extract_strided_slice %609 {offsets = [0, 128], sizes = [16, 128], strides = [1, 1]} : vector<16x384xf32> to vector<16x128xf32>
    %622 = vector.extract_strided_slice %612 {offsets = [0, 128], sizes = [16, 128], strides = [1, 1]} : vector<16x384xf32> to vector<16x128xf32>
    %623 = arith.addf %621, %622 : vector<16x128xf32>
    %624 = arith.negf %623 : vector<16x128xf32>
    %625 = math.exp %624 : vector<16x128xf32>
    %cst_119 = arith.constant 1.000000e+00 : f32
    %626 = vector.broadcast %cst_119 : f32 to vector<16x128xf32>
    %627 = arith.addf %626, %625 : vector<16x128xf32>
    %628 = arith.divf %626, %627 : vector<16x128xf32>
    %629 = vector.extract_strided_slice %609 {offsets = [0, 256], sizes = [16, 128], strides = [1, 1]} : vector<16x384xf32> to vector<16x128xf32>
    %630 = vector.extract_strided_slice %612 {offsets = [0, 256], sizes = [16, 128], strides = [1, 1]} : vector<16x384xf32> to vector<16x128xf32>
    %631 = arith.mulf %620, %630 : vector<16x128xf32>
    %632 = arith.addf %629, %631 : vector<16x128xf32>
    %633 = math.tanh %632 : vector<16x128xf32>
    %cst_120 = arith.constant 1.000000e+00 : f32
    %634 = vector.broadcast %cst_120 : f32 to vector<16x128xf32>
    %635 = arith.subf %634, %628 : vector<16x128xf32>
    %636 = arith.mulf %635, %633 : vector<16x128xf32>
    %637 = arith.mulf %628, %569 : vector<16x128xf32>
    %638 = arith.addf %636, %637 : vector<16x128xf32>
    %639 = vector.broadcast %c7_i32_107 : i32 to vector<16x1xi32>
    %640 = arith.cmpi sgt, %7, %639 : vector<16x1xi32>
    %641 = vector.shape_cast %640 : vector<16x1xi1> to vector<16x1xi1>
    %642 = vector.broadcast %641 : vector<16x1xi1> to vector<16x128xi1>
    %643 = arith.select %642, %608, %564 : vector<16x128xi1>, vector<16x128xf32>
    %644 = vector.broadcast %570 : i32 to vector<16x1xi32>
    %645 = arith.cmpi sgt, %7, %644 : vector<16x1xi32>
    %646 = vector.shape_cast %645 : vector<16x1xi1> to vector<16x1xi1>
    %647 = vector.broadcast %646 : vector<16x1xi1> to vector<16x128xi1>
    %648 = arith.select %647, %638, %569 : vector<16x128xi1>, vector<16x128xf32>
    %c8_i32 = arith.constant 8 : i32
    %649 = tpu.concatenate %643, %648 in 1 : vector<16x128xf32>, vector<16x128xf32> -> vector<16x256xf32>
    %650 = arith.truncf %649 : vector<16x256xf32> to vector<16x256xbf16>
    %c0_121 = arith.constant 0 : index
    %c0_122 = arith.constant 0 : index
    %651 = vector.load %arg8[%c0_121, %c0_122] : memref<256x128xbf16, #tpu.memory_space<vmem>>, vector<256x128xbf16>
    %cst_123 = arith.constant dense<0.000000e+00> : vector<16x128xf32>
    %652 = tpu.matmul %650, %651, %cst_123 {dimension_numbers = #tpu.dot_dimension_numbers<[1], [0], [0], [1], [0, 0, 1, 1], [], []>} : vector<16x256xbf16>, vector<256x128xbf16>, vector<16x128xf32> -> vector<16x128xf32>
    %c0_124 = arith.constant 0 : index
    %c0_125 = arith.constant 0 : index
    %653 = vector.load %arg9[%c0_124, %c0_125] : memref<1x128xf32, #tpu.memory_space<vmem>>, vector<1x128xf32>
    %654 = vector.broadcast %653 : vector<1x128xf32> to vector<16x128xf32>
    %655 = arith.addf %652, %654 : vector<16x128xf32>
    %c0_126 = arith.constant 0 : index
    %c0_127 = arith.constant 0 : index
    %656 = vector.load %arg10[%c0_126, %c0_127] : memref<16x128xf32, #tpu.memory_space<vmem>>, vector<16x128xf32>
    tpu.vector_store %arg10[%c0_126, %c0_127], %655 {strides = array<i32>} : memref<16x128xf32, #tpu.memory_space<vmem>>, vector<16x128xf32>,
    return
  }
}

</mosaic_0001>

<bundles_post_ra>
// kernel: tpu_custom_call.1
= control target key start
LH: loop header
LB: loop body
LE: loop exit
PB: predicated region body
PF: predicated region fallthrough
CT: control target
= control target key end

     0   :  { %15 = vsyncpa [#allocation4], 0  ;;  %s6780_s0 = inlined_call_operand.vmem [shape: s32[16,1], index: 0, kind: input, shape index: {}]   ;;  %s6781_s1 = inlined_call_operand.vmem [shape: bf16[128,16], index: 1, kind: input, shape index: {}]   ;;  %s6782_s2 = inlined_call_operand.vmem [shape: bf16[16,768], index: 2, kind: input, shape index: {}]   ;;  %s6783_s3 = inlined_call_operand.vmem [shape: f32[1,768], index: 3, kind: input, shape index: {}]   ;;  %s6784_s4 = inlined_call_operand.hbm [shape: bf16[128,384], index: 4, kind: input, shape index: {}]   ;;  %s6785_s5 = inlined_call_operand.vmem [shape: f32[1,384], index: 5, kind: input, shape index: {}]   ;;  %s6786_s6 = inlined_call_operand.hbm [shape: bf16[128,384], index: 6, kind: input, shape index: {}]   ;;  %s6787_s7 = inlined_call_operand.vmem [shape: f32[1,384], index: 7, kind: input, shape index: {}]   ;;  %s6788_s8 = inlined_call_operand.hbm [shape: bf16[256,128], index: 8, kind: input, shape index: {}]   ;;  %s6789_s9 = inlined_call_operand.vmem [shape: f32[1,128], index: 9, kind: input, shape index: {}]   ;;  %s6790_s10 = inlined_call_operand.hbm [shape: f32[16,128], index: 10, kind: output, shape index: {}]  }
   0x1   :  { %16 = vsyncpa [#allocation7], 0 }
   0x2   :  { %17 = vsyncpa [#allocation5], 0  ;;  %s4886_s13 = smov [#allocation6]   ;;  %s4887_s15 = smov [#allocation3]  }
   0x3   :  { %s45_s14 = sshll.u32 %s4886_s13, 4  ;;  %s31_s16 = sshll.u32 %s4887_s15, 4  ;;  %s46_s14 = int_to_ptr.vmem [resolvable:$true] %s45_s14  ;;  %s4954_s16 = int_to_ptr.vmem [resolvable:$true] %s31_s16 }
   0x4   :  { %s4792_s19 = scalar_lea.hbm %s6786_s6, 3072 }
   0x5   :  { %p4793_p0 = scmp.ne.s32.totalorder %s6786_s6, %s4792_s19  ;;  %p4796_p1 = scmp.lt.u32.totalorder %s4792_s19, %s6786_s6 }
   0x7   :  { %p4798_p2 = pnand %p4796_p1, %p4793_p0 }
   0x9   :  { %4801 = shalt.err (!%p4798_p2)
}
   0xa   :  { %s4802_s24 = scalar_lea.vmem %s46_s14, 3072  ;;  %p4807_p4 = scmp.lt.s32.totalorder %s46_s14, %s46_s14 }
   0xb   :  { %p4803_p3 = scmp.ne.s32.totalorder %s46_s14, %s4802_s24  ;;  %p4808_p5 = scmp.lt.s32.totalorder %s4802_s24, %s4802_s24 }
   0xd   :  { %p4809_p6 = por %p4808_p5, %p4807_p4 }
   0xf   :  { %p4810_p7 = pnand %p4809_p6, %p4803_p3 }
  0x11   :  { %4813 = shalt.err (!%p4810_p7)
}
  0x12   :  { %s4888_s25 = smov 192   ;;  %s4889_s26 = smov 12  }
  0x13   :  { %51 = dma.hbm_to_vmem [thread:$0]  %s6786_s6, 3072, %s46_s14, [#allocation7], %s4888_s25, %s4888_s25, %s4889_s26  }
  0x14   :  { %s4814_s11 = scalar_lea.hbm %s6784_s4, 3072 }
  0x15   :  { %p4815_p8 = scmp.ne.s32.totalorder %s6784_s4, %s4814_s11  ;;  %p4818_p9 = scmp.lt.u32.totalorder %s4814_s11, %s6784_s4 }
  0x17   :  { %p4820_p10 = pnand %p4818_p9, %p4815_p8 }
  0x19   :  { %4823 = shalt.err (!%p4820_p10)
}
  0x1a   :  { %s4824_s18 = scalar_lea.vmem %s4954_s16, 3072  ;;  %p4829_p12 = scmp.lt.s32.totalorder %s4954_s16, %s4954_s16 }
  0x1b   :  { %p4825_p11 = scmp.ne.s32.totalorder %s4954_s16, %s4824_s18  ;;  %p4830_p13 = scmp.lt.s32.totalorder %s4824_s18, %s4824_s18 }
  0x1d   :  { %p4831_p0 = por %p4830_p13, %p4829_p12 }
  0x1f   :  { %p4832_p1 = pnand %p4831_p0, %p4825_p11 }
  0x21   :  { %4835 = shalt.err (!%p4832_p1)
}
  0x22   :  { %37 = dma.hbm_to_vmem [thread:$0]  %s6784_s4, 3072, %s4954_s16, [#allocation4], %s4888_s25, %s4888_s25, %s4889_s26  }
  0x23   :  { %s4890_s19 = smov [#allocation8]   ;;  %s4836_s23 = scalar_lea.hbm %s6788_s8, 2048 }
  0x24   :  { %s59_s20 = sshll.u32 %s4890_s19, 4  ;;  %p4837_p2 = scmp.ne.s32.totalorder %s6788_s8, %s4836_s23  ;;  %s60_s20 = int_to_ptr.vmem [resolvable:$true] %s59_s20 }
  0x25   :  { %p4840_p3 = scmp.lt.u32.totalorder %s4836_s23, %s6788_s8 }
  0x27   :  { %p4842_p4 = pnand %p4840_p3, %p4837_p2 }
  0x29   :  { %4845 = shalt.err (!%p4842_p4)
}
  0x2a   :  { %s4846_s30 = scalar_lea.vmem %s60_s20, 2048  ;;  %p4851_p6 = scmp.lt.s32.totalorder %s60_s20, %s60_s20 }
  0x2b   :  { %p4847_p5 = scmp.ne.s32.totalorder %s60_s20, %s4846_s30  ;;  %p4852_p7 = scmp.lt.s32.totalorder %s4846_s30, %s4846_s30 }
  0x2d   :  { %p4853_p8 = por %p4852_p7, %p4851_p6 }
  0x2f   :  { %p4854_p9 = pnand %p4853_p8, %p4847_p5 }
  0x31   :  { %4857 = shalt.err (!%p4854_p9)
}
  0x32   :  { %s4891_s4 = smov 64   ;;  %s4892_s16 = smov 4  }
  0x33   :  { %65 = dma.hbm_to_vmem [thread:$0]  %s6788_s8, 2048, %s60_s20, [#allocation7], %s4891_s4, %s4891_s4, %s4892_s16  }
  0x34   :  { %4880 = dma.done.wait [#allocation4], 3072  }
  0x35   :  { %4881 = vsyncadd [#allocation4], 4294964224 }
  0x36   :  { %4882 = dma.done.wait [#allocation7], 5120  }
  0x37   :  { %4883 = vsyncadd [#allocation7], 4294962176  ;;  %v6791_v0 = vmov 0   ;;  %v4279_v1 = vld [vmem:[%s6782_s2 + $0x4] ss:$24 sps:$4 sm:$0xff]   ;;  %vm202_vm0 = vcmask 130048  }
  0x38   :  { %259 = vmatprep.mubr.bf16.mxu0 %v6791_v0  ;;  %319 = vmatprep.mubr.bf16.mxu1 %v6791_v0  ;;  %v4281_v2 = vld [vmem:[%s6782_s2] ss:$24 sps:$4 sm:$0xff]   ;;  %v5015_v4 = vld [vmem:[%s6781_s1 + $0x30] sm:$0xff]   ;;  %v4291_v8 = vld [vmem:[%s6782_s2 + $0xc] ss:$24 sps:$4 sm:$0xff]   ;;  %v6793_v11 = vmov 0.0  }
  0x39   :  { %4277 = vset.pattern.permute.xlu0 %v6791_v0  ;;  %4278 = vset.pattern.permute.xlu1 %v6791_v0  ;;  %v5010_v3 = vld [vmem:[%s6781_s1] sm:$0xff]   ;;  %v4284_v5 = vld [vmem:[%s6782_s2 + $0x10] ss:$24 sps:$4 sm:$0xff]   ;;  %v4286_v6 = vld [vmem:[%s6782_s2 + $0x14] ss:$24 sps:$4 sm:$0xff]   ;;  %vm4895_vm7 = vmmov 0  }
  0x3a   :  { %227 = vmatprep.subr.bf16.mxu0 %v4279_v1  ;;  %4166 = vmatprep.subr.bf16.mxu1 %v4279_v1  ;;  %v4289_v7 = vld [vmem:[%s6782_s2 + $0x8] ss:$24 sps:$4 sm:$0xff]   ;;  %v5043_v10 = vld [vmem:[%s6781_s1 + $0x38] sm:$0xff]   ;;  %v5058_v13 = vld [vmem:[%s6781_s1 + $0x10] sm:$0xff]   ;;  %s4896_s21 = smov [#allocation9]  }
  0x3b   :  { %228 = vmatpush1.bf16.msra.mxu0 %v4281_v2  ;;  %4167 = vmatpush1.bf16.msra.mxu1 %v4281_v2  ;;  %v5038_v9 = vld [vmem:[%s6781_s1 + $0x8] sm:$0xff]   ;;  %v5046_v12 = vld [vmem:[#allocation3 + $0x4] ss:$12 sps:$4 sm:$0xff]   ;;  %v5060_v14 = vld [vmem:[#allocation3 + $0x8] ss:$12 sps:$4 sm:$0xff]   ;;  %s3481_s22 = sshll.u32 %s4896_s21, 4  ;;  %s3482_s22 = int_to_ptr.vmem [resolvable:$true] %s3481_s22 }
  0x3c   :  { %453 = vmatprep.subr.bf16.mxu0 %v4286_v6  ;;  %340 = vmatprep.subr.bf16.mxu1 %v4291_v8  ;;  %v5069_v15 = vld [vmem:[#allocation3 + $0x20] ss:$12 sps:$4 sm:$0xff]   ;;  %v5078_v17 = vld [vmem:[#allocation3 + $0x38] ss:$12 sps:$4 sm:$0xff]   ;;  %v5088_v18 = vld [vmem:[#allocation3 + $0x50] ss:$12 sps:$4 sm:$0xff]   ;;  %p4863_p11 = scmp.lt.s32.totalorder %s3482_s22, %s3482_s22 }
  0x3d   :  { %v5075_v16 = vld [vmem:[%s6781_s1 + $0x18] sm:$0xff]   ;;  %v5094_v19 = vld [vmem:[%s6781_s1 + $0x20] sm:$0xff]   ;;  %v5113_v22 = vld [vmem:[%s6781_s1 + $0x28] sm:$0xff]   ;;  %s4858_s23 = scalar_lea.vmem %s3482_s22, 256 }
  0x3e   :  { %3515 = vmatmul.mubr.msk.bf16.vlgmr.msra.gmra.mrb[0].mxu0 %vm202_vm0, %v5010_v3  ;;  %3521 = vmatmul.mubr.msk.bf16.vlgmr.msra.gmra.mrb[0].mxu1 %vm202_vm0, %v5015_v4  ;;  %v5097_v20 = vld [vmem:[#allocation3 + $0x68] ss:$12 sps:$4 sm:$0xff]   ;;  %v5107_v21 = vld [vmem:[#allocation3 + $0x80] ss:$12 sps:$4 sm:$0xff]   ;;  %v5116_v23 = vld [vmem:[#allocation3 + $0x98] ss:$12 sps:$4 sm:$0xff]   ;;  %p4859_p10 = scmp.ne.s32.totalorder %s3482_s22, %s4858_s23  ;;  %p4864_p12 = scmp.lt.s32.totalorder %s4858_s23, %s4858_s23 }
  0x3f   :  { %269 = vmatprep.mubr.bf16.mxu0 %v6791_v0  ;;  %454 = vmatpush1.bf16.msra.mxu0 %v4284_v5  ;;  %v5126_v24 = vld [vmem:[#allocation3 + $0xb0] ss:$12 sps:$4 sm:$0xff]   ;;  %v5141_v28 = vld [vmem:[#allocation3] ss:$12 sps:$4 sm:$0xff]   ;;  %v5152_v32 = vld [vmem:[#allocation3 + $0x18] ss:$12 sps:$4 sm:$0xff]  }
  0x40   :  { %329 = vmatprep.mubr.bf16.mxu1 %v6791_v0  ;;  %341 = vmatpush1.bf16.msra.mxu1 %v4289_v7  ;;  %v5129_v25 = vld [vmem:[#allocation6 + $0x4] ss:$12 sps:$4 sm:$0xff]   ;;  %v5139_v27 = vld [vmem:[%s6780_s0 + $0x8] sm:$0xff]  ;;  %v5161_v35 = vld [vmem:[#allocation3 + $0x34] ss:$12 sps:$4 sm:$0xff]   ;;  %p4865_p13 = por %p4864_p12, %p4863_p11 }
  0x41   :  { %3846 = vmatprep.subr.bf16.mxu1 %v6793_v11  ;;  %920 = vmatprep.subr.bf16.mxu0 %v5046_v12  ;;  %v5134_v26 = vld [vmem:[%s6780_s0] sm:$0xff]  ;;  %vm1301_vm2 = vcmp.gt.s32.totalorder %v5139_v27, 0  ;;  %v5147_v29 = vld [vmem:[#allocation3 + $0x1c] ss:$12 sps:$4 sm:$0xff]   ;;  %v5170_v37 = vld [vmem:[#allocation3 + $0x4c] ss:$12 sps:$4 sm:$0xff]  }
  0x42   :  { %vm1300_vm1 = vcmp.gt.s32.totalorder %v5134_v26, 0  ;;  %vm1612_vm3 = vcmp.gt.s32.totalorder %v5134_v26, 1  ;;  %vm1626_vm4 = vcmp.gt.s32.totalorder %v5134_v26, 6  ;;  %v1303_v31 = vsel %vm1301_vm2, 1, %v6791_v0  ;;  %v5167_v36 = vld [vmem:[#allocation3 + $0x30] ss:$12 sps:$4 sm:$0xff]   ;;  %p4866_p0 = pnand %p4865_p13, %p4859_p10 }
  0x43   :  { %v1302_v30 = vsel %vm1300_vm1, 1, %v6791_v0  ;;  %v1614_v33 = vsel %vm1612_vm3, 1, %v6791_v0  ;;  %v1628_v34 = vsel %vm1626_vm4, 1, %v6791_v0  ;;  %vm1924_vm5 = vcmp.gt.s32.totalorder %v5134_v26, 2  ;;  %v5181_v38 = vld [vmem:[#allocation3 + $0x48] ss:$12 sps:$4 sm:$0xff]  }
  0x44   :  { %1305 = vperm.xlu0 %4277, %v1302_v30   ;;  %v5184_v39 = vld [vmem:[#allocation3 + $0x64] ss:$12 sps:$4 sm:$0xff]   ;;  %v1926_v40 = vsel %vm1924_vm5, 1, %v6791_v0  ;;  %vm1938_vm6 = vcmp.gt.s32.totalorder %v5134_v26, 5  ;;  %v5189_v41 = vld [vmem:[#allocation3 + $0x60] ss:$12 sps:$4 sm:$0xff]  }
  0x45   :  { %6885 = vst [vmem:[#allocation13_spill] sm:$0xff] %v5184_v39  ;;  %6886 = vst [vmem:[#allocation14_spill] sm:$0xff] %v5189_v41  ;;  %v5192_v42 = vld [vmem:[#allocation3 + $0x7c] ss:$12 sps:$4 sm:$0xff]   ;;  %v1940_v43 = vsel %vm1938_vm6, 1, %v6791_v0  ;;  %vm2236_vm8 = vcmp.gt.s32.totalorder %v5134_v26, 3 }
  0x46   :  { %3516 = vmatmul.mubr.msk.bf16.gmra.mrb[4].mxu0 %vm202_vm0, %v5038_v9  ;;  %3522 = vmatmul.mubr.msk.bf16.gmra.mrb[4].mxu1 %vm202_vm0, %v5043_v10  ;;  %6887 = vst [vmem:[#allocation15_spill] sm:$0xff] %v5192_v42  ;;  %v5202_v44 = vld [vmem:[#allocation3 + $0x78] ss:$12 sps:$4 sm:$0xff]   ;;  %v5205_v45 = vld [vmem:[#allocation3 + $0x94] ss:$12 sps:$4 sm:$0xff]   ;;  %v2238_v55 = vsel %vm2236_vm8, 1, %v6791_v0 }
  0x47   :  { %279 = vmatprep.mubr.bf16.mxu0 %v6791_v0  ;;  %372 = vmatprep.mubr.bf16.mxu1 %v6791_v0  ;;  %6888 = vst [vmem:[#allocation16_spill] sm:$0xff] %v5202_v44  ;;  %6889 = vst [vmem:[#allocation17_spill] sm:$0xff] %v5205_v45  ;;  %v5208_v46 = vld [vmem:[#allocation3 + $0x90] ss:$12 sps:$4 sm:$0xff]   ;;  %v5211_v47 = vld [vmem:[#allocation3 + $0xac] ss:$12 sps:$4 sm:$0xff]  }
  0x48   :  { %1308 = vperm.xlu0 %4277, %v1303_v31   ;;  %6890 = vst [vmem:[#allocation18_spill] sm:$0xff] %v5208_v46  ;;  %6891 = vst [vmem:[#allocation19_spill] sm:$0xff] %v5211_v47  ;;  %v5221_v48 = vld [vmem:[#allocation3 + $0xa8] ss:$12 sps:$4 sm:$0xff]   ;;  %v5224_v49 = vld [vmem:[#allocation6] ss:$12 sps:$4 sm:$0xff]  }
  0x49   :  { %6892 = vst [vmem:[#allocation20_spill] sm:$0xff] %v5221_v48  ;;  %v5226_v50 = vld [vmem:[#allocation6 + $0x1c] ss:$12 sps:$4 sm:$0xff]   ;;  %v5234_v51 = vld [vmem:[#allocation6 + $0x18] ss:$12 sps:$4 sm:$0xff]   ;;  %vm2250_vm9 = vcmp.gt.s32.totalorder %v5134_v26, 4 }
  0x4a   :  { %v5238_v52 = vld [vmem:[#allocation6 + $0x34] ss:$12 sps:$4 sm:$0xff]   ;;  %v5242_v53 = vld [vmem:[#allocation6 + $0x30] ss:$12 sps:$4 sm:$0xff]   ;;  %v5245_v54 = vld [vmem:[#allocation6 + $0x4c] ss:$12 sps:$4 sm:$0xff]  }
  0x4b   :  { %v5253_v56 = vld [vmem:[#allocation6 + $0x48] ss:$12 sps:$4 sm:$0xff]   ;;  %v2252_v57 = vsel %vm2250_vm9, 1, %v6791_v0  ;;  %v5258_v58 = vld [vmem:[#allocation6 + $0x64] ss:$12 sps:$4 sm:$0xff]   ;;  %vm1314_vm10 = vcmp.gt.s32.totalorder %v5134_v26, 7 }
  0x4c   :  { %1617 = vperm.xlu0 %4277, %v1614_v33   ;;  %v5261_v59 = vld [vmem:[#allocation6 + $0x60] ss:$12 sps:$4 sm:$0xff]   ;;  %v5265_v60 = vld [vmem:[#allocation6 + $0x7c] ss:$12 sps:$4 sm:$0xff]   ;;  %v1316_v61 = vsel %vm1314_vm10, 1, %v6791_v0  ;;  %vm1315_vm11 = vcmp.gt.s32.totalorder %v5139_v27, 7 }
  0x4d   :  { %1319 = vperm.xlu1 %4278, %v1316_v61   ;;  %v1317_v62 = vsel %vm1315_vm11, 1, %v6791_v0  ;;  %v5273_v63 = vld [vmem:[#allocation6 + $0x78] ss:$12 sps:$4 sm:$0xff]   ;;  %v5277_v1 = vld [vmem:[#allocation6 + $0x94] ss:$12 sps:$4 sm:$0xff]   ;;  %vm1613_vm12 = vcmp.gt.s32.totalorder %v5139_v27, 1 }
  0x4e   :  { %3517 = vmatmul.mubr.msk.bf16.gmra.mrb[8].mxu0 %vm202_vm0, %v5058_v13  ;;  %3523 = vmatmul.mubr.msk.bf16.vlgmr.msra.gmra.mrb[8].mxu1 %vm202_vm0, %v5010_v3  ;;  %v5280_v2 = vld [vmem:[#allocation6 + $0x90] ss:$12 sps:$4 sm:$0xff]   ;;  %vm1627_vm13 = vcmp.gt.s32.totalorder %v5139_v27, 6  ;;  %v5292_v6 = vld [vmem:[#allocation6 + $0xa8] ss:$12 sps:$4 sm:$0xff]   ;;  %vm1925_vm14 = vcmp.gt.s32.totalorder %v5139_v27, 2 }
  0x4f   :  { %289 = vmatprep.mubr.bf16.mxu0 %v6791_v0  ;;  %382 = vmatprep.mubr.bf16.mxu1 %v6791_v0  ;;  %v1629_v5 = vsel %vm1627_vm13, 1, %v6791_v0  ;;  %v5297_v7 = vld [vmem:[#allocation6 + $0x8] ss:$12 sps:$4 sm:$0xff]   ;;  %v5303_v8 = vld [vmem:[#allocation6 + $0x20] ss:$12 sps:$4 sm:$0xff]   ;;  %vm1939_vm15 = vcmp.gt.s32.totalorder %v5139_v27, 5 }
  0x50   :  { %3847 = vmatpush3.bf16.msra.mxu1 %v5060_v14  ;;  %1631 = vperm.xlu0 %4277, %v1628_v34   ;;  %v5346_v26 = vld [vmem:[#allocation6 + $0xb0] ss:$12 sps:$4 sm:$0xff]   ;;  %vm2251_vm1 = vcmp.gt.s32.totalorder %v5139_v27, 4 }
  0x51   :  { %3848 = vmatprep.subr.bf16.mxu1 %v6793_v11  ;;  %1322 = vperm.xlu1 %4278, %v1317_v62   ;;  %v5400_v31 = vld [vmem:[%s6783_s3] sm:$0x3f] }
  0x54   :  { %3849 = vmatpush3.bf16.msra.mxu1 %v5069_v15  ;;  %1929 = vperm.xlu0 %4277, %v1926_v40  }
  0x55   :  { %3850 = vmatprep.subr.bf16.mxu1 %v6793_v11 }
  0x56   :  { %3518 = vmatmul.mubr.msk.bf16.gmra.mrb[12].mxu0 %vm202_vm0, %v5075_v16  ;;  %3524 = vmatmul.mubr.msk.bf16.gmra.mrb[12].mxu1 %vm202_vm0, %v5038_v9 }
  0x57   :  { %299 = vmatprep.mubr.bf16.mxu0 %v6791_v0  ;;  %392 = vmatprep.mubr.bf16.mxu1 %v6791_v0 }
  0x58   :  { %3851 = vmatpush3.bf16.msra.mxu1 %v5078_v17  ;;  %1943 = vperm.xlu0 %4277, %v1940_v43  }
  0x59   :  { %3852 = vmatprep.subr.bf16.mxu1 %v6793_v11 }
  0x5c   :  { %3853 = vmatpush3.bf16.msra.mxu1 %v5088_v18  ;;  %2241 = vperm.xlu0 %4277, %v2238_v55  }
  0x5d   :  { %3854 = vmatprep.subr.bf16.mxu1 %v6793_v11 }
  0x5e   :  { %3519 = vmatmul.mubr.msk.bf16.gmra.mrb[16].mxu0 %vm202_vm0, %v5094_v19  ;;  %3525 = vmatmul.mubr.msk.bf16.gmra.mrb[16].mxu1 %vm202_vm0, %v5058_v13 }
  0x5f   :  { %309 = vmatprep.mubr.bf16.mxu0 %v6791_v0  ;;  %402 = vmatprep.mubr.bf16.mxu1 %v6791_v0 }
  0x60   :  { %3855 = vmatpush3.bf16.msra.mxu1 %v5097_v20  ;;  %2255 = vperm.xlu0 %4277, %v2252_v57  }
  0x61   :  { %3856 = vmatprep.subr.bf16.mxu1 %v6793_v11 }
  0x64   :  { %3857 = vmatpush3.bf16.msra.mxu1 %v5107_v21 }
  0x65   :  { %3858 = vmatprep.subr.bf16.mxu1 %v6793_v11 }
  0x66   :  { %3520 = vmatmul.mubr.msk.bf16.gmra.mrb[20].mxu0 %vm202_vm0, %v5113_v22  ;;  %3526 = vmatmul.mubr.msk.bf16.gmra.mrb[20].mxu1 %vm202_vm0, %v5075_v16 }
  0x67   :  { %412 = vmatprep.mubr.bf16.mxu1 %v6791_v0  ;;  %485 = vmatprep.mubr.bf16.mxu0 %v6791_v0 }
  0x68   :  { %3859 = vmatpush3.bf16.msra.mxu1 %v5116_v23 }
  0x69   :  { %3860 = vmatprep.subr.bf16.mxu1 %v6793_v11 }
  0x6c   :  { %3861 = vmatpush3.bf16.msra.mxu1 %v5126_v24 }
  0x6d   :  { %1174 = vmatprep.subr.bf16.mxu1 %v5129_v25 }
  0x6e   :  { %3527 = vmatmul.mubr.msk.bf16.gmra.mrb[24].mxu1 %vm202_vm0, %v5094_v19  ;;  %3531 = vmatmul.mubr.msk.bf16.vlgmr.msra.gmra.mrb[24].mxu0 %vm202_vm0, %v5010_v3  ;;  %v5284_v3 = vld [vmem:[#allocation6 + $0xac] ss:$12 sps:$4 sm:$0xff]  }
  0x6f   :  { %921 = vmatpush1.bf16.msra.mxu0 %v5141_v28  ;;  %422 = vmatprep.mubr.bf16.mxu1 %v6791_v0 }
  0x70   :  { %495 = vmatprep.mubr.bf16.mxu0 %v6791_v0  ;;  %922 = vmatprep.subr.bf16.mxu0 %v5147_v29 }
  0x73   :  { %923 = vmatpush1.bf16.msra.mxu0 %v5152_v32 }
  0x74   :  { %924 = vmatprep.subr.bf16.mxu0 %v5161_v35 }
  0x76   :  { %3528 = vmatmul.mubr.msk.bf16.gmra.mrb[28].mxu1 %vm202_vm0, %v5113_v22  ;;  %3532 = vmatmul.mubr.msk.bf16.gmra.mrb[28].mxu0 %vm202_vm0, %v5038_v9  ;;  %v5312_v9 = vld [vmem:[#allocation6 + $0x38] ss:$12 sps:$4 sm:$0xff]  }
  0x77   :  { %432 = vmatprep.mubr.bf16.mxu1 %v6791_v0  ;;  %505 = vmatprep.mubr.bf16.mxu0 %v6791_v0 }
  0x78   :  { %925 = vmatpush1.bf16.msra.mxu0 %v5167_v36 }
  0x79   :  { %926 = vmatprep.subr.bf16.mxu0 %v5170_v37 }
  0x7c   :  { %927 = vmatpush1.bf16.msra.mxu0 %v5181_v38 }
  0x7d   :  { %928 = vmatprep.subr.bf16.mxu0 %v5184_v39 }
  0x7e   :  { %3529 = vmatmul.mubr.msk.bf16.gmra.mrb[32].mxu1 %vm202_vm0, %v5015_v4  ;;  %3533 = vmatmul.mubr.msk.bf16.gmra.mrb[32].mxu0 %vm202_vm0, %v5058_v13  ;;  %v5330_v13 = vld [vmem:[#allocation6 + $0x80] ss:$12 sps:$4 sm:$0xff]  }
  0x7f   :  { %442 = vmatprep.mubr.bf16.mxu1 %v6791_v0  ;;  %515 = vmatprep.mubr.bf16.mxu0 %v6791_v0 }
  0x80   :  { %929 = vmatpush1.bf16.msra.mxu0 %v5189_v41 }
  0x81   :  { %930 = vmatprep.subr.bf16.mxu0 %v5192_v42 }
  0x84   :  { %931 = vmatpush1.bf16.msra.mxu0 %v5202_v44 }
  0x85   :  { %932 = vmatprep.subr.bf16.mxu0 %v5205_v45 }
  0x86   :  { %3530 = vmatmul.mubr.msk.bf16.gmra.mrb[36].mxu1 %vm202_vm0, %v5043_v10  ;;  %3534 = vmatmul.mubr.msk.bf16.gmra.mrb[36].mxu0 %vm202_vm0, %v5075_v16  ;;  %v1927_v16 = vsel %vm1925_vm14, 1, %v6791_v0 }
  0x87   :  { %525 = vmatprep.mubr.bf16.mxu0 %v6791_v0  ;;  %3862 = vmatprep.mubr.msk.bf16.mxu1 %vm4895_vm7, %v6793_v11 }
  0x88   :  { %933 = vmatpush1.bf16.msra.mxu0 %v5208_v46 }
  0x89   :  { %934 = vmatprep.subr.bf16.mxu0 %v5211_v47 }
  0x8c   :  { %935 = vmatpush1.bf16.msra.mxu0 %v5221_v48 }
  0x8d   :  { %1359 = vmatprep.subr.bf16.mxu0 %v5046_v12  ;;  %v5324_v12 = vld [vmem:[#allocation6 + $0x68] ss:$12 sps:$4 sm:$0xff]  }
  0x8e   :  { %3535 = vmatmul.mubr.msk.bf16.gmra.mrb[40].mxu0 %vm202_vm0, %v5094_v19  ;;  %3863 = vmatmul.mubr.bf16.vlgmr.msra.gmra.mrb[40].mxu1 %v6791_v0  ;;  %v5338_v19 = vld [vmem:[#allocation6 + $0x98] ss:$12 sps:$4 sm:$0xff]  }
  0x8f   :  { %1175 = vmatpush1.bf16.msra.mxu1 %v5224_v49  ;;  %535 = vmatprep.mubr.bf16.mxu0 %v6791_v0 }
  0x90   :  { %1176 = vmatprep.subr.bf16.mxu1 %v5226_v50  ;;  %1206 = vmatprep.mubr.bf16.mxu1 %v6791_v0 }
  0x93   :  { %1177 = vmatpush1.bf16.msra.mxu1 %v5234_v51 }
  0x94   :  { %1178 = vmatprep.subr.bf16.mxu1 %v5238_v52 }
  0x96   :  { %3536 = vmatmul.mubr.msk.bf16.gmra.mrb[44].mxu0 %vm202_vm0, %v5113_v22  ;;  %v1941_v22 = vsel %vm1939_vm15, 1, %v6791_v0 }
  0x97   :  { %1179 = vmatpush1.bf16.msra.mxu1 %v5242_v53  ;;  %545 = vmatprep.mubr.bf16.mxu0 %v6791_v0 }
  0x98   :  { %1180 = vmatprep.subr.bf16.mxu1 %v5245_v54 }
  0x9b   :  { %1181 = vmatpush1.bf16.msra.mxu1 %v5253_v56 }
  0x9c   :  { %1182 = vmatprep.subr.bf16.mxu1 %v5258_v58 }
  0x9e   :  { %3537 = vmatmul.mubr.msk.bf16.gmra.mrb[48].mxu0 %vm202_vm0, %v5015_v4  ;;  %v1615_v4 = vsel %vm1613_vm12, 1, %v6791_v0 }
  0x9f   :  { %1183 = vmatpush1.bf16.msra.mxu1 %v5261_v59  ;;  %555 = vmatprep.mubr.bf16.mxu0 %v6791_v0 }
  0xa0   :  { %1184 = vmatprep.subr.bf16.mxu1 %v5265_v60  ;;  %1620 = vperm.xlu1 %4278, %v1615_v4  }
  0xa3   :  { %1185 = vmatpush1.bf16.msra.mxu1 %v5273_v63 }
  0xa4   :  { %1186 = vmatprep.subr.bf16.mxu1 %v5277_v1  ;;  %1634 = vperm.xlu1 %4278, %v1629_v5  }
  0xa6   :  { %3538 = vmatmul.mubr.msk.bf16.gmra.mrb[52].mxu0 %vm202_vm0, %v5043_v10  ;;  %v5318_v10 = vld [vmem:[#allocation6 + $0x50] ss:$12 sps:$4 sm:$0xff]   ;;  %vm2237_vm0 = vcmp.gt.s32.totalorder %v5139_v27, 3 }
  0xa7   :  { %1187 = vmatpush1.bf16.msra.mxu1 %v5280_v2  ;;  %952 = vmatprep.mubr.bf16.mxu0 %v6791_v0 }
  0xa8   :  { %1188 = vmatprep.subr.bf16.mxu1 %v5284_v3  ;;  %1932 = vperm.xlu1 %4278, %v1927_v16  }
  0xab   :  { %1189 = vmatpush1.bf16.msra.mxu1 %v5292_v6 }
  0xac   :  { %3866 = vmatprep.subr.bf16.mxu1 %v6793_v11  ;;  %1946 = vperm.xlu1 %4278, %v1941_v22  }
  0xae   :  { %1207 = vmatmul.mubr.bf16.vlgmr.msra.gmra.mrb[44].mxu1 %v6791_v0  ;;  %953 = vmatmul.mubr.bf16.vlgmr.msra.gmra.mrb[0].mxu0 %v6791_v0 }
  0xaf   :  { %3867 = vmatpush3.bf16.msra.mxu1 %v5297_v7  ;;  %3882 = vmatprep.mubr.msk.bf16.mxu1 %vm4895_vm7, %v6793_v11 }
  0xb0   :  { %3868 = vmatprep.subr.bf16.mxu1 %v6793_v11  ;;  %1360 = vmatpush1.bf16.msra.mxu0 %v5141_v28  ;;  %v2239_v28 = vsel %vm2237_vm0, 1, %v6791_v0 }
  0xb1   :  { %1361 = vmatprep.subr.bf16.mxu0 %v5147_v29  ;;  %1391 = vmatprep.mubr.bf16.mxu0 %v6791_v0  ;;  %v2253_v29 = vsel %vm2251_vm1, 1, %v6791_v0 }
  0xb2   :  { %2244 = vperm.xlu1 %4278, %v2239_v28  }
  0xb3   :  { %3869 = vmatpush3.bf16.msra.mxu1 %v5303_v8 }
  0xb4   :  { %3870 = vmatprep.subr.bf16.mxu1 %v6793_v11  ;;  %1362 = vmatpush1.bf16.msra.mxu0 %v5152_v32 }
  0xb5   :  { %1363 = vmatprep.subr.bf16.mxu0 %v5161_v35 }
  0xb6   :  { %2258 = vperm.xlu1 %4278, %v2253_v29  }
  0xb7   :  { %3871 = vmatpush3.bf16.msra.mxu1 %v5312_v9 }
  0xb8   :  { %3872 = vmatprep.subr.bf16.mxu1 %v6793_v11  ;;  %1364 = vmatpush1.bf16.msra.mxu0 %v5167_v36 }
  0xb9   :  { %1365 = vmatprep.subr.bf16.mxu0 %v5170_v37 }
  0xbb   :  { %3873 = vmatpush3.bf16.msra.mxu1 %v5318_v10 }
  0xbc   :  { %3874 = vmatprep.subr.bf16.mxu1 %v6793_v11  ;;  %1366 = vmatpush1.bf16.msra.mxu0 %v5181_v38 }
  0xbd   :  { %1367 = vmatprep.subr.bf16.mxu0 %v5184_v39 }
  0xbf   :  { %3875 = vmatpush3.bf16.msra.mxu1 %v5324_v12 }
  0xc0   :  { %3876 = vmatprep.subr.bf16.mxu1 %v6793_v11  ;;  %1368 = vmatpush1.bf16.msra.mxu0 %v5189_v41 }
  0xc1   :  { %1369 = vmatprep.subr.bf16.mxu0 %v5192_v42 }
  0xc3   :  { %3877 = vmatpush3.bf16.msra.mxu1 %v5330_v13 }
  0xc4   :  { %3878 = vmatprep.subr.bf16.mxu1 %v6793_v11  ;;  %1370 = vmatpush1.bf16.msra.mxu0 %v5202_v44 }
  0xc5   :  { %1371 = vmatprep.subr.bf16.mxu0 %v5205_v45 }
  0xc7   :  { %3879 = vmatpush3.bf16.msra.mxu1 %v5338_v19 }
  0xc8   :  { %3880 = vmatprep.subr.bf16.mxu1 %v6793_v11  ;;  %1372 = vmatpush1.bf16.msra.mxu0 %v5208_v46 }
  0xc9   :  { %1373 = vmatprep.subr.bf16.mxu0 %v5211_v47 }
  0xcb   :  { %3881 = vmatpush3.bf16.msra.mxu1 %v5346_v26 }
  0xcc   :  { %3886 = vmatprep.subr.bf16.mxu1 %v6793_v11  ;;  %1374 = vmatpush1.bf16.msra.mxu0 %v5221_v48 }
  0xcd   :  { %1486 = vmatprep.subr.bf16.mxu0 %v5129_v25 }
  0xce   :  { %3883 = vmatmul.mubr.bf16.vlgmr.msra.gmra.mrb[48].mxu1 %v6791_v0 }
  0xcf   :  { %3887 = vmatpush3.bf16.msra.mxu1 %v5060_v14  ;;  %3902 = vmatprep.mubr.msk.bf16.mxu1 %vm4895_vm7, %v6793_v11 }
  0xd0   :  { %3888 = vmatprep.subr.bf16.mxu1 %v6793_v11 }
  0xd3   :  { %3889 = vmatpush3.bf16.msra.mxu1 %v5069_v15 }
  0xd4   :  { %3890 = vmatprep.subr.bf16.mxu1 %v6793_v11 }
  0xd7   :  { %3891 = vmatpush3.bf16.msra.mxu1 %v5078_v17 }
  0xd8   :  { %3892 = vmatprep.subr.bf16.mxu1 %v6793_v11 }
  0xdb   :  { %3893 = vmatpush3.bf16.msra.mxu1 %v5088_v18 }
  0xdc   :  { %3894 = vmatprep.subr.bf16.mxu1 %v6793_v11 }
  0xdf   :  { %3895 = vmatpush3.bf16.msra.mxu1 %v5097_v20  ;;  %v102_v20 = vlaneseq }
  0xe0   :  { %3896 = vmatprep.subr.bf16.mxu1 %v6793_v11 }
  0xe3   :  { %3897 = vmatpush3.bf16.msra.mxu1 %v5107_v21  ;;  %v5386_v21 = vshrl.u32 %v102_v20, 7 }
  0xe4   :  { %3898 = vmatprep.subr.bf16.mxu1 %v6793_v11 }
  0xe5   :  { %v5413_v37 = vsub.s32 2, %v5386_v21 }
  0xe7   :  { %3899 = vmatpush3.bf16.msra.mxu1 %v5116_v23  ;;  %v5420_v55 = vrot.slane %v5400_v31, %v5413_v37 }
  0xe8   :  { %3900 = vmatprep.subr.bf16.mxu1 %v6793_v11 }
  0xeb   :  { %3901 = vmatpush3.bf16.msra.mxu1 %v5126_v24  ;;  %v116_v24 = vsub.s32 3, %v5386_v21 }
  0xec   :  { %3906 = vmatprep.subr.bf16.mxu1 %v6793_v11 }
  0xed   :  { %v5403_v32 = vrot.slane %v5400_v31, %v116_v24 }
 0x111   :  { %v5378_v14 = vpop.f32.mrb[0].mxu1 }
 0x112   :  { %6893 = vst [vmem:[#allocation21_spill] sm:$0xff] %v5378_v14  ;;  %v5380_v15 = vpop.f32.mrb[1].mxu1 }
 0x113   :  { %6894 = vst [vmem:[#allocation22_spill] sm:$0xff] %v5380_v15  ;;  %v5382_v17 = vpop.f32.mrb[2].mxu1 }
 0x114   :  { %6895 = vst [vmem:[#allocation23_spill] sm:$0xff] %v5382_v17  ;;  %v5384_v18 = vpop.f32.mrb[3].mxu1 }
 0x115   :  { %6896 = vst [vmem:[#allocation24_spill] sm:$0xff] %v5384_v18 }
 0x119   :  { %v5388_v25 = vpop.f32.mrb[4].mxu1 }
 0x11a   :  { %6897 = vst [vmem:[#allocation25_spill] sm:$0xff] %v5388_v25  ;;  %v5390_v23 = vpop.f32.mrb[5].mxu1 }
 0x11b   :  { %6898 = vst [vmem:[#allocation26_spill] sm:$0xff] %v5390_v23  ;;  %v5392_v27 = vpop.f32.mrb[6].mxu1 }
 0x11c   :  { %6899 = vst [vmem:[#allocation27_spill] sm:$0xff] %v5392_v27  ;;  %v5395_v30 = vpop.f32.mrb[7].mxu1 }
 0x11d   :  { %6900 = vst [vmem:[#allocation28_spill] sm:$0xff] %v5395_v30 }
 0x121   :  { %v5405_v33 = vpop.f32.mrb[8].mxu1 }
 0x122   :  { %v376_v34 = vpop.f32.mrb[9].mxu1 }
 0x123   :  { %v5408_v35 = vadd.f32 %v376_v34, %v5403_v32  ;;  %v5410_v36 = vpop.f32.mrb[10].mxu1 }
 0x124   :  { %v380_v40 = vpop.f32.mrb[11].mxu1 }
 0x125   :  { %6901 = vst [vmem:[#allocation29_spill] sm:$0xff] %v5408_v35  ;;  %v5416_v43 = vadd.f32 %v380_v40, %v5403_v32 }
 0x127   :  { %6902 = vst [vmem:[#allocation30_spill] sm:$0xff] %v5416_v43  ;;  %v124_v43 = vsub.s32 5, %v5386_v21 }
 0x129   :  { %v384_v57 = vpop.f32.mrb[12].mxu1 }
 0x12a   :  { %v5423_v61 = vadd.f32 %v384_v57, %v5420_v55  ;;  %v386_v62 = vpop.f32.mrb[13].mxu1 }
 0x12b   :  { %v5426_v4 = vadd.f32 %v386_v62, %v5403_v32  ;;  %v388_v5 = vpop.f32.mrb[14].mxu1 }
 0x12c   :  { %6903 = vst [vmem:[#allocation31_spill] sm:$0xff] %v5423_v61  ;;  %v5429_v16 = vadd.f32 %v388_v5, %v5420_v55  ;;  %v390_v22 = vpop.f32.mrb[15].mxu1 }
 0x12d   :  { %6904 = vst [vmem:[#allocation32_spill] sm:$0xff] %v5426_v4  ;;  %v5432_v28 = vadd.f32 %v390_v22, %v5403_v32  ;;  %v120_v22 = vsub.s32 4, %v5386_v21 }
 0x12e   :  { %6905 = vst [vmem:[#allocation33_spill] sm:$0xff] %v5429_v16 }
 0x12f   :  { %6906 = vst [vmem:[#allocation34_spill] sm:$0xff] %v5432_v28  ;;  %v5461_v27 = vrot.slane %v5400_v31, %v120_v22 }
 0x131   :  { %v394_v29 = vpop.f32.mrb[16].mxu1 }
 0x132   :  { %v5435_v20 = vadd.f32 %v394_v29, %v5420_v55  ;;  %v396_v24 = vpop.f32.mrb[17].mxu1 }
 0x133   :  { %v5438_v34 = vadd.f32 %v396_v24, %v5403_v32  ;;  %v398_v40 = vpop.f32.mrb[18].mxu1 }
 0x134   :  { %6907 = vst [vmem:[#allocation35_spill] sm:$0xff] %v5435_v20  ;;  %v5441_v57 = vadd.f32 %v398_v40, %v5420_v55  ;;  %v400_v62 = vpop.f32.mrb[19].mxu1 }
 0x135   :  { %6908 = vst [vmem:[#allocation36_spill] sm:$0xff] %v5438_v34  ;;  %v5444_v5 = vadd.f32 %v400_v62, %v5403_v32 }
 0x136   :  { %6909 = vst [vmem:[#allocation37_spill] sm:$0xff] %v5441_v57 }
 0x137   :  { %6910 = vst [vmem:[#allocation38_spill] sm:$0xff] %v5444_v5 }
 0x139   :  { %v404_v0 = vpop.f32.mrb[20].mxu1 }
 0x13a   :  { %v5448_v11 = vadd.f32 %v404_v0, %v5420_v55  ;;  %v406_v29 = vpop.f32.mrb[21].mxu1  ;;  %v5464_v0 = vrot.slane %v5400_v31, %v124_v43 }
 0x13b   :  { %v5452_v24 = vadd.f32 %v406_v29, %v5403_v32  ;;  %v408_v35 = vpop.f32.mrb[22].mxu1 }
 0x13c   :  { %6911 = vst [vmem:[#allocation39_spill] sm:$0xff] %v5448_v11  ;;  %v5455_v40 = vadd.f32 %v408_v35, %v5420_v55  ;;  %v410_v30 = vpop.f32.mrb[23].mxu1 }
 0x13d   :  { %6912 = vst [vmem:[#allocation40_spill] sm:$0xff] %v5452_v24  ;;  %v5458_v62 = vadd.f32 %v410_v30, %v5403_v32 }
 0x13e   :  { %6913 = vst [vmem:[#allocation41_spill] sm:$0xff] %v5455_v40 }
 0x13f   :  { %6914 = vst [vmem:[#allocation42_spill] sm:$0xff] %v5458_v62 }
 0x141   :  { %v487_v23 = vpop.f32.mrb[24].mxu0  ;;  %v414_v25 = vpop.f32.mrb[24].mxu1 }
 0x142   :  { %v5467_v28 = vadd.f32 %v487_v23, %v5461_v27  ;;  %v489_v29 = vpop.f32.mrb[25].mxu0  ;;  %v5470_v4 = vadd.f32 %v414_v25, %v5420_v55  ;;  %v416_v35 = vpop.f32.mrb[25].mxu1 }
 0x143   :  { %v5473_v18 = vadd.f32 %v489_v29, %v5464_v0  ;;  %v491_v30 = vpop.f32.mrb[26].mxu0  ;;  %v5476_v22 = vadd.f32 %v416_v35, %v5403_v32  ;;  %v418_v17 = vpop.f32.mrb[26].mxu1 }
 0x144   :  { %6915 = vst [vmem:[#allocation43_spill] sm:$0xff] %v5467_v28  ;;  %6916 = vst [vmem:[#allocation44_spill] sm:$0xff] %v5470_v4  ;;  %v5479_v43 = vadd.f32 %v491_v30, %v5461_v27  ;;  %v493_v15 = vpop.f32.mrb[27].mxu0  ;;  %v5482_v23 = vadd.f32 %v418_v17, %v5420_v55  ;;  %v420_v28 = vpop.f32.mrb[27].mxu1 }
 0x145   :  { %6917 = vst [vmem:[#allocation45_spill] sm:$0xff] %v5473_v18  ;;  %6918 = vst [vmem:[#allocation46_spill] sm:$0xff] %v5476_v22  ;;  %v5485_v25 = vadd.f32 %v493_v15, %v5464_v0  ;;  %v5488_v14 = vadd.f32 %v420_v28, %v5403_v32 }
 0x146   :  { %6919 = vst [vmem:[#allocation47_spill] sm:$0xff] %v5479_v43  ;;  %6920 = vst [vmem:[#allocation48_spill] sm:$0xff] %v5482_v23 }
 0x147   :  { %6921 = vst [vmem:[#allocation49_spill] sm:$0xff] %v5485_v25  ;;  %6922 = vst [vmem:[#allocation50_spill] sm:$0xff] %v5488_v14 }
 0x149   :  { %v497_v29 = vpop.f32.mrb[28].mxu0  ;;  %v424_v18 = vpop.f32.mrb[28].mxu1 }
 0x14a   :  { %v5491_v35 = vadd.f32 %v497_v29, %v5461_v27  ;;  %v499_v5 = vpop.f32.mrb[29].mxu0  ;;  %v5494_v30 = vadd.f32 %v424_v18, %v5420_v55  ;;  %v426_v43 = vpop.f32.mrb[29].mxu1 }
 0x14b   :  { %v5497_v17 = vadd.f32 %v499_v5, %v5464_v0  ;;  %v501_v34 = vpop.f32.mrb[30].mxu0  ;;  %v5500_v15 = vadd.f32 %v426_v43, %v5403_v32  ;;  %v428_v25 = vpop.f32.mrb[30].mxu1 }
 0x14c   :  { %6923 = vst [vmem:[#allocation51_spill] sm:$0xff] %v5491_v35  ;;  %6924 = vst [vmem:[#allocation52_spill] sm:$0xff] %v5494_v30  ;;  %v5503_v28 = vadd.f32 %v501_v34, %v5461_v27  ;;  %v503_v62 = vpop.f32.mrb[31].mxu0  ;;  %v5506_v29 = vadd.f32 %v428_v25, %v5420_v55  ;;  %v430_v35 = vpop.f32.mrb[31].mxu1 }
 0x14d   :  { %6925 = vst [vmem:[#allocation53_spill] sm:$0xff] %v5497_v17  ;;  %6926 = vst [vmem:[#allocation54_spill] sm:$0xff] %v5500_v15  ;;  %v5509_v18 = vadd.f32 %v503_v62, %v5464_v0  ;;  %v5512_v30 = vadd.f32 %v430_v35, %v5403_v32 }
 0x14e   :  { %6927 = vst [vmem:[#allocation55_spill] sm:$0xff] %v5503_v28  ;;  %6928 = vst [vmem:[#allocation56_spill] sm:$0xff] %v5506_v29 }
 0x14f   :  { %6929 = vst [vmem:[#allocation57_spill] sm:$0xff] %v5509_v18  ;;  %6930 = vst [vmem:[#allocation58_spill] sm:$0xff] %v5512_v30 }
 0x151   :  { %v507_v5 = vpop.f32.mrb[32].mxu0  ;;  %v434_v17 = vpop.f32.mrb[32].mxu1 }
 0x152   :  { %v5515_v43 = vadd.f32 %v507_v5, %v5461_v27  ;;  %v509_v24 = vpop.f32.mrb[33].mxu0  ;;  %v5518_v34 = vadd.f32 %v434_v17, %v5420_v55  ;;  %v436_v28 = vpop.f32.mrb[33].mxu1 }
 0x153   :  { %v5521_v25 = vadd.f32 %v509_v24, %v5464_v0  ;;  %v511_v29 = vpop.f32.mrb[34].mxu0  ;;  %v5524_v62 = vadd.f32 %v436_v28, %v5403_v32  ;;  %v438_v18 = vpop.f32.mrb[34].mxu1 }
 0x154   :  { %6931 = vst [vmem:[#allocation59_spill] sm:$0xff] %v5515_v43  ;;  %6932 = vst [vmem:[#allocation60_spill] sm:$0xff] %v5518_v34  ;;  %v5527_v35 = vadd.f32 %v511_v29, %v5461_v27  ;;  %v513_v23 = vpop.f32.mrb[35].mxu0  ;;  %v5530_v5 = vadd.f32 %v438_v18, %v5420_v55  ;;  %v440_v43 = vpop.f32.mrb[35].mxu1 }
 0x155   :  { %6933 = vst [vmem:[#allocation61_spill] sm:$0xff] %v5521_v25  ;;  %6934 = vst [vmem:[#allocation62_spill] sm:$0xff] %v5524_v62  ;;  %v5533_v17 = vadd.f32 %v513_v23, %v5464_v0  ;;  %v5536_v34 = vadd.f32 %v440_v43, %v5403_v32 }
 0x156   :  { %6935 = vst [vmem:[#allocation63_spill] sm:$0xff] %v5527_v35  ;;  %6936 = vst [vmem:[#allocation64_spill] sm:$0xff] %v5530_v5 }
 0x157   :  { %6937 = vst [vmem:[#allocation65_spill] sm:$0xff] %v5533_v17  ;;  %6938 = vst [vmem:[#allocation66_spill] sm:$0xff] %v5536_v34 }
 0x159   :  { %v517_v24 = vpop.f32.mrb[36].mxu0  ;;  %v444_v25 = vpop.f32.mrb[36].mxu1 }
 0x15a   :  { %v5539_v28 = vadd.f32 %v517_v24, %v5461_v27  ;;  %v519_v4 = vpop.f32.mrb[37].mxu0  ;;  %v5542_v29 = vadd.f32 %v444_v25, %v5420_v55  ;;  %v446_v35 = vpop.f32.mrb[37].mxu1 }
 0x15b   :  { %v5545_v18 = vadd.f32 %v519_v4, %v5464_v0  ;;  %v521_v5 = vpop.f32.mrb[38].mxu0  ;;  %v448_v14 = vpop.f32.mrb[38].mxu1  ;;  %v447_v62 = vadd.f32 %v446_v35, %v5403_v32 }
 0x15c   :  { %6939 = vst [vmem:[#allocation67_spill] sm:$0xff] %v5539_v28  ;;  %6940 = vst [vmem:[#allocation68_spill] sm:$0xff] %v5542_v29  ;;  %v5548_v23 = vadd.f32 %v521_v5, %v5461_v27  ;;  %v523_v43 = vpop.f32.mrb[39].mxu0  ;;  %v5551_v17 = vadd.f32 %v448_v14, %v5420_v55  ;;  %v450_v22 = vpop.f32.mrb[39].mxu1 }
 0x15d   :  { %6941 = vst [vmem:[#allocation69_spill] sm:$0xff] %v5545_v18  ;;  %v5554_v24 = vadd.f32 %v523_v43, %v5464_v0  ;;  %v451_v61 = vadd.f32 %v450_v22, %v5403_v32 }
 0x15e   :  { %6942 = vst [vmem:[#allocation70_spill] sm:$0xff] %v5548_v23  ;;  %6943 = vst [vmem:[#allocation71_spill] sm:$0xff] %v5551_v17 }
 0x15f   :  { %6944 = vst [vmem:[#allocation72_spill] sm:$0xff] %v5554_v24 }
 0x161   :  { %v527_v28 = vpop.f32.mrb[40].mxu0  ;;  %v5556_v25 = vpop.f32.mrb[40].mxu1 }
 0x162   :  { %v5559_v29 = vadd.f32 %v527_v28, %v5461_v27  ;;  %v529_v4 = vpop.f32.mrb[41].mxu0  ;;  %v3864_v18 = vpop.f32.mrb[41].mxu1 }
 0x163   :  { %v5562_v40 = vadd.f32 %v529_v4, %v5464_v0  ;;  %v531_v5 = vpop.f32.mrb[42].mxu0  ;;  %v5564_v23 = vpop.f32.mrb[42].mxu1 }
 0x164   :  { %6945 = vst [vmem:[#allocation73_spill] sm:$0xff] %v5559_v29  ;;  %v5567_v14 = vadd.f32 %v531_v5, %v5461_v27  ;;  %v533_v17 = vpop.f32.mrb[43].mxu0  ;;  %v3865_v43 = vpop.f32.mrb[43].mxu1 }
 0x165   :  { %6946 = vst [vmem:[#allocation74_spill] sm:$0xff] %v5562_v40  ;;  %v5570_v24 = vadd.f32 %v533_v17, %v5464_v0 }
 0x166   :  { %6947 = vst [vmem:[#allocation75_spill] sm:$0xff] %v5567_v14 }
 0x167   :  { %6948 = vst [vmem:[#allocation76_spill] sm:$0xff] %v5570_v24 }
 0x169   :  { %v537_v11 = vpop.f32.mrb[44].mxu0 }
 0x16a   :  { %v5573_v28 = vadd.f32 %v537_v11, %v5461_v27  ;;  %v539_v29 = vpop.f32.mrb[45].mxu0 }
 0x16b   :  { %v5576_v18 = vadd.f32 %v539_v29, %v5464_v0  ;;  %v541_v4 = vpop.f32.mrb[46].mxu0 }
 0x16c   :  { %6949 = vst [vmem:[#allocation77_spill] sm:$0xff] %v5573_v28  ;;  %v5579_v40 = vadd.f32 %v541_v4, %v5461_v27  ;;  %v543_v30 = vpop.f32.mrb[47].mxu0 }
 0x16d   :  { %6950 = vst [vmem:[#allocation78_spill] sm:$0xff] %v5576_v18  ;;  %v5582_v5 = vadd.f32 %v543_v30, %v5464_v0  ;;  %v5600_v30 = vld [vmem:[%s6785_s5] sm:$0x7] }
 0x16e   :  { %6951 = vst [vmem:[#allocation79_spill] sm:$0xff] %v5579_v40  ;;  %v104_v40 = vsub.s32 0, %v5386_v21 }
 0x16f   :  { %6952 = vst [vmem:[#allocation80_spill] sm:$0xff] %v5582_v5 }
 0x170   :  { %v5614_v15 = vrot.slane %v5600_v30, %v104_v40 }
 0x171   :  { %v547_v43 = vpop.f32.mrb[48].mxu0 }
 0x172   :  { %v5585_v17 = vadd.f32 %v547_v43, %v5461_v27  ;;  %v549_v24 = vpop.f32.mrb[49].mxu0  ;;  %6958 = vst [vmem:[#allocation86_spill] sm:$0xff] %v5614_v15 }
 0x173   :  { %v5588_v11 = vadd.f32 %v549_v24, %v5464_v0  ;;  %v551_v14 = vpop.f32.mrb[50].mxu0  ;;  %v5607_v24 = vld [vmem:[%s6787_s7] sm:$0x7] }
 0x174   :  { %6953 = vst [vmem:[#allocation81_spill] sm:$0xff] %v5585_v17  ;;  %v5591_v29 = vadd.f32 %v551_v14, %v5461_v27  ;;  %v553_v18 = vpop.f32.mrb[51].mxu0  ;;  %v108_v14 = vsub.s32 1, %v5386_v21  ;;  %v5619_v20 = vrot.slane %v5607_v24, %v104_v40 }
 0x175   :  { %6954 = vst [vmem:[#allocation82_spill] sm:$0xff] %v5588_v11  ;;  %v5594_v4 = vadd.f32 %v553_v18, %v5464_v0  ;;  %v5611_v18 = vrot.slane %v5400_v31, %v104_v40 }
 0x176   :  { %6955 = vst [vmem:[#allocation83_spill] sm:$0xff] %v5591_v29  ;;  %6959 = vst [vmem:[#allocation87_spill] sm:$0xff] %v5619_v20  ;;  %v5626_v11 = vrot.slane %v5400_v31, %v108_v14  ;;  %v5629_v21 = vrot.slane %v5600_v30, %v108_v14  ;;  %v5632_v29 = vrot.slane %v5607_v24, %v108_v14 }
 0x177   :  { %6956 = vst [vmem:[#allocation84_spill] sm:$0xff] %v5594_v4  ;;  %6957 = vst [vmem:[#allocation85_spill] sm:$0xff] %v5611_v18  ;;  %v5623_v4 = vadd.f32 %v5614_v15, %v5611_v18 }
 0x178   :  { %6961 = vst [vmem:[#allocation89_spill] sm:$0xff] %v5626_v11  ;;  %6962 = vst [vmem:[#allocation90_spill] sm:$0xff] %v5629_v21  ;;  %v5636_v34 = vadd.f32 %v5629_v21, %v5626_v11 }
 0x179   :  { %v557_v43 = vpop.f32.mrb[52].mxu0  ;;  %6960 = vst [vmem:[#allocation88_spill] sm:$0xff] %v5623_v4  ;;  %6963 = vst [vmem:[#allocation91_spill] sm:$0xff] %v5632_v29 }
 0x17a   :  { %v5602_v5 = vpop.f32.mrb[53].mxu0  ;;  %6964 = vst [vmem:[#allocation92_spill] sm:$0xff] %v5636_v34  ;;  %v558_v48 = vadd.f32 %v557_v43, %v5461_v27 }
 0x17b   :  { %v561_v28 = vpop.f32.mrb[54].mxu0 }
 0x17c   :  { %v5616_v57 = vpop.f32.mrb[55].mxu0 }
 0x181   :  { %v1208_v17 = vpop.f32.mrb[44].mxu1  ;;  %v954_v40 = vpop.f32.mrb[0].mxu0 }
 0x182   :  { %v1209_v15 = vadd.f32 %v1208_v17, %v5619_v20  ;;  %v4169_v18 = vadd.f32 %v5623_v4, %v954_v40  ;;  %v1210_v31 = vpop.f32.mrb[45].mxu1  ;;  %v956_v16 = vpop.f32.mrb[1].mxu0  ;;  %v562_v40 = vadd.f32 %v561_v28, %v5461_v27 }
 0x183   :  { %v1211_v14 = vadd.f32 %v1210_v31, %v5632_v29  ;;  %v1212_v47 = vpop.f32.mrb[46].mxu1  ;;  %v958_v46 = vpop.f32.mrb[2].mxu0  ;;  %v4171_v41 = vadd.f32 %v5636_v34, %v956_v16 }
 0x184   :  { %v1258_v21 = vadd.f32 %v1209_v15, %v447_v62  ;;  %v3563_v11 = vmul.f32 -1.442695, %v4169_v18  ;;  %v1213_v45 = vadd.f32 %v1212_v47, %v5619_v20  ;;  %v4173_v35 = vadd.f32 %v5623_v4, %v958_v46  ;;  %v1214_v44 = vpop.f32.mrb[47].mxu1  ;;  %v960_v17 = vpop.f32.mrb[3].mxu0 }
 0x185   :  { %v1272_v42 = vadd.f32 %v1211_v14, %v558_v48  ;;  %v1215_v32 = vadd.f32 %v1214_v44, %v5632_v29  ;;  %v3565_v62 = vmul.f32 -1.442695, %v4171_v41  ;;  %v4175_v46 = vadd.f32 %v5636_v34, %v960_v17 }
 0x186   :  { %v3591_v22 = vmul.f32 -1.442695, %v1258_v21  ;;  %4376 = vpow2.f32 %v3563_v11  ;;  %v1259_v43 = vadd.f32 %v1213_v45, %v451_v61  ;;  %v3564_v31 = vmul.f32 -1.442695, %v4173_v35 }
 0x187   :  { %v1273_v39 = vadd.f32 %v1215_v32, %v562_v40  ;;  %v3593_v47 = vmul.f32 -1.442695, %v1272_v42  ;;  %v3566_v27 = vmul.f32 -1.442695, %v4175_v46  ;;  %v5652_v14 = vrot.slane %v5600_v30, %v5413_v37 }
 0x188   :  { %4378 = vpow2.f32 %v3591_v22  ;;  %v3592_v15 = vmul.f32 -1.442695, %v1259_v43  ;;  %v375_v32 = vadd.f32 %v5405_v33, %v5420_v55  ;;  %v5660_v43 = vrot.slane %v5607_v24, %v5413_v37 }
 0x189   :  { %v3594_v16 = vmul.f32 -1.442695, %v1273_v39  ;;  %6965 = vst [vmem:[#allocation93_spill] sm:$0xff] %v5652_v14  ;;  %v998_v17 = vadd.f32 %v5556_v25, %v5652_v14  ;;  %v1001_v46 = vadd.f32 %v5564_v23, %v5652_v14 }
 0x18a   :  { %4380 = vpow2.f32 %v3592_v15 }
 0x18b   :  { %4382 = vpow2.f32 %v3564_v31 }
 0x18c   :  { %4384 = vpow2.f32 %v3565_v62 }
 0x18d   :  { %4386 = vpow2.f32 %v3593_v47 }
 0x18e   :  { %4388 = vpow2.f32 %v3566_v27 }
 0x190   :  { %v4377_v48 = vpop.eup %4376 }
 0x191   :  { %v1012_v28 = vadd.f32 1.0, %v4377_v48 }
 0x192   :  { %v4379_v44 = vpop.eup %4378 }
 0x193   :  { %4390 = vrcp.f32 %v1012_v28  ;;  %v1266_v11 = vadd.f32 1.0, %v4379_v44  ;;  %v560_v44 = vadd.f32 %v5602_v5, %v5464_v0 }
 0x194   :  { %v4381_v45 = vpop.eup %4380  ;;  %4392 = vpow2.f32 %v3594_v16  ;;  %v379_v16 = vadd.f32 %v5410_v36, %v5420_v55 }
 0x195   :  { %v4383_v61 = vpop.eup %4382  ;;  %v1267_v21 = vadd.f32 1.0, %v4381_v45 }
 0x196   :  { %v1013_v18 = vadd.f32 1.0, %v4383_v61  ;;  %v4385_v41 = vpop.eup %4384 }
 0x197   :  { %v1026_v42 = vadd.f32 1.0, %v4385_v41  ;;  %v4387_v35 = vpop.eup %4386  ;;  %v564_v41 = vadd.f32 %v5616_v57, %v5464_v0 }
 0x198   :  { %4394 = vrcp.f32 %v1013_v18  ;;  %v4389_v39 = vpop.eup %4388  ;;  %v1280_v62 = vadd.f32 1.0, %v4387_v35 }
 0x199   :  { %4396 = vrcp.f32 %v1266_v11  ;;  %v1027_v31 = vadd.f32 1.0, %v4389_v39 }
 0x19a   :  { %4398 = vrcp.f32 %v1267_v21 }
 0x19b   :  { %4400 = vrcp.f32 %v1026_v42 }
 0x19d   :  { %v4391_v40 = vpop.eup %4390 }
 0x19e   :  { %v1032_v22 = vmul.f32 %v4391_v40, %v998_v17  ;;  %v4393_v30 = vpop.eup %4392  ;;  %v5672_v17 = vpop.permute.xlu0 %1305 }
 0x19f   :  { %v1281_v25 = vadd.f32 1.0, %v4393_v30  ;;  %6966 = vst [vmem:[#allocation94_spill] sm:$0xff] %v5672_v17  ;;  %vm1310_vm2 = vcmp.eq.s32.totalorder %v5672_v17, 1 }
 0x1a0   :  { %v1034_v15 = vadd.f32 %v1032_v22, %v375_v32 }
 0x1a1   :  { %v1251_v47 = vpop.f32.mrb[48].mxu1 }
 0x1a2   :  { %v4395_v27 = vpop.eup %4394  ;;  %4402 = vtanh.f32 %v1034_v15  ;;  %v1252_v48 = vadd.f32 %v1251_v47, %v5660_v43  ;;  %v3884_v33 = vpop.f32.mrb[49].mxu1 }
 0x1a3   :  { %v4397_v28 = vpop.eup %4396  ;;  %v1033_v37 = vmul.f32 %v4395_v27, %v1001_v46  ;;  %4404 = vrcp.f32 %v1027_v31  ;;  %v1254_v24 = vpop.f32.mrb[50].mxu1 }
 0x1a4   :  { %4406 = vrcp.f32 %v1280_v62  ;;  %v1286_v45 = vmul.f32 %v4397_v28, %v1252_v48  ;;  %v1255_v23 = vadd.f32 %v1254_v24, %v5660_v43  ;;  %v3885_v61 = vpop.f32.mrb[51].mxu1  ;;  %v4399_v11 = vpop.eup %4398 }
 0x1a5   :  { %v1035_v18 = vadd.f32 %v1033_v37, %v379_v16  ;;  %4408 = vrcp.f32 %v1281_v25  ;;  %v4401_v36 = vpop.eup %4400  ;;  %v5676_v27 = vpop.permute.xlu0 %1308 }
 0x1a6   :  { %v1288_v21 = vadd.f32 %v1286_v45, %v560_v44  ;;  %v1287_v42 = vmul.f32 %v4399_v11, %v1255_v23  ;;  %v1038_v35 = vsub.f32 1.0, %v4401_v36  ;;  %v1042_v32 = vmul.f32 0.0, %v4401_v36  ;;  %6967 = vst [vmem:[#allocation95_spill] sm:$0xff] %v5676_v27 }
 0x1a7   :  { %4410 = vtanh.f32 %v1035_v18  ;;  %vm6861_vm3 = vcmp.eq.s32.totalorder %v5676_v27, 1  ;;  %v6968_v11 = vmov 0.0   ;;  %v6969_v18 = vmov 0  }
 0x1a8   :  { %4412 = vtanh.f32 %v1288_v21  ;;  %v1289_v55 = vadd.f32 %v1287_v42, %v564_v41  ;;  %vm3595_vm4 = vmpackc.low %vm6861_vm3, %vm1310_vm2  ;;  %v5799_v41 = vld [vmem:[#allocation3 + $0xb0] ss:$12 sps:$4 sm:$0xff]  }
 0x1a9   :  { %v5802_v21 = vld [vmem:[#allocation6 + $0x4] ss:$12 sps:$4 sm:$0xff]  }
 0x1aa   :  { %4414 = vtanh.f32 %v1289_v55 }
 0x1ac   :  { %v4403_v5 = vpop.eup %4402 }
 0x1ad   :  { %v4405_v39 = vpop.eup %4404  ;;  %v1040_v40 = vmul.f32 %v4403_v5, %v1038_v35 }
 0x1ae   :  { %v4407_v22 = vpop.eup %4406  ;;  %v1039_v57 = vsub.f32 1.0, %v4405_v39  ;;  %v1043_v47 = vmul.f32 0.0, %v4405_v39 }
 0x1af   :  { %v5674_v30 = vadd.f32 %v1042_v32, %v1040_v40  ;;  %v4409_v31 = vpop.eup %4408  ;;  %v1292_v15 = vsub.f32 1.0, %v4407_v22  ;;  %v1296_v48 = vmul.f32 0.0, %v4407_v22 }
 0x1b0   :  { %v1293_v33 = vsub.f32 1.0, %v4409_v31  ;;  %v1297_v44 = vmul.f32 0.0, %v4409_v31 }
 0x1b1   :  { %v4411_v0 = vpop.eup %4410 }
 0x1b2   :  { %v4413_v62 = vpop.eup %4412  ;;  %v1041_v46 = vmul.f32 %v4411_v0, %v1039_v57 }
 0x1b3   :  { %v1294_v25 = vmul.f32 %v4413_v62, %v1292_v15 }
 0x1b4   :  { %v4415_v28 = vpop.eup %4414  ;;  %v5679_v16 = vadd.f32 %v1043_v47, %v1041_v46 }
 0x1b5   :  { %v5682_v37 = vadd.f32 %v1296_v48, %v1294_v25  ;;  %v1295_v24 = vmul.f32 %v4415_v28, %v1293_v33 }
 0x1b6   :  { %v3596_v45 = vpack.c.bf16 %v5679_v16, %v5674_v30 }
 0x1b7   :  { %v5690_v23 = vadd.f32 %v1297_v44, %v1295_v24 }
 0x1b8   :  { %3597 = vmatmul.mubr.msk.bf16.vlgmr.msra.gmra.mrb[4].mxu0 %vm3595_vm4, %v3596_v45  ;;  %3903 = vmatmul.mubr.msk.bf16.vlgmr.msra.gmra.mrb[52].mxu1 %vm3595_vm4, %v3596_v45 }
 0x1b9   :  { %1487 = vmatpush1.bf16.msra.mxu0 %v5224_v49  ;;  %3907 = vmatpush3.bf16.msra.mxu1 %v5297_v7  ;;  %v3606_v61 = vpack.c.bf16 %v5690_v23, %v5682_v37  ;;  %v5717_v49 = vpop.permute.xlu1 %1319  ;;  %v5781_v7 = vld [vmem:[#allocation3 + $0x68] ss:$12 sps:$4 sm:$0xff]  }
 0x1ba   :  { %1488 = vmatprep.subr.bf16.mxu0 %v5226_v50  ;;  %3908 = vmatprep.subr.bf16.mxu1 %v6968_v11  ;;  %6970 = vst [vmem:[#allocation96_spill] sm:$0xff] %v5717_v49  ;;  %vm1324_vm5 = vcmp.eq.s32.totalorder %v5717_v49, 1 }
 0x1bb   :  { %1518 = vmatprep.mubr.bf16.mxu0 %v6969_v18  ;;  %3922 = vmatprep.mubr.msk.bf16.mxu1 %vm4895_vm7, %v6968_v11 }
 0x1bd   :  { %1489 = vmatpush1.bf16.msra.mxu0 %v5234_v51  ;;  %3909 = vmatpush3.bf16.msra.mxu1 %v5303_v8  ;;  %v5727_v50 = vpop.permute.xlu1 %1322  ;;  %v5733_v51 = vld [vmem:[#allocation3 + $0x4] ss:$12 sps:$4 sm:$0xff]  }
 0x1be   :  { %1490 = vmatprep.subr.bf16.mxu0 %v5238_v52  ;;  %3910 = vmatprep.subr.bf16.mxu1 %v6968_v11  ;;  %6971 = vst [vmem:[#allocation97_spill] sm:$0xff] %v5727_v50  ;;  %vm1325_vm6 = vcmp.eq.s32.totalorder %v5727_v50, 1  ;;  %v5741_v52 = vld [vmem:[#allocation3] ss:$12 sps:$4 sm:$0xff]   ;;  %v5938_v50 = vld [vmem:[#allocation6 + $0xa8] ss:$12 sps:$4 sm:$0xff]  }
 0x1bf   :  { %vm3605_vm8 = vmpackc.low %vm1325_vm6, %vm1324_vm5  ;;  %v6977_v8 = vld [vmem:[#allocation15_spill] sm:$0xff] }
 0x1c1   :  { %1491 = vmatpush1.bf16.msra.mxu0 %v5242_v53  ;;  %3911 = vmatpush3.bf16.msra.mxu1 %v5312_v9  ;;  %v5744_v53 = vld [vmem:[#allocation3 + $0x8] ss:$12 sps:$4 sm:$0xff]  }
 0x1c2   :  { %1492 = vmatprep.subr.bf16.mxu0 %v5245_v54  ;;  %3912 = vmatprep.subr.bf16.mxu1 %v6968_v11  ;;  %v5747_v54 = vld [vmem:[#allocation3 + $0x1c] ss:$12 sps:$4 sm:$0xff]  }
 0x1c3   :  { %v6978_v9 = vld [vmem:[#allocation16_spill] sm:$0xff] }
 0x1c4   :  { %6985 = vst [vmem:[#allocation16_spill] sm:$0xff] %v5799_v41 }
 0x1c5   :  { %1493 = vmatpush1.bf16.msra.mxu0 %v5253_v56  ;;  %3913 = vmatpush3.bf16.msra.mxu1 %v5318_v10  ;;  %v5754_v56 = vld [vmem:[#allocation3 + $0x18] ss:$12 sps:$4 sm:$0xff]   ;;  %v6980_v10 = vld [vmem:[#allocation17_spill] sm:$0xff] }
 0x1c6   :  { %1494 = vmatprep.subr.bf16.mxu0 %v5258_v58  ;;  %3914 = vmatprep.subr.bf16.mxu1 %v6968_v11  ;;  %v5757_v58 = vld [vmem:[#allocation3 + $0x20] ss:$12 sps:$4 sm:$0xff]   ;;  %6986 = vst [vmem:[#allocation17_spill] sm:$0xff] %v5802_v21 }
 0x1c9   :  { %1495 = vmatpush1.bf16.msra.mxu0 %v5261_v59  ;;  %3915 = vmatpush3.bf16.msra.mxu1 %v5324_v12  ;;  %v5760_v59 = vld [vmem:[#allocation3 + $0x34] ss:$12 sps:$4 sm:$0xff]   ;;  %v6981_v12 = vld [vmem:[#allocation18_spill] sm:$0xff] }
 0x1ca   :  { %1496 = vmatprep.subr.bf16.mxu0 %v5265_v60  ;;  %3916 = vmatprep.subr.bf16.mxu1 %v6968_v11  ;;  %v5764_v60 = vld [vmem:[#allocation3 + $0x30] ss:$12 sps:$4 sm:$0xff]  }
 0x1cd   :  { %1497 = vmatpush1.bf16.msra.mxu0 %v5273_v63  ;;  %3917 = vmatpush3.bf16.msra.mxu1 %v5330_v13  ;;  %v5767_v63 = vld [vmem:[#allocation3 + $0x38] ss:$12 sps:$4 sm:$0xff]  }
 0x1ce   :  { %1498 = vmatprep.subr.bf16.mxu0 %v5277_v1  ;;  %3918 = vmatprep.subr.bf16.mxu1 %v6968_v11  ;;  %v5770_v1 = vld [vmem:[#allocation3 + $0x4c] ss:$12 sps:$4 sm:$0xff]  }
 0x1cf   :  { %6972 = vst [vmem:[#allocation98_spill] sm:$0xff] %v5770_v1  ;;  %v5793_v13 = vld [vmem:[#allocation3 + $0x98] ss:$12 sps:$4 sm:$0xff]  }
 0x1d0   :  { %6982 = vst [vmem:[#allocation15_spill] sm:$0xff] %v5793_v13 }
 0x1d1   :  { %1499 = vmatpush1.bf16.msra.mxu0 %v5280_v2  ;;  %3919 = vmatpush3.bf16.msra.mxu1 %v5338_v19  ;;  %v5775_v2 = vld [vmem:[#allocation3 + $0x50] ss:$12 sps:$4 sm:$0xff]   ;;  %v6983_v19 = vld [vmem:[#allocation19_spill] sm:$0xff] }
 0x1d2   :  { %1500 = vmatprep.subr.bf16.mxu0 %v5284_v3  ;;  %3920 = vmatprep.subr.bf16.mxu1 %v6968_v11  ;;  %6973 = vst [vmem:[#allocation99_spill] sm:$0xff] %v5775_v2  ;;  %v6974_v3 = vld [vmem:[#allocation13_spill] sm:$0xff] }
 0x1d3   :  { %6976 = vst [vmem:[#allocation13_spill] sm:$0xff] %v5781_v7 }
 0x1d5   :  { %1501 = vmatpush1.bf16.msra.mxu0 %v5292_v6  ;;  %3921 = vmatpush3.bf16.msra.mxu1 %v5346_v26  ;;  %v6975_v6 = vld [vmem:[#allocation14_spill] sm:$0xff]  ;;  %v6984_v26 = vld [vmem:[#allocation20_spill] sm:$0xff] }
 0x1d6   :  { %1671 = vmatprep.subr.bf16.mxu0 %v5733_v51  ;;  %3926 = vmatprep.subr.bf16.mxu1 %v6968_v11 }
 0x1d8   :  { %3607 = vmatmul.mubr.msk.bf16.vlgmr.msra.gmra.mrb[56].mxu0 %vm3605_vm8, %v3606_v61  ;;  %3923 = vmatmul.mubr.msk.bf16.vlgmr.msra.gmra.mrb[56].mxu1 %vm3605_vm8, %v3606_v61 }
 0x1d9   :  { %1672 = vmatpush1.bf16.msra.mxu0 %v5741_v52  ;;  %3927 = vmatpush3.bf16.msra.mxu1 %v5744_v53 }
 0x1da   :  { %1673 = vmatprep.subr.bf16.mxu0 %v5747_v54  ;;  %3928 = vmatprep.subr.bf16.mxu1 %v6968_v11 }
 0x1db   :  { %1703 = vmatprep.mubr.bf16.mxu0 %v6969_v18  ;;  %3942 = vmatprep.mubr.msk.bf16.mxu1 %vm4895_vm7, %v6968_v11 }
 0x1dd   :  { %1674 = vmatpush1.bf16.msra.mxu0 %v5754_v56  ;;  %3929 = vmatpush3.bf16.msra.mxu1 %v5757_v58 }
 0x1de   :  { %1675 = vmatprep.subr.bf16.mxu0 %v5760_v59  ;;  %3930 = vmatprep.subr.bf16.mxu1 %v6968_v11 }
 0x1e1   :  { %1676 = vmatpush1.bf16.msra.mxu0 %v5764_v60  ;;  %3931 = vmatpush3.bf16.msra.mxu1 %v5767_v63 }
 0x1e2   :  { %1677 = vmatprep.subr.bf16.mxu0 %v5770_v1  ;;  %3932 = vmatprep.subr.bf16.mxu1 %v6968_v11 }
 0x1e5   :  { %1678 = vmatpush1.bf16.msra.mxu0 %v5181_v38  ;;  %3933 = vmatpush3.bf16.msra.mxu1 %v5775_v2  ;;  %v5787_v38 = vld [vmem:[#allocation3 + $0x80] ss:$12 sps:$4 sm:$0xff]  }
 0x1e6   :  { %1679 = vmatprep.subr.bf16.mxu0 %v6974_v3  ;;  %3934 = vmatprep.subr.bf16.mxu1 %v6968_v11  ;;  %6979 = vst [vmem:[#allocation14_spill] sm:$0xff] %v5787_v38 }
 0x1e9   :  { %1680 = vmatpush1.bf16.msra.mxu0 %v6975_v6  ;;  %3935 = vmatpush3.bf16.msra.mxu1 %v5781_v7 }
 0x1ea   :  { %1681 = vmatprep.subr.bf16.mxu0 %v6977_v8  ;;  %3936 = vmatprep.subr.bf16.mxu1 %v6968_v11 }
 0x1ed   :  { %1682 = vmatpush1.bf16.msra.mxu0 %v6978_v9  ;;  %3937 = vmatpush3.bf16.msra.mxu1 %v5787_v38  ;;  %v1312_v9 = vsel %vm1310_vm2, %v5674_v30, 0.0 }
 0x1ee   :  { %1683 = vmatprep.subr.bf16.mxu0 %v6980_v10  ;;  %3938 = vmatprep.subr.bf16.mxu1 %v6968_v11 }
 0x1f1   :  { %1684 = vmatpush1.bf16.msra.mxu0 %v6981_v12  ;;  %3939 = vmatpush3.bf16.msra.mxu1 %v5793_v13 }
 0x1f2   :  { %1685 = vmatprep.subr.bf16.mxu0 %v6983_v19  ;;  %3940 = vmatprep.subr.bf16.mxu1 %v6968_v11 }
 0x1f5   :  { %1686 = vmatpush1.bf16.msra.mxu0 %v6984_v26  ;;  %3941 = vmatpush3.bf16.msra.mxu1 %v5799_v41 }
 0x1f6   :  { %1798 = vmatprep.subr.bf16.mxu0 %v5802_v21  ;;  %3946 = vmatprep.subr.bf16.mxu1 %v6968_v11 }
 0x28b   :  { %v1393_v42 = vpop.f32.mrb[4].mxu0  ;;  %v1436_v36 = vpop.f32.mrb[52].mxu1 }
 0x28c   :  { %v4177_v55 = vadd.f32 %v5623_v4, %v1393_v42  ;;  %v1395_v35 = vpop.f32.mrb[5].mxu0  ;;  %v3904_v5 = vpop.f32.mrb[53].mxu1  ;;  %v1437_v3 = vadd.f32 %v1436_v36, %v5652_v14 }
 0x28d   :  { %v4179_v39 = vadd.f32 %v5636_v34, %v1395_v35  ;;  %v1397_v40 = vpop.f32.mrb[6].mxu0  ;;  %v1439_v32 = vpop.f32.mrb[54].mxu1  ;;  %v6987_v35 = vld [vmem:[#allocation31_spill] sm:$0xff] }
 0x28e   :  { %v3601_v22 = vmul.f32 -1.442695, %v4177_v55  ;;  %v4181_v31 = vadd.f32 %v5623_v4, %v1397_v40  ;;  %v1399_v57 = vpop.f32.mrb[7].mxu0  ;;  %v3905_v0 = vpop.f32.mrb[55].mxu1  ;;  %v1440_v12 = vadd.f32 %v1439_v32, %v5652_v14  ;;  %v1313_v55 = vsel %vm6861_vm3, %v5679_v16, 0.0  ;;  %v6989_v16 = vld [vmem:[#allocation62_spill] sm:$0xff] }
 0x28f   :  { %v3603_v15 = vmul.f32 -1.442695, %v4179_v39  ;;  %v4183_v62 = vadd.f32 %v5636_v34, %v1399_v57 }
 0x290   :  { %4416 = vpow2.f32 %v3601_v22  ;;  %v3602_v46 = vmul.f32 -1.442695, %v4181_v31  ;;  %v6988_v31 = vld [vmem:[#allocation33_spill] sm:$0xff] }
 0x291   :  { %4418 = vpow2.f32 %v3603_v15  ;;  %v3604_v47 = vmul.f32 -1.442695, %v4183_v62 }
 0x292   :  { %4420 = vpow2.f32 %v3602_v46 }
 0x293   :  { %4422 = vpow2.f32 %v3604_v47 }
 0x29a   :  { %v4417_v25 = vpop.eup %4416 }
 0x29b   :  { %v4419_v48 = vpop.eup %4418  ;;  %v1451_v33 = vadd.f32 1.0, %v4417_v25 }
 0x29c   :  { %v4421_v28 = vpop.eup %4420  ;;  %v1465_v24 = vadd.f32 1.0, %v4419_v48 }
 0x29d   :  { %v4423_v44 = vpop.eup %4422  ;;  %4424 = vrcp.f32 %v1451_v33  ;;  %v1452_v45 = vadd.f32 1.0, %v4421_v28  ;;  %v6990_v28 = vld [vmem:[#allocation81_spill] sm:$0xff] }
 0x29e   :  { %4426 = vrcp.f32 %v1465_v24  ;;  %v1466_v61 = vadd.f32 1.0, %v4423_v44 }
 0x29f   :  { %4428 = vrcp.f32 %v1452_v45 }
 0x2a0   :  { %4430 = vrcp.f32 %v1466_v61  ;;  %v6991_v61 = vld [vmem:[#allocation66_spill] sm:$0xff] }
 0x2a7   :  { %v4425_v6 = vpop.eup %4424 }
 0x2a8   :  { %v4427_v8 = vpop.eup %4426  ;;  %v1471_v10 = vmul.f32 %v4425_v6, %v1437_v3 }
 0x2a9   :  { %v4429_v19 = vpop.eup %4428  ;;  %v1481_v26 = vmul.f32 %v4427_v8, %v1312_v9 }
 0x2aa   :  { %v4431_v42 = vpop.eup %4430  ;;  %v1473_v5 = vadd.f32 %v1471_v10, %v6987_v35  ;;  %v1472_v39 = vmul.f32 %v4429_v19, %v1440_v12  ;;  %v6992_v10 = vld [vmem:[#allocation83_spill] sm:$0xff] }
 0x2ab   :  { %v1482_v36 = vmul.f32 %v4431_v42, %v1313_v55  ;;  %v1520_v40 = vpop.f32.mrb[56].mxu0  ;;  %v5819_v22 = vpop.f32.mrb[56].mxu1 }
 0x2ac   :  { %4432 = vtanh.f32 %v1473_v5  ;;  %v1474_v30 = vadd.f32 %v1472_v39, %v6988_v31  ;;  %v1521_v57 = vadd.f32 %v1520_v40, %v5619_v20  ;;  %v1522_v32 = vpop.f32.mrb[57].mxu0  ;;  %v3924_v0 = vpop.f32.mrb[57].mxu1  ;;  %v1477_v5 = vsub.f32 1.0, %v4427_v8 }
 0x2ad   :  { %v1523_v15 = vadd.f32 %v1522_v32, %v5632_v29  ;;  %v1524_v62 = vpop.f32.mrb[58].mxu0  ;;  %v5824_v46 = vpop.f32.mrb[58].mxu1  ;;  %v1478_v40 = vsub.f32 1.0, %v4431_v42 }
 0x2ae   :  { %4434 = vtanh.f32 %v1474_v30  ;;  %v1570_v47 = vadd.f32 %v1521_v57, %v6989_v16  ;;  %v1525_v25 = vadd.f32 %v1524_v62, %v5619_v20  ;;  %v1526_v48 = vpop.f32.mrb[59].mxu0  ;;  %v3925_v33 = vpop.f32.mrb[59].mxu1 }
 0x2af   :  { %v1584_v24 = vadd.f32 %v1523_v15, %v6990_v28  ;;  %v1527_v44 = vadd.f32 %v1526_v48, %v5632_v29  ;;  %v5832_v57 = vpop.permute.xlu0 %1617  ;;  %v5835_v15 = vpop.permute.xlu1 %1620 }
 0x2b0   :  { %v3611_v45 = vmul.f32 -1.442695, %v1570_v47  ;;  %v1571_v3 = vadd.f32 %v1525_v25, %v6991_v61  ;;  %6993 = vst [vmem:[#allocation18_spill] sm:$0xff] %v5832_v57  ;;  %vm1622_vm9 = vcmp.eq.s32.totalorder %v5832_v57, 1  ;;  %6994 = vst [vmem:[#allocation19_spill] sm:$0xff] %v5835_v15  ;;  %vm1623_vm10 = vcmp.eq.s32.totalorder %v5835_v15, 1 }
 0x2b1   :  { %v3613_v6 = vmul.f32 -1.442695, %v1584_v24  ;;  %v1585_v12 = vadd.f32 %v1527_v44, %v6992_v10  ;;  %v5848_v24 = vld [vmem:[#allocation6] ss:$12 sps:$4 sm:$0xff]   ;;  %v5851_v44 = vld [vmem:[#allocation6 + $0x8] ss:$12 sps:$4 sm:$0xff]  }
 0x2b2   :  { %4436 = vpow2.f32 %v3611_v45  ;;  %v3612_v19 = vmul.f32 -1.442695, %v1571_v3  ;;  %v5861_v45 = vld [vmem:[#allocation6 + $0x18] ss:$12 sps:$4 sm:$0xff]   ;;  %v5864_v61 = vld [vmem:[#allocation6 + $0x20] ss:$12 sps:$4 sm:$0xff]  }
 0x2b3   :  { %4438 = vpow2.f32 %v3613_v6  ;;  %v3614_v35 = vmul.f32 -1.442695, %v1585_v12  ;;  %v5867_v3 = vld [vmem:[#allocation6 + $0x34] ss:$12 sps:$4 sm:$0xff]   ;;  %v1564_v6 = vadd.f32 %v5819_v22, %v5660_v43  ;;  %v5873_v12 = vld [vmem:[#allocation6 + $0x30] ss:$12 sps:$4 sm:$0xff]   ;;  %v5933_v27 = vpop.permute.xlu0 %1631  ;;  %v5936_v17 = vpop.permute.xlu1 %1634 }
 0x2b4   :  { %4440 = vpow2.f32 %v3612_v19  ;;  %v5876_v19 = vld [vmem:[#allocation6 + $0x38] ss:$12 sps:$4 sm:$0xff]   ;;  %6997 = vst [vmem:[#allocation20_spill] sm:$0xff] %v5933_v27  ;;  %vm1636_vm11 = vcmp.eq.s32.totalorder %v5933_v27, 1  ;;  %6998 = vst [vmem:[#allocation31_spill] sm:$0xff] %v5936_v17  ;;  %vm1637_vm12 = vcmp.eq.s32.totalorder %v5936_v17, 1 }
 0x2b5   :  { %4442 = vpow2.f32 %v3614_v35 }
 0x2b6   :  { %v4433_v39 = vpop.eup %4432 }
 0x2b7   :  { %v1479_v31 = vmul.f32 %v4433_v39, %v1477_v5  ;;  %v1326_v5 = vsel %vm1324_vm5, %v5682_v37, 0.0 }
 0x2b8   :  { %v4435_v30 = vpop.eup %4434 }
 0x2b9   :  { %v1480_v32 = vmul.f32 %v4435_v30, %v1478_v40  ;;  %v1483_v0 = vadd.f32 %v1481_v26, %v1479_v31  ;;  %v1567_v40 = vadd.f32 %v5824_v46, %v5660_v43  ;;  %v5884_v31 = vld [vmem:[#allocation6 + $0x4c] ss:$12 sps:$4 sm:$0xff]   ;;  %v5895_v46 = vld [vmem:[#allocation6 + $0x50] ss:$12 sps:$4 sm:$0xff]  }
 0x2bb   :  { %v1484_v62 = vadd.f32 %v1482_v36, %v1480_v32  ;;  %v5839_v16 = vsel %vm1622_vm9, %v1483_v0, %v1312_v9  ;;  %v1327_v0 = vsel %vm1325_vm6, %v5690_v23, 0.0  ;;  %v5903_v23 = vld [vmem:[#allocation6 + $0x60] ss:$12 sps:$4 sm:$0xff]  }
 0x2bc   :  { %v4437_v47 = vpop.eup %4436 }
 0x2bd   :  { %v4439_v8 = vpop.eup %4438  ;;  %v1578_v42 = vadd.f32 1.0, %v4437_v47  ;;  %v5844_v25 = vsel %vm1623_vm10, %v1484_v62, %v1313_v55  ;;  %v5854_v55 = vld [vmem:[#allocation6 + $0x1c] ss:$12 sps:$4 sm:$0xff]  }
 0x2be   :  { %v4441_v48 = vpop.eup %4440  ;;  %v1592_v26 = vadd.f32 1.0, %v4439_v8  ;;  %v1670_v33 = vpack.c.bf16 %v5844_v25, %v5839_v16  ;;  %v6995_v62 = vld [vmem:[#allocation82_spill] sm:$0xff]  ;;  %v5892_v8 = vld [vmem:[#allocation6 + $0x48] ss:$12 sps:$4 sm:$0xff]  }
 0x2bf   :  { %v4443_v28 = vpop.eup %4442  ;;  %4444 = vrcp.f32 %v1578_v42  ;;  %v1579_v36 = vadd.f32 1.0, %v4441_v48  ;;  %v6996_v48 = vld [vmem:[#allocation84_spill] sm:$0xff] }
 0x2c0   :  { %4446 = vrcp.f32 %v1592_v26  ;;  %v1593_v9 = vadd.f32 1.0, %v4443_v28  ;;  %1704 = vmatmul.mubr.bf16.vlgmr.msra.gmra.mrb[8].mxu0 %v1670_v33  ;;  %3943 = vmatmul.mubr.bf16.vlgmr.msra.gmra.mrb[60].mxu1 %v1670_v33  ;;  %v5899_v33 = vld [vmem:[#allocation6 + $0x64] ss:$12 sps:$4 sm:$0xff]   ;;  %v5906_v28 = vld [vmem:[#allocation6 + $0x68] ss:$12 sps:$4 sm:$0xff]  }
 0x2c1   :  { %4448 = vrcp.f32 %v1579_v36  ;;  %1799 = vmatpush1.bf16.msra.mxu0 %v5848_v24  ;;  %3947 = vmatpush3.bf16.msra.mxu1 %v5851_v44  ;;  %v5909_v36 = vld [vmem:[#allocation6 + $0x7c] ss:$12 sps:$4 sm:$0xff]  }
 0x2c2   :  { %4450 = vrcp.f32 %v1593_v9  ;;  %1800 = vmatprep.subr.bf16.mxu0 %v5854_v55  ;;  %3948 = vmatprep.subr.bf16.mxu1 %v6968_v11  ;;  %v5913_v9 = vld [vmem:[#allocation6 + $0x78] ss:$12 sps:$4 sm:$0xff]  }
 0x2c3   :  { %1830 = vmatprep.mubr.bf16.mxu0 %v6969_v18  ;;  %3962 = vmatprep.mubr.msk.bf16.mxu1 %vm4895_vm7, %v6968_v11 }
 0x2c5   :  { %1801 = vmatpush1.bf16.msra.mxu0 %v5861_v45  ;;  %3949 = vmatpush3.bf16.msra.mxu1 %v5864_v61 }
 0x2c6   :  { %1802 = vmatprep.subr.bf16.mxu0 %v5867_v3  ;;  %3950 = vmatprep.subr.bf16.mxu1 %v6968_v11 }
 0x2c9   :  { %v4445_v10 = vpop.eup %4444  ;;  %1803 = vmatpush1.bf16.msra.mxu0 %v5873_v12  ;;  %3951 = vmatpush3.bf16.msra.mxu1 %v5876_v19 }
 0x2ca   :  { %v4447_v35 = vpop.eup %4446  ;;  %v1598_v39 = vmul.f32 %v4445_v10, %v1564_v6  ;;  %1804 = vmatprep.subr.bf16.mxu0 %v5884_v31  ;;  %3952 = vmatprep.subr.bf16.mxu1 %v6968_v11  ;;  %v5916_v6 = vld [vmem:[#allocation6 + $0x80] ss:$12 sps:$4 sm:$0xff]  }
 0x2cb   :  { %v4449_v22 = vpop.eup %4448  ;;  %v1608_v30 = vmul.f32 %v4447_v35, %v1326_v5  ;;  %v5919_v10 = vld [vmem:[#allocation6 + $0x94] ss:$12 sps:$4 sm:$0xff]  }
 0x2cc   :  { %v4451_v32 = vpop.eup %4450  ;;  %v1600_v47 = vadd.f32 %v1598_v39, %v6995_v62  ;;  %v1599_v37 = vmul.f32 %v4449_v22, %v1567_v40  ;;  %v1604_v39 = vsub.f32 1.0, %v4447_v35  ;;  %v5923_v62 = vld [vmem:[#allocation6 + $0x90] ss:$12 sps:$4 sm:$0xff]  }
 0x2cd   :  { %1805 = vmatpush1.bf16.msra.mxu0 %v5892_v8  ;;  %3953 = vmatpush3.bf16.msra.mxu1 %v5895_v46  ;;  %v1609_v42 = vmul.f32 %v4451_v32, %v1327_v0  ;;  %v1605_v22 = vsub.f32 1.0, %v4451_v32 }
 0x2ce   :  { %4452 = vtanh.f32 %v1600_v47  ;;  %v1601_v26 = vadd.f32 %v1599_v37, %v6996_v48  ;;  %1806 = vmatprep.subr.bf16.mxu0 %v5899_v33  ;;  %3954 = vmatprep.subr.bf16.mxu1 %v6968_v11  ;;  %v5926_v47 = vld [vmem:[#allocation6 + $0x98] ss:$12 sps:$4 sm:$0xff]  }
 0x2d0   :  { %4454 = vtanh.f32 %v1601_v26  ;;  %v5929_v26 = vld [vmem:[#allocation6 + $0xac] ss:$12 sps:$4 sm:$0xff]  }
 0x2d1   :  { %1807 = vmatpush1.bf16.msra.mxu0 %v5903_v23  ;;  %3955 = vmatpush3.bf16.msra.mxu1 %v5906_v28 }
 0x2d2   :  { %1808 = vmatprep.subr.bf16.mxu0 %v5909_v36  ;;  %3956 = vmatprep.subr.bf16.mxu1 %v6968_v11 }
 0x2d5   :  { %1809 = vmatpush1.bf16.msra.mxu0 %v5913_v9  ;;  %3957 = vmatpush3.bf16.msra.mxu1 %v5916_v6 }
 0x2d6   :  { %1810 = vmatprep.subr.bf16.mxu0 %v5919_v10  ;;  %3958 = vmatprep.subr.bf16.mxu1 %v6968_v11 }
 0x2d8   :  { %v4453_v40 = vpop.eup %4452 }
 0x2d9   :  { %1811 = vmatpush1.bf16.msra.mxu0 %v5923_v62  ;;  %3959 = vmatpush3.bf16.msra.mxu1 %v5926_v47  ;;  %v1606_v37 = vmul.f32 %v4453_v40, %v1604_v39  ;;  %v5941_v39 = vld [vmem:[#allocation6 + $0xb0] ss:$12 sps:$4 sm:$0xff]  }
 0x2da   :  { %v4455_v48 = vpop.eup %4454  ;;  %1812 = vmatprep.subr.bf16.mxu0 %v5929_v26  ;;  %3960 = vmatprep.subr.bf16.mxu1 %v6968_v11 }
 0x2db   :  { %v1607_v35 = vmul.f32 %v4455_v48, %v1605_v22  ;;  %v1610_v32 = vadd.f32 %v1608_v30, %v1606_v37  ;;  %v5984_v37 = vld [vmem:[#allocation3 + $0x7c] ss:$12 sps:$4 sm:$0xff]   ;;  %v5988_v48 = vld [vmem:[#allocation3 + $0x78] ss:$12 sps:$4 sm:$0xff]  }
 0x2dc   :  { %7002 = vst [vmem:[#allocation66_spill] sm:$0xff] %v5984_v37  ;;  %7003 = vst [vmem:[#allocation83_spill] sm:$0xff] %v5988_v48 }
 0x2dd   :  { %1813 = vmatpush1.bf16.msra.mxu0 %v5938_v50  ;;  %3961 = vmatpush3.bf16.msra.mxu1 %v5941_v39  ;;  %v1611_v40 = vadd.f32 %v1609_v42, %v1607_v35  ;;  %v5946_v49 = vsel %vm1636_vm11, %v1610_v32, %v1326_v5  ;;  %v5972_v5 = vld [vmem:[#allocation3 + $0x48] ss:$12 sps:$4 sm:$0xff]   ;;  %v5980_v42 = vld [vmem:[#allocation3 + $0x60] ss:$12 sps:$4 sm:$0xff]   ;;  %v5996_v32 = vld [vmem:[#allocation3 + $0x90] ss:$12 sps:$4 sm:$0xff]  }
 0x2de   :  { %1983 = vmatprep.subr.bf16.mxu0 %v5733_v51  ;;  %3966 = vmatprep.subr.bf16.mxu1 %v6968_v11  ;;  %6999 = vst [vmem:[#allocation33_spill] sm:$0xff] %v5972_v5  ;;  %7001 = vst [vmem:[#allocation81_spill] sm:$0xff] %v5980_v42  ;;  %v5992_v35 = vld [vmem:[#allocation3 + $0x94] ss:$12 sps:$4 sm:$0xff]  }
 0x2df   :  { %v5953_v30 = vsel %vm1637_vm12, %v1611_v40, %v1327_v0  ;;  %v5976_v0 = vld [vmem:[#allocation3 + $0x64] ss:$12 sps:$4 sm:$0xff]   ;;  %7004 = vst [vmem:[#allocation82_spill] sm:$0xff] %v5992_v35  ;;  %7005 = vst [vmem:[#allocation84_spill] sm:$0xff] %v5996_v32  ;;  %v6000_v40 = vld [vmem:[#allocation3 + $0xac] ss:$12 sps:$4 sm:$0xff]  }
 0x2e0   :  { %v1797_v22 = vpack.c.bf16 %v5953_v30, %v5946_v49  ;;  %7000 = vst [vmem:[#allocation62_spill] sm:$0xff] %v5976_v0  ;;  %7006 = vst [vmem:[#allocation100_spill] sm:$0xff] %v6000_v40 }
 0x2e2   :  { %1831 = vmatmul.mubr.bf16.vlgmr.msra.gmra.mrb[60].mxu0 %v1797_v22  ;;  %3963 = vmatmul.mubr.bf16.vlgmr.msra.gmra.mrb[64].mxu1 %v1797_v22  ;;  %v6004_v22 = vld [vmem:[#allocation3 + $0xa8] ss:$12 sps:$4 sm:$0xff]  }
 0x2e3   :  { %1984 = vmatpush1.bf16.msra.mxu0 %v5741_v52  ;;  %3967 = vmatpush3.bf16.msra.mxu1 %v5744_v53  ;;  %7007 = vst [vmem:[#allocation101_spill] sm:$0xff] %v6004_v22 }
 0x2e4   :  { %1985 = vmatprep.subr.bf16.mxu0 %v5747_v54  ;;  %3968 = vmatprep.subr.bf16.mxu1 %v6968_v11 }
 0x2e5   :  { %2015 = vmatprep.mubr.bf16.mxu0 %v6969_v18  ;;  %3982 = vmatprep.mubr.msk.bf16.mxu1 %vm4895_vm7, %v6968_v11 }
 0x2e7   :  { %1986 = vmatpush1.bf16.msra.mxu0 %v5754_v56  ;;  %3969 = vmatpush3.bf16.msra.mxu1 %v5757_v58 }
 0x2e8   :  { %1987 = vmatprep.subr.bf16.mxu0 %v5760_v59  ;;  %3970 = vmatprep.subr.bf16.mxu1 %v6968_v11 }
 0x2eb   :  { %1988 = vmatpush1.bf16.msra.mxu0 %v5764_v60  ;;  %3971 = vmatpush3.bf16.msra.mxu1 %v5767_v63 }
 0x2ec   :  { %1989 = vmatprep.subr.bf16.mxu0 %v5770_v1  ;;  %3972 = vmatprep.subr.bf16.mxu1 %v6968_v11 }
 0x2ef   :  { %1990 = vmatpush1.bf16.msra.mxu0 %v5972_v5  ;;  %3973 = vmatpush3.bf16.msra.mxu1 %v5775_v2 }
 0x2f0   :  { %1991 = vmatprep.subr.bf16.mxu0 %v5976_v0  ;;  %3974 = vmatprep.subr.bf16.mxu1 %v6968_v11 }
 0x2f3   :  { %1992 = vmatpush1.bf16.msra.mxu0 %v5980_v42  ;;  %3975 = vmatpush3.bf16.msra.mxu1 %v5781_v7 }
 0x2f4   :  { %1993 = vmatprep.subr.bf16.mxu0 %v5984_v37  ;;  %3976 = vmatprep.subr.bf16.mxu1 %v6968_v11 }
 0x2f7   :  { %1994 = vmatpush1.bf16.msra.mxu0 %v5988_v48  ;;  %3977 = vmatpush3.bf16.msra.mxu1 %v5787_v38 }
 0x2f8   :  { %1995 = vmatprep.subr.bf16.mxu0 %v5992_v35  ;;  %3978 = vmatprep.subr.bf16.mxu1 %v6968_v11 }
 0x2fb   :  { %1996 = vmatpush1.bf16.msra.mxu0 %v5996_v32  ;;  %3979 = vmatpush3.bf16.msra.mxu1 %v5793_v13 }
 0x2fc   :  { %1997 = vmatprep.subr.bf16.mxu0 %v6000_v40  ;;  %3980 = vmatprep.subr.bf16.mxu1 %v6968_v11 }
 0x2ff   :  { %1998 = vmatpush1.bf16.msra.mxu0 %v6004_v22  ;;  %3981 = vmatpush3.bf16.msra.mxu1 %v5799_v41 }
 0x300   :  { %2110 = vmatprep.subr.bf16.mxu0 %v5802_v21  ;;  %3986 = vmatprep.subr.bf16.mxu1 %v6968_v11 }
 0x393   :  { %v1705_v15 = vpop.f32.mrb[8].mxu0  ;;  %v1748_v57 = vpop.f32.mrb[60].mxu1 }
 0x394   :  { %v4185_v17 = vadd.f32 %v5623_v4, %v1705_v15  ;;  %v1707_v27 = vpop.f32.mrb[9].mxu0  ;;  %v3944_v13 = vpop.f32.mrb[61].mxu1 }
 0x395   :  { %v1709_v32 = vpop.f32.mrb[10].mxu0  ;;  %v1751_v40 = vpop.f32.mrb[62].mxu1  ;;  %v4187_v22 = vadd.f32 %v5636_v34, %v1707_v27  ;;  %v1749_v27 = vadd.f32 %v1748_v57, %v5652_v14 }
 0x396   :  { %v3615_v35 = vmul.f32 -1.442695, %v4185_v17  ;;  %v4189_v38 = vadd.f32 %v5623_v4, %v1709_v32  ;;  %v1711_v48 = vpop.f32.mrb[11].mxu0  ;;  %v3945_v37 = vpop.f32.mrb[63].mxu1 }
 0x397   :  { %v4191_v21 = vadd.f32 %v5636_v34, %v1711_v48  ;;  %v3617_v7 = vmul.f32 -1.442695, %v4187_v22  ;;  %v7009_v22 = vld [vmem:[#allocation37_spill] sm:$0xff] }
 0x398   :  { %4456 = vpow2.f32 %v3615_v35  ;;  %v3616_v41 = vmul.f32 -1.442695, %v4189_v38 }
 0x399   :  { %v3618_v42 = vmul.f32 -1.442695, %v4191_v21 }
 0x39a   :  { %4458 = vpow2.f32 %v3616_v41  ;;  %v1752_v41 = vadd.f32 %v1751_v40, %v5652_v14 }
 0x39b   :  { %4460 = vpow2.f32 %v3617_v7  ;;  %v7008_v7 = vld [vmem:[#allocation35_spill] sm:$0xff] }
 0x39c   :  { %4462 = vpow2.f32 %v3618_v42 }
 0x3a2   :  { %v4457_v15 = vpop.eup %4456 }
 0x3a3   :  { %v1763_v13 = vadd.f32 1.0, %v4457_v15 }
 0x3a4   :  { %v4459_v0 = vpop.eup %4458 }
 0x3a5   :  { %4464 = vrcp.f32 %v1763_v13  ;;  %v1764_v17 = vadd.f32 1.0, %v4459_v0  ;;  %v4461_v32 = vpop.eup %4460 }
 0x3a6   :  { %v4463_v4 = vpop.eup %4462  ;;  %v1777_v37 = vadd.f32 1.0, %v4461_v32 }
 0x3a7   :  { %4466 = vrcp.f32 %v1764_v17  ;;  %v1778_v35 = vadd.f32 1.0, %v4463_v4 }
 0x3a8   :  { %4468 = vrcp.f32 %v1777_v37 }
 0x3a9   :  { %4470 = vrcp.f32 %v1778_v35 }
 0x3af   :  { %v4465_v38 = vpop.eup %4464 }
 0x3b0   :  { %v1783_v2 = vmul.f32 %v4465_v38, %v1749_v27  ;;  %v7010_v27 = vld [vmem:[#allocation54_spill] sm:$0xff] }
 0x3b1   :  { %v4467_v21 = vpop.eup %4466 }
 0x3b2   :  { %v1785_v42 = vadd.f32 %v1783_v2, %v7008_v7  ;;  %v1784_v48 = vmul.f32 %v4467_v21, %v1752_v41  ;;  %v7011_v21 = vld [vmem:[#allocation77_spill] sm:$0xff] }
 0x3b4   :  { %4472 = vtanh.f32 %v1785_v42  ;;  %v1786_v0 = vadd.f32 %v1784_v48, %v7009_v22  ;;  %v4469_v48 = vpop.eup %4468 }
 0x3b5   :  { %v1832_v15 = vpop.f32.mrb[60].mxu0  ;;  %v6018_v13 = vpop.f32.mrb[64].mxu1  ;;  %v1789_v5 = vsub.f32 1.0, %v4469_v48 }
 0x3b6   :  { %4474 = vtanh.f32 %v1786_v0  ;;  %v1833_v57 = vadd.f32 %v1832_v15, %v5619_v20  ;;  %v1834_v4 = vpop.f32.mrb[61].mxu0  ;;  %v3964_v17 = vpop.f32.mrb[65].mxu1  ;;  %v7012_v0 = vld [vmem:[#allocation58_spill] sm:$0xff] }
 0x3b7   :  { %v1835_v32 = vadd.f32 %v1834_v4, %v5632_v29  ;;  %v1836_v37 = vpop.f32.mrb[62].mxu0  ;;  %v6022_v40 = vpop.f32.mrb[66].mxu1  ;;  %v7013_v17 = vld [vmem:[#allocation79_spill] sm:$0xff] }
 0x3b8   :  { %v1882_v2 = vadd.f32 %v1833_v57, %v7010_v27  ;;  %v1837_v35 = vadd.f32 %v1836_v37, %v5619_v20  ;;  %v1838_v38 = vpop.f32.mrb[63].mxu0  ;;  %v3965_v41 = vpop.f32.mrb[67].mxu1  ;;  %v1793_v57 = vmul.f32 %v4469_v48, %v5839_v16 }
 0x3b9   :  { %v1896_v7 = vadd.f32 %v1835_v32, %v7011_v21  ;;  %v1839_v42 = vadd.f32 %v1838_v38, %v5632_v29  ;;  %v4471_v4 = vpop.eup %4470 }
 0x3ba   :  { %v3619_v22 = vmul.f32 -1.442695, %v1882_v2  ;;  %v1883_v15 = vadd.f32 %v1837_v35, %v7012_v0  ;;  %v1790_v37 = vsub.f32 1.0, %v4471_v4  ;;  %v1794_v38 = vmul.f32 %v4471_v4, %v5844_v25  ;;  %v6032_v35 = vpop.permute.xlu0 %1929 }
 0x3bb   :  { %v1897_v14 = vadd.f32 %v1839_v42, %v7013_v17  ;;  %v3621_v27 = vmul.f32 -1.442695, %v1896_v7  ;;  %7014 = vst [vmem:[#allocation35_spill] sm:$0xff] %v6032_v35  ;;  %v6034_v42 = vpop.permute.xlu1 %1932  ;;  %vm1934_vm13 = vcmp.eq.s32.totalorder %v6032_v35, 1 }
 0x3bc   :  { %4476 = vpow2.f32 %v3619_v22  ;;  %v3620_v34 = vmul.f32 -1.442695, %v1883_v15  ;;  %7015 = vst [vmem:[#allocation37_spill] sm:$0xff] %v6034_v42  ;;  %vm1935_vm14 = vcmp.eq.s32.totalorder %v6034_v42, 1  ;;  %v1876_v15 = vadd.f32 %v6018_v13, %v5660_v43  ;;  %v7017_v13 = vld [vmem:[#allocation80_spill] sm:$0xff]  ;;  %v7038_v42 = vld [vmem:[#allocation93_spill] sm:$0xff] }
 0x3bd   :  { %v3622_v21 = vmul.f32 -1.442695, %v1897_v14 }
 0x3be   :  { %v4473_v1 = vpop.eup %4472  ;;  %4478 = vpow2.f32 %v3620_v34 }
 0x3bf   :  { %v1791_v41 = vmul.f32 %v4473_v1, %v1789_v5  ;;  %4480 = vpow2.f32 %v3621_v27 }
 0x3c0   :  { %v4475_v32 = vpop.eup %4474  ;;  %4482 = vpow2.f32 %v3622_v21 }
 0x3c1   :  { %v1792_v2 = vmul.f32 %v4475_v32, %v1790_v37  ;;  %v1795_v29 = vadd.f32 %v1793_v57, %v1791_v41  ;;  %v1879_v37 = vadd.f32 %v6022_v40, %v5660_v43  ;;  %v7016_v41 = vld [vmem:[#allocation78_spill] sm:$0xff] }
 0x3c3   :  { %v1796_v22 = vadd.f32 %v1794_v38, %v1792_v2  ;;  %v6041_v34 = vsel %vm1934_vm13, %v1795_v29, %v5839_v16 }
 0x3c5   :  { %v6046_v14 = vsel %vm1935_vm14, %v1796_v22, %v5844_v25 }
 0x3c6   :  { %v4477_v1 = vpop.eup %4476  ;;  %v1982_v5 = vpack.c.bf16 %v6046_v14, %v6041_v34 }
 0x3c7   :  { %v1890_v7 = vadd.f32 1.0, %v4477_v1 }
 0x3c8   :  { %v4479_v48 = vpop.eup %4478  ;;  %2016 = vmatmul.mubr.bf16.vlgmr.msra.gmra.mrb[12].mxu0 %v1982_v5  ;;  %3983 = vmatmul.mubr.bf16.vlgmr.msra.gmra.mrb[68].mxu1 %v1982_v5 }
 0x3c9   :  { %4484 = vrcp.f32 %v1890_v7  ;;  %v1891_v0 = vadd.f32 1.0, %v4479_v48  ;;  %2111 = vmatpush1.bf16.msra.mxu0 %v5848_v24  ;;  %3987 = vmatpush3.bf16.msra.mxu1 %v5851_v44  ;;  %v4481_v29 = vpop.eup %4480 }
 0x3ca   :  { %2112 = vmatprep.subr.bf16.mxu0 %v5854_v55  ;;  %3988 = vmatprep.subr.bf16.mxu1 %v6968_v11  ;;  %v4483_v16 = vpop.eup %4482  ;;  %v1904_v25 = vadd.f32 1.0, %v4481_v29 }
 0x3cb   :  { %4486 = vrcp.f32 %v1891_v0  ;;  %2142 = vmatprep.mubr.bf16.mxu0 %v6969_v18  ;;  %4002 = vmatprep.mubr.msk.bf16.mxu1 %vm4895_vm7, %v6968_v11  ;;  %v1905_v17 = vadd.f32 1.0, %v4483_v16 }
 0x3cc   :  { %4488 = vrcp.f32 %v1904_v25 }
 0x3cd   :  { %2113 = vmatpush1.bf16.msra.mxu0 %v5861_v45  ;;  %3989 = vmatpush3.bf16.msra.mxu1 %v5864_v61  ;;  %4490 = vrcp.f32 %v1905_v17  ;;  %v6095_v17 = vpop.permute.xlu1 %1946 }
 0x3ce   :  { %2114 = vmatprep.subr.bf16.mxu0 %v5867_v3  ;;  %3990 = vmatprep.subr.bf16.mxu1 %v6968_v11  ;;  %7019 = vst [vmem:[#allocation77_spill] sm:$0xff] %v6095_v17  ;;  %vm1949_vm0 = vcmp.eq.s32.totalorder %v6095_v17, 1  ;;  %v7044_v17 = vld [vmem:[#allocation50_spill] sm:$0xff] }
 0x3d1   :  { %2115 = vmatpush1.bf16.msra.mxu0 %v5873_v12  ;;  %3991 = vmatpush3.bf16.msra.mxu1 %v5876_v19 }
 0x3d2   :  { %2116 = vmatprep.subr.bf16.mxu0 %v5884_v31  ;;  %3992 = vmatprep.subr.bf16.mxu1 %v6968_v11 }
 0x3d3   :  { %v4485_v4 = vpop.eup %4484 }
 0x3d4   :  { %v1910_v57 = vmul.f32 %v4485_v4, %v1876_v15  ;;  %v6093_v15 = vpop.permute.xlu0 %1943 }
 0x3d5   :  { %v4487_v27 = vpop.eup %4486  ;;  %2117 = vmatpush1.bf16.msra.mxu0 %v5892_v8  ;;  %3993 = vmatpush3.bf16.msra.mxu1 %v5895_v46  ;;  %7018 = vst [vmem:[#allocation54_spill] sm:$0xff] %v6093_v15  ;;  %vm1948_vm15 = vcmp.eq.s32.totalorder %v6093_v15, 1 }
 0x3d6   :  { %v1912_v32 = vadd.f32 %v1910_v57, %v7016_v41  ;;  %v1911_v38 = vmul.f32 %v4487_v27, %v1879_v37  ;;  %2118 = vmatprep.subr.bf16.mxu0 %v5899_v33  ;;  %3994 = vmatprep.subr.bf16.mxu1 %v6968_v11  ;;  %v4489_v40 = vpop.eup %4488  ;;  %v7030_v27 = vld [vmem:[#allocation84_spill] sm:$0xff]  ;;  %v7031_v41 = vld [vmem:[#allocation15_spill] sm:$0xff] }
 0x3d7   :  { %v4491_v2 = vpop.eup %4490  ;;  %v1916_v22 = vsub.f32 1.0, %v4489_v40  ;;  %v1920_v48 = vmul.f32 %v4489_v40, %v5946_v49 }
 0x3d8   :  { %4492 = vtanh.f32 %v1912_v32  ;;  %v1913_v21 = vadd.f32 %v1911_v38, %v7017_v13  ;;  %v1917_v5 = vsub.f32 1.0, %v4491_v2  ;;  %v1921_v16 = vmul.f32 %v4491_v2, %v5953_v30  ;;  %v7032_v32 = vld [vmem:[#allocation100_spill] sm:$0xff]  ;;  %v7033_v38 = vld [vmem:[#allocation101_spill] sm:$0xff] }
 0x3d9   :  { %2119 = vmatpush1.bf16.msra.mxu0 %v5903_v23  ;;  %3995 = vmatpush3.bf16.msra.mxu1 %v5906_v28  ;;  %v7034_v13 = vld [vmem:[#allocation16_spill] sm:$0xff] }
 0x3da   :  { %4494 = vtanh.f32 %v1913_v21  ;;  %2120 = vmatprep.subr.bf16.mxu0 %v5909_v36  ;;  %3996 = vmatprep.subr.bf16.mxu1 %v6968_v11  ;;  %v7035_v21 = vld [vmem:[#allocation17_spill] sm:$0xff] }
 0x3dd   :  { %2121 = vmatpush1.bf16.msra.mxu0 %v5913_v9  ;;  %3997 = vmatpush3.bf16.msra.mxu1 %v5916_v6 }
 0x3de   :  { %2122 = vmatprep.subr.bf16.mxu0 %v5919_v10  ;;  %3998 = vmatprep.subr.bf16.mxu1 %v6968_v11 }
 0x3e1   :  { %2123 = vmatpush1.bf16.msra.mxu0 %v5923_v62  ;;  %3999 = vmatpush3.bf16.msra.mxu1 %v5926_v47 }
 0x3e2   :  { %v4493_v1 = vpop.eup %4492  ;;  %2124 = vmatprep.subr.bf16.mxu0 %v5929_v26  ;;  %4000 = vmatprep.subr.bf16.mxu1 %v6968_v11 }
 0x3e3   :  { %v1918_v7 = vmul.f32 %v4493_v1, %v1916_v22  ;;  %v7036_v22 = vld [vmem:[#allocation88_spill] sm:$0xff] }
 0x3e4   :  { %v4495_v0 = vpop.eup %4494 }
 0x3e5   :  { %2125 = vmatpush1.bf16.msra.mxu0 %v5938_v50  ;;  %4001 = vmatpush3.bf16.msra.mxu1 %v5941_v39  ;;  %v1919_v29 = vmul.f32 %v4495_v0, %v1917_v5  ;;  %v1922_v25 = vadd.f32 %v1920_v48, %v1918_v7 }
 0x3e6   :  { %2265 = vmatprep.subr.bf16.mxu0 %v5733_v51  ;;  %4006 = vmatprep.subr.bf16.mxu1 %v6968_v11 }
 0x3e7   :  { %v1923_v4 = vadd.f32 %v1921_v16, %v1919_v29  ;;  %v6102_v57 = vsel %vm1948_vm15, %v1922_v25, %v5946_v49  ;;  %v7020_v49 = vld [vmem:[#allocation98_spill] sm:$0xff] }
 0x3e9   :  { %v6107_v51 = vsel %vm1949_vm0, %v1923_v4, %v5953_v30  ;;  %v7029_v30 = vld [vmem:[#allocation82_spill] sm:$0xff] }
 0x3ea   :  { %v2109_v37 = vpack.c.bf16 %v6107_v51, %v6102_v57 }
 0x3ec   :  { %2143 = vmatmul.mubr.bf16.vlgmr.msra.gmra.mrb[64].mxu0 %v2109_v37  ;;  %4003 = vmatmul.mubr.bf16.vlgmr.msra.gmra.mrb[72].mxu1 %v2109_v37  ;;  %v7037_v37 = vld [vmem:[#allocation92_spill] sm:$0xff] }
 0x3ed   :  { %2266 = vmatpush1.bf16.msra.mxu0 %v5741_v52  ;;  %4007 = vmatpush3.bf16.msra.mxu1 %v5744_v53  ;;  %v7021_v52 = vld [vmem:[#allocation33_spill] sm:$0xff]  ;;  %v7022_v53 = vld [vmem:[#allocation99_spill] sm:$0xff] }
 0x3ee   :  { %2267 = vmatprep.subr.bf16.mxu0 %v5747_v54  ;;  %4008 = vmatprep.subr.bf16.mxu1 %v6968_v11  ;;  %v7023_v54 = vld [vmem:[#allocation62_spill] sm:$0xff] }
 0x3ef   :  { %2297 = vmatprep.mubr.bf16.mxu0 %v6969_v18  ;;  %4022 = vmatprep.mubr.msk.bf16.mxu1 %vm4895_vm7, %v6968_v11 }
 0x3f1   :  { %2268 = vmatpush1.bf16.msra.mxu0 %v5754_v56  ;;  %4009 = vmatpush3.bf16.msra.mxu1 %v5757_v58  ;;  %v7024_v56 = vld [vmem:[#allocation81_spill] sm:$0xff] }
 0x3f2   :  { %2269 = vmatprep.subr.bf16.mxu0 %v5760_v59  ;;  %4010 = vmatprep.subr.bf16.mxu1 %v6968_v11  ;;  %v7025_v58 = vld [vmem:[#allocation13_spill] sm:$0xff]  ;;  %v7026_v59 = vld [vmem:[#allocation66_spill] sm:$0xff] }
 0x3f5   :  { %2270 = vmatpush1.bf16.msra.mxu0 %v5764_v60  ;;  %4011 = vmatpush3.bf16.msra.mxu1 %v5767_v63  ;;  %v7027_v60 = vld [vmem:[#allocation83_spill] sm:$0xff]  ;;  %v7028_v63 = vld [vmem:[#allocation14_spill] sm:$0xff] }
 0x3f6   :  { %2271 = vmatprep.subr.bf16.mxu0 %v7020_v49  ;;  %4012 = vmatprep.subr.bf16.mxu1 %v6968_v11 }
 0x3f9   :  { %2272 = vmatpush1.bf16.msra.mxu0 %v7021_v52  ;;  %4013 = vmatpush3.bf16.msra.mxu1 %v7022_v53 }
 0x3fa   :  { %2273 = vmatprep.subr.bf16.mxu0 %v7023_v54  ;;  %4014 = vmatprep.subr.bf16.mxu1 %v6968_v11 }
 0x3fd   :  { %2274 = vmatpush1.bf16.msra.mxu0 %v7024_v56  ;;  %4015 = vmatpush3.bf16.msra.mxu1 %v7025_v58 }
 0x3fe   :  { %2275 = vmatprep.subr.bf16.mxu0 %v7026_v59  ;;  %4016 = vmatprep.subr.bf16.mxu1 %v6968_v11 }
 0x401   :  { %2276 = vmatpush1.bf16.msra.mxu0 %v7027_v60  ;;  %4017 = vmatpush3.bf16.msra.mxu1 %v7028_v63 }
 0x402   :  { %2277 = vmatprep.subr.bf16.mxu0 %v7029_v30  ;;  %4018 = vmatprep.subr.bf16.mxu1 %v6968_v11 }
 0x405   :  { %2278 = vmatpush1.bf16.msra.mxu0 %v7030_v27  ;;  %4019 = vmatpush3.bf16.msra.mxu1 %v7031_v41 }
 0x406   :  { %2279 = vmatprep.subr.bf16.mxu0 %v7032_v32  ;;  %4020 = vmatprep.subr.bf16.mxu1 %v6968_v11 }
 0x409   :  { %2280 = vmatpush1.bf16.msra.mxu0 %v7033_v38  ;;  %4021 = vmatpush3.bf16.msra.mxu1 %v7034_v13 }
 0x40a   :  { %2392 = vmatprep.subr.bf16.mxu0 %v7035_v21  ;;  %4026 = vmatprep.subr.bf16.mxu1 %v6968_v11 }
 0x49b   :  { %v2017_v40 = vpop.f32.mrb[12].mxu0  ;;  %v2060_v2 = vpop.f32.mrb[68].mxu1 }
 0x49c   :  { %v4193_v1 = vadd.f32 %v7036_v22, %v2017_v40  ;;  %v2019_v5 = vpop.f32.mrb[13].mxu0  ;;  %v3984_v7 = vpop.f32.mrb[69].mxu1 }
 0x49d   :  { %v2021_v48 = vpop.f32.mrb[14].mxu0  ;;  %v2063_v0 = vpop.f32.mrb[70].mxu1  ;;  %v4195_v49 = vadd.f32 %v7037_v37, %v2019_v5  ;;  %v2061_v5 = vadd.f32 %v2060_v2, %v7038_v42 }
 0x49e   :  { %v3623_v29 = vmul.f32 -1.442695, %v4193_v1  ;;  %v4197_v16 = vadd.f32 %v7036_v22, %v2021_v48  ;;  %v2023_v25 = vpop.f32.mrb[15].mxu0  ;;  %v3985_v4 = vpop.f32.mrb[71].mxu1 }
 0x49f   :  { %v4199_v58 = vadd.f32 %v7037_v37, %v2023_v25  ;;  %v3625_v63 = vmul.f32 -1.442695, %v4195_v49  ;;  %v2064_v25 = vadd.f32 %v2063_v0, %v7038_v42 }
 0x4a0   :  { %4496 = vpow2.f32 %v3623_v29  ;;  %v3624_v53 = vmul.f32 -1.442695, %v4197_v16 }
 0x4a1   :  { %v3626_v41 = vmul.f32 -1.442695, %v4199_v58 }
 0x4a2   :  { %4498 = vpow2.f32 %v3624_v53  ;;  %v7039_v53 = vld [vmem:[#allocation39_spill] sm:$0xff] }
 0x4a3   :  { %4500 = vpow2.f32 %v3625_v63 }
 0x4a4   :  { %4502 = vpow2.f32 %v3626_v41  ;;  %v7040_v41 = vld [vmem:[#allocation41_spill] sm:$0xff] }
 0x4aa   :  { %v4497_v13 = vpop.eup %4496 }
 0x4ab   :  { %v2075_v21 = vadd.f32 1.0, %v4497_v13 }
 0x4ac   :  { %v4499_v40 = vpop.eup %4498 }
 0x4ad   :  { %4504 = vrcp.f32 %v2075_v21  ;;  %v2076_v1 = vadd.f32 1.0, %v4499_v40  ;;  %v4501_v7 = vpop.eup %4500 }
 0x4ae   :  { %v4503_v48 = vpop.eup %4502  ;;  %v2089_v4 = vadd.f32 1.0, %v4501_v7 }
 0x4af   :  { %4506 = vrcp.f32 %v2076_v1  ;;  %v2090_v29 = vadd.f32 1.0, %v4503_v48  ;;  %v7041_v48 = vld [vmem:[#allocation91_spill] sm:$0xff] }
 0x4b0   :  { %4508 = vrcp.f32 %v2089_v4 }
 0x4b1   :  { %4510 = vrcp.f32 %v2090_v29 }
 0x4b7   :  { %v4505_v16 = vpop.eup %4504 }
 0x4b8   :  { %v2095_v35 = vmul.f32 %v4505_v16, %v2061_v5 }
 0x4b9   :  { %v4507_v49 = vpop.eup %4506 }
 0x4ba   :  { %v2097_v58 = vadd.f32 %v2095_v35, %v7039_v53  ;;  %v2096_v63 = vmul.f32 %v4507_v49, %v2064_v25  ;;  %v4509_v16 = vpop.eup %4508  ;;  %v7042_v35 = vld [vmem:[#allocation46_spill] sm:$0xff] }
 0x4bb   :  { %v2101_v15 = vsub.f32 1.0, %v4509_v16 }
 0x4bc   :  { %4512 = vtanh.f32 %v2097_v58  ;;  %v2098_v13 = vadd.f32 %v2096_v63, %v7040_v41  ;;  %v7043_v58 = vld [vmem:[#allocation73_spill] sm:$0xff] }
 0x4be   :  { %4514 = vtanh.f32 %v2098_v13  ;;  %v4511_v13 = vpop.eup %4510 }
 0x4bf   :  { %v2144_v21 = vpop.f32.mrb[64].mxu0  ;;  %v6154_v40 = vpop.f32.mrb[72].mxu1 }
 0x4c0   :  { %v2145_v2 = vadd.f32 %v2144_v21, %v5619_v20  ;;  %v2146_v1 = vpop.f32.mrb[65].mxu0  ;;  %v4004_v7 = vpop.f32.mrb[73].mxu1 }
 0x4c1   :  { %v2147_v4 = vadd.f32 %v2146_v1, %v7041_v48  ;;  %v2148_v5 = vpop.f32.mrb[66].mxu0  ;;  %v6158_v0 = vpop.f32.mrb[74].mxu1  ;;  %v7045_v1 = vld [vmem:[#allocation75_spill] sm:$0xff] }
 0x4c2   :  { %v2194_v25 = vadd.f32 %v2145_v2, %v7042_v35  ;;  %v2149_v29 = vadd.f32 %v2148_v5, %v5619_v20  ;;  %v2150_v49 = vpop.f32.mrb[67].mxu0  ;;  %v4005_v53 = vpop.f32.mrb[75].mxu1  ;;  %v2105_v2 = vmul.f32 %v4509_v16, %v6041_v34  ;;  %v2102_v35 = vsub.f32 1.0, %v4511_v13 }
 0x4c3   :  { %v2208_v63 = vadd.f32 %v2147_v4, %v7043_v58  ;;  %v2151_v41 = vadd.f32 %v2150_v49, %v7041_v48  ;;  %v2106_v4 = vmul.f32 %v4511_v13, %v6046_v14 }
 0x4c4   :  { %v3627_v21 = vmul.f32 -1.442695, %v2194_v25  ;;  %v2195_v7 = vadd.f32 %v2149_v29, %v7044_v17  ;;  %v6168_v25 = vpop.permute.xlu0 %2241  ;;  %v6170_v17 = vpop.permute.xlu1 %2244 }
 0x4c5   :  { %v2209_v42 = vadd.f32 %v2151_v41, %v7045_v1  ;;  %v3629_v53 = vmul.f32 -1.442695, %v2208_v63  ;;  %vm2246_vm1 = vcmp.eq.s32.totalorder %v6168_v25, 1  ;;  %vm2247_vm4 = vcmp.eq.s32.totalorder %v6170_v17, 1  ;;  %v6464_v25 = vld [vmem:[#allocation3 + $0x48] ss:$12 sps:$4 sm:$0xff]  }
 0x4c6   :  { %v4513_v37 = vpop.eup %4512  ;;  %4516 = vpow2.f32 %v3627_v21  ;;  %v3628_v22 = vmul.f32 -1.442695, %v2195_v7  ;;  %7071 = vst [vmem:[#allocation83_spill] sm:$0xff] %v6464_v25  ;;  %v6468_v17 = vld [vmem:[#allocation3 + $0x64] ss:$12 sps:$4 sm:$0xff]  }
 0x4c7   :  { %v2103_v5 = vmul.f32 %v4513_v37, %v2101_v15  ;;  %v3630_v29 = vmul.f32 -1.442695, %v2209_v42  ;;  %7072 = vst [vmem:[#allocation14_spill] sm:$0xff] %v6468_v17 }
 0x4c8   :  { %v4515_v20 = vpop.eup %4514  ;;  %4518 = vpow2.f32 %v3628_v22 }
 0x4c9   :  { %v2104_v49 = vmul.f32 %v4515_v20, %v2102_v35  ;;  %v2107_v58 = vadd.f32 %v2105_v2, %v2103_v5  ;;  %4520 = vpow2.f32 %v3629_v53  ;;  %v6249_v35 = vld [vmem:[#allocation3] ss:$12 sps:$4 sm:$0xff]   ;;  %v6252_v5 = vld [vmem:[#allocation3 + $0x8] ss:$12 sps:$4 sm:$0xff]  }
 0x4ca   :  { %4522 = vpow2.f32 %v3630_v29  ;;  %v6268_v53 = vld [vmem:[#allocation3 + $0x34] ss:$12 sps:$4 sm:$0xff]   ;;  %v6278_v29 = vld [vmem:[#allocation3 + $0x4c] ss:$12 sps:$4 sm:$0xff]  }
 0x4cb   :  { %v2108_v41 = vadd.f32 %v2106_v4, %v2104_v49  ;;  %v6177_v15 = vsel %vm2246_vm1, %v2107_v58, %v6041_v34  ;;  %v6265_v4 = vld [vmem:[#allocation3 + $0x20] ss:$12 sps:$4 sm:$0xff]   ;;  %v6272_v49 = vld [vmem:[#allocation3 + $0x30] ss:$12 sps:$4 sm:$0xff]   ;;  %v6275_v58 = vld [vmem:[#allocation3 + $0x38] ss:$12 sps:$4 sm:$0xff]  }
 0x4cc   :  { %7049 = vst [vmem:[#allocation79_spill] sm:$0xff] %v6275_v58  ;;  %7050 = vst [vmem:[#allocation78_spill] sm:$0xff] %v6278_v29 }
 0x4cd   :  { %v6182_v20 = vsel %vm2247_vm4, %v2108_v41, %v6046_v14  ;;  %v6283_v41 = vld [vmem:[#allocation3 + $0x50] ss:$12 sps:$4 sm:$0xff]  }
 0x4ce   :  { %v2264_v22 = vpack.c.bf16 %v6182_v20, %v6177_v15  ;;  %7051 = vst [vmem:[#allocation80_spill] sm:$0xff] %v6283_v41 }
 0x4d0   :  { %v4517_v42 = vpop.eup %4516  ;;  %2298 = vmatmul.mubr.bf16.vlgmr.msra.gmra.mrb[16].mxu0 %v2264_v22  ;;  %4023 = vmatmul.mubr.bf16.vlgmr.msra.gmra.mrb[76].mxu1 %v2264_v22  ;;  %v6289_v22 = vld [vmem:[#allocation3 + $0x68] ss:$12 sps:$4 sm:$0xff]  }
 0x4d1   :  { %v2202_v37 = vadd.f32 1.0, %v4517_v42  ;;  %2393 = vmatpush1.bf16.msra.mxu0 %v5848_v24  ;;  %4027 = vmatpush3.bf16.msra.mxu1 %v5851_v44  ;;  %7052 = vst [vmem:[#allocation98_spill] sm:$0xff] %v6289_v22 }
 0x4d2   :  { %v4519_v16 = vpop.eup %4518  ;;  %2394 = vmatprep.subr.bf16.mxu0 %v5854_v55  ;;  %4028 = vmatprep.subr.bf16.mxu1 %v6968_v11 }
 0x4d3   :  { %4524 = vrcp.f32 %v2202_v37  ;;  %v2203_v34 = vadd.f32 1.0, %v4519_v16  ;;  %2424 = vmatprep.mubr.bf16.mxu0 %v6969_v18  ;;  %4042 = vmatprep.mubr.msk.bf16.mxu1 %vm4895_vm7, %v6968_v11  ;;  %v4521_v24 = vpop.eup %4520 }
 0x4d4   :  { %v4523_v44 = vpop.eup %4522  ;;  %v2216_v55 = vadd.f32 1.0, %v4521_v24 }
 0x4d5   :  { %4526 = vrcp.f32 %v2203_v34  ;;  %2395 = vmatpush1.bf16.msra.mxu0 %v5861_v45  ;;  %4029 = vmatpush3.bf16.msra.mxu1 %v5864_v61  ;;  %v2188_v45 = vadd.f32 %v6154_v40, %v5660_v43  ;;  %v2217_v14 = vadd.f32 1.0, %v4523_v44 }
 0x4d6   :  { %2396 = vmatprep.subr.bf16.mxu0 %v5867_v3  ;;  %4030 = vmatprep.subr.bf16.mxu1 %v6968_v11  ;;  %4528 = vrcp.f32 %v2216_v55 }
 0x4d7   :  { %4530 = vrcp.f32 %v2217_v14 }
 0x4d9   :  { %2397 = vmatpush1.bf16.msra.mxu0 %v5873_v12  ;;  %4031 = vmatpush3.bf16.msra.mxu1 %v5876_v19  ;;  %v2191_v12 = vadd.f32 %v6158_v0, %v5660_v43  ;;  %v6226_v0 = vld [vmem:[#allocation3 + $0x4] ss:$12 sps:$4 sm:$0xff]  }
 0x4da   :  { %2398 = vmatprep.subr.bf16.mxu0 %v5884_v31  ;;  %4032 = vmatprep.subr.bf16.mxu1 %v6968_v11  ;;  %v7046_v31 = vld [vmem:[#allocation74_spill] sm:$0xff]  ;;  %7048 = vst [vmem:[#allocation58_spill] sm:$0xff] %v6226_v0 }
 0x4dd   :  { %v4525_v61 = vpop.eup %4524  ;;  %2399 = vmatpush1.bf16.msra.mxu0 %v5892_v8  ;;  %4033 = vmatpush3.bf16.msra.mxu1 %v5895_v46  ;;  %v7047_v8 = vld [vmem:[#allocation76_spill] sm:$0xff] }
 0x4de   :  { %v2222_v3 = vmul.f32 %v4525_v61, %v2188_v45  ;;  %2400 = vmatprep.subr.bf16.mxu0 %v5899_v33  ;;  %4034 = vmatprep.subr.bf16.mxu1 %v6968_v11  ;;  %v7058_v45 = vld [vmem:[#allocation92_spill] sm:$0xff] }
 0x4df   :  { %v4527_v19 = vpop.eup %4526 }
 0x4e0   :  { %v2224_v63 = vadd.f32 %v2222_v3, %v7046_v31  ;;  %v2223_v13 = vmul.f32 %v4527_v19, %v2191_v12  ;;  %v4529_v33 = vpop.eup %4528 }
 0x4e1   :  { %2401 = vmatpush1.bf16.msra.mxu0 %v5903_v23  ;;  %4035 = vmatpush3.bf16.msra.mxu1 %v5906_v28  ;;  %v4531_v23 = vpop.eup %4530  ;;  %v2228_v28 = vsub.f32 1.0, %v4529_v33 }
 0x4e2   :  { %4532 = vtanh.f32 %v2224_v63  ;;  %v2225_v46 = vadd.f32 %v2223_v13, %v7047_v8  ;;  %2402 = vmatprep.subr.bf16.mxu0 %v5909_v36  ;;  %4036 = vmatprep.subr.bf16.mxu1 %v6968_v11  ;;  %v2229_v40 = vsub.f32 1.0, %v4531_v23  ;;  %v2233_v21 = vmul.f32 %v4531_v23, %v6107_v51 }
 0x4e4   :  { %4534 = vtanh.f32 %v2225_v46 }
 0x4e5   :  { %2403 = vmatpush1.bf16.msra.mxu0 %v5913_v9  ;;  %4037 = vmatpush3.bf16.msra.mxu1 %v5916_v6  ;;  %v2232_v6 = vmul.f32 %v4529_v33, %v6102_v57 }
 0x4e6   :  { %2404 = vmatprep.subr.bf16.mxu0 %v5919_v10  ;;  %4038 = vmatprep.subr.bf16.mxu1 %v6968_v11 }
 0x4e9   :  { %2405 = vmatpush1.bf16.msra.mxu0 %v5923_v62  ;;  %4039 = vmatpush3.bf16.msra.mxu1 %v5926_v47  ;;  %v6230_v62 = vpop.permute.xlu0 %2255  ;;  %v6232_v47 = vpop.permute.xlu1 %2258 }
 0x4ea   :  { %2406 = vmatprep.subr.bf16.mxu0 %v5929_v26  ;;  %4040 = vmatprep.subr.bf16.mxu1 %v6968_v11  ;;  %vm2260_vm8 = vcmp.eq.s32.totalorder %v6230_v62, 1  ;;  %vm2261_vm3 = vcmp.eq.s32.totalorder %v6232_v47, 1  ;;  %v6354_v62 = vld [vmem:[#allocation6 + $0x1c] ss:$12 sps:$4 sm:$0xff]  }
 0x4ec   :  { %v4533_v36 = vpop.eup %4532 }
 0x4ed   :  { %2407 = vmatpush1.bf16.msra.mxu0 %v5938_v50  ;;  %4041 = vmatpush3.bf16.msra.mxu1 %v5941_v39  ;;  %v2230_v9 = vmul.f32 %v4533_v36, %v2228_v28  ;;  %v7059_v28 = vld [vmem:[#allocation93_spill] sm:$0xff] }
 0x4ee   :  { %v4535_v10 = vpop.eup %4534  ;;  %2523 = vmatprep.subr.bf16.mxu0 %v6226_v0  ;;  %4046 = vmatprep.subr.bf16.mxu1 %v6968_v11 }
 0x4ef   :  { %v2231_v26 = vmul.f32 %v4535_v10, %v2229_v40  ;;  %v2234_v50 = vadd.f32 %v2232_v6, %v2230_v9 }
 0x4f1   :  { %v2235_v7 = vadd.f32 %v2233_v21, %v2231_v26  ;;  %v6240_v39 = vsel %vm2260_vm8, %v2234_v50, %v6102_v57  ;;  %v6255_v57 = vld [vmem:[#allocation3 + $0x1c] ss:$12 sps:$4 sm:$0xff]  }
 0x4f2   :  { %v7060_v21 = vld [vmem:[#allocation44_spill] sm:$0xff] }
 0x4f3   :  { %v6245_v1 = vsel %vm2261_vm3, %v2235_v7, %v6107_v51  ;;  %v6262_v51 = vld [vmem:[#allocation3 + $0x18] ss:$12 sps:$4 sm:$0xff]  }
 0x4f4   :  { %v2391_v2 = vpack.c.bf16 %v6245_v1, %v6240_v39 }
 0x4f6   :  { %2425 = vmatmul.mubr.bf16.vlgmr.msra.gmra.mrb[68].mxu0 %v2391_v2  ;;  %4043 = vmatmul.mubr.bf16.vlgmr.msra.gmra.mrb[80].mxu1 %v2391_v2  ;;  %v7061_v2 = vld [vmem:[#allocation48_spill] sm:$0xff] }
 0x4f7   :  { %2524 = vmatpush1.bf16.msra.mxu0 %v6249_v35  ;;  %4047 = vmatpush3.bf16.msra.mxu1 %v6252_v5 }
 0x4f8   :  { %2525 = vmatprep.subr.bf16.mxu0 %v6255_v57  ;;  %4048 = vmatprep.subr.bf16.mxu1 %v6968_v11 }
 0x4f9   :  { %2555 = vmatprep.mubr.bf16.mxu0 %v6969_v18  ;;  %4062 = vmatprep.mubr.msk.bf16.mxu1 %vm4895_vm7, %v6968_v11 }
 0x4fb   :  { %2526 = vmatpush1.bf16.msra.mxu0 %v6262_v51  ;;  %4049 = vmatpush3.bf16.msra.mxu1 %v6265_v4 }
 0x4fc   :  { %2527 = vmatprep.subr.bf16.mxu0 %v6268_v53  ;;  %4050 = vmatprep.subr.bf16.mxu1 %v6968_v11 }
 0x4ff   :  { %2528 = vmatpush1.bf16.msra.mxu0 %v6272_v49  ;;  %4051 = vmatpush3.bf16.msra.mxu1 %v6275_v58 }
 0x500   :  { %2529 = vmatprep.subr.bf16.mxu0 %v6278_v29  ;;  %4052 = vmatprep.subr.bf16.mxu1 %v6968_v11 }
 0x503   :  { %2530 = vmatpush1.bf16.msra.mxu0 %v7021_v52  ;;  %4053 = vmatpush3.bf16.msra.mxu1 %v6283_v41  ;;  %v6295_v52 = vld [vmem:[#allocation3 + $0x80] ss:$12 sps:$4 sm:$0xff]  }
 0x504   :  { %2531 = vmatprep.subr.bf16.mxu0 %v7023_v54  ;;  %4054 = vmatprep.subr.bf16.mxu1 %v6968_v11  ;;  %7053 = vst [vmem:[#allocation33_spill] sm:$0xff] %v6295_v52  ;;  %v6301_v54 = vld [vmem:[#allocation3 + $0x98] ss:$12 sps:$4 sm:$0xff]  }
 0x505   :  { %7054 = vst [vmem:[#allocation99_spill] sm:$0xff] %v6301_v54 }
 0x507   :  { %2532 = vmatpush1.bf16.msra.mxu0 %v7024_v56  ;;  %4055 = vmatpush3.bf16.msra.mxu1 %v6289_v22  ;;  %v6307_v56 = vld [vmem:[#allocation3 + $0xb0] ss:$12 sps:$4 sm:$0xff]  }
 0x508   :  { %2533 = vmatprep.subr.bf16.mxu0 %v7026_v59  ;;  %4056 = vmatprep.subr.bf16.mxu1 %v6968_v11  ;;  %7055 = vst [vmem:[#allocation62_spill] sm:$0xff] %v6307_v56  ;;  %v6310_v59 = vld [vmem:[#allocation6 + $0x4] ss:$12 sps:$4 sm:$0xff]  }
 0x509   :  { %7056 = vst [vmem:[#allocation81_spill] sm:$0xff] %v6310_v59 }
 0x50b   :  { %2534 = vmatpush1.bf16.msra.mxu0 %v7027_v60  ;;  %4057 = vmatpush3.bf16.msra.mxu1 %v6295_v52 }
 0x50c   :  { %2535 = vmatprep.subr.bf16.mxu0 %v7029_v30  ;;  %4058 = vmatprep.subr.bf16.mxu1 %v6968_v11 }
 0x50f   :  { %2536 = vmatpush1.bf16.msra.mxu0 %v7030_v27  ;;  %4059 = vmatpush3.bf16.msra.mxu1 %v6301_v54  ;;  %v7057_v27 = vld [vmem:[#allocation88_spill] sm:$0xff] }
 0x510   :  { %2537 = vmatprep.subr.bf16.mxu0 %v7032_v32  ;;  %4060 = vmatprep.subr.bf16.mxu1 %v6968_v11 }
 0x513   :  { %2538 = vmatpush1.bf16.msra.mxu0 %v7033_v38  ;;  %4061 = vmatpush3.bf16.msra.mxu1 %v6307_v56 }
 0x514   :  { %2650 = vmatprep.subr.bf16.mxu0 %v6310_v59  ;;  %4066 = vmatprep.subr.bf16.mxu1 %v6968_v11 }
 0x5a3   :  { %v2299_v60 = vpop.f32.mrb[16].mxu0  ;;  %v2342_v30 = vpop.f32.mrb[76].mxu1 }
 0x5a4   :  { %v4201_v42 = vadd.f32 %v7057_v27, %v2299_v60  ;;  %v2301_v37 = vpop.f32.mrb[17].mxu0  ;;  %v4024_v32 = vpop.f32.mrb[77].mxu1  ;;  %v2343_v36 = vadd.f32 %v2342_v30, %v7059_v28  ;;  %v7062_v30 = vld [vmem:[#allocation87_spill] sm:$0xff] }
 0x5a5   :  { %v2303_v16 = vpop.f32.mrb[18].mxu0  ;;  %v2345_v34 = vpop.f32.mrb[78].mxu1  ;;  %v4203_v14 = vadd.f32 %v7058_v45, %v2301_v37 }
 0x5a6   :  { %v3631_v24 = vmul.f32 -1.442695, %v4201_v42  ;;  %v4205_v38 = vadd.f32 %v7057_v27, %v2303_v16  ;;  %v2305_v44 = vpop.f32.mrb[19].mxu0  ;;  %v4025_v55 = vpop.f32.mrb[79].mxu1  ;;  %v2346_v10 = vadd.f32 %v2345_v34, %v7059_v28 }
 0x5a7   :  { %v4207_v3 = vadd.f32 %v7058_v45, %v2305_v44  ;;  %v3633_v12 = vmul.f32 -1.442695, %v4203_v14 }
 0x5a8   :  { %4536 = vpow2.f32 %v3631_v24  ;;  %v3632_v61 = vmul.f32 -1.442695, %v4205_v38 }
 0x5a9   :  { %v3634_v19 = vmul.f32 -1.442695, %v4207_v3 }
 0x5aa   :  { %4538 = vpow2.f32 %v3632_v61  ;;  %v7063_v61 = vld [vmem:[#allocation40_spill] sm:$0xff] }
 0x5ab   :  { %4540 = vpow2.f32 %v3633_v12 }
 0x5ac   :  { %4542 = vpow2.f32 %v3634_v19 }
 0x5b2   :  { %v4537_v31 = vpop.eup %4536 }
 0x5b3   :  { %v2357_v63 = vadd.f32 1.0, %v4537_v31 }
 0x5b4   :  { %v4539_v13 = vpop.eup %4538 }
 0x5b5   :  { %4544 = vrcp.f32 %v2357_v63  ;;  %v2358_v8 = vadd.f32 1.0, %v4539_v13  ;;  %v4541_v46 = vpop.eup %4540  ;;  %v7064_v13 = vld [vmem:[#allocation67_spill] sm:$0xff] }
 0x5b6   :  { %v4543_v33 = vpop.eup %4542  ;;  %v2371_v23 = vadd.f32 1.0, %v4541_v46 }
 0x5b7   :  { %4546 = vrcp.f32 %v2358_v8  ;;  %v2372_v40 = vadd.f32 1.0, %v4543_v33 }
 0x5b8   :  { %4548 = vrcp.f32 %v2371_v23 }
 0x5b9   :  { %4550 = vrcp.f32 %v2372_v40 }
 0x5bf   :  { %v4545_v9 = vpop.eup %4544 }
 0x5c0   :  { %v2377_v6 = vmul.f32 %v4545_v9, %v2343_v36  ;;  %v7065_v36 = vld [vmem:[#allocation42_spill] sm:$0xff] }
 0x5c1   :  { %v4547_v26 = vpop.eup %4546 }
 0x5c2   :  { %v2379_v50 = vadd.f32 %v2377_v6, %v7060_v21  ;;  %v2378_v7 = vmul.f32 %v4547_v26, %v2346_v10  ;;  %v4549_v32 = vpop.eup %4548  ;;  %v7066_v10 = vld [vmem:[#allocation70_spill] sm:$0xff] }
 0x5c3   :  { %v4551_v14 = vpop.eup %4550  ;;  %v2383_v63 = vsub.f32 1.0, %v4549_v32  ;;  %v2387_v9 = vmul.f32 %v4549_v32, %v6177_v15 }
 0x5c4   :  { %4552 = vtanh.f32 %v2379_v50  ;;  %v2380_v60 = vadd.f32 %v2378_v7, %v7061_v2  ;;  %v2384_v6 = vsub.f32 1.0, %v4551_v14  ;;  %v2388_v2 = vmul.f32 %v4551_v14, %v6182_v20  ;;  %v6348_v14 = vld [vmem:[#allocation6] ss:$12 sps:$4 sm:$0xff]  }
 0x5c6   :  { %4554 = vtanh.f32 %v2380_v60 }
 0x5c9   :  { %v2426_v42 = vpop.f32.mrb[68].mxu0  ;;  %v6322_v37 = vpop.f32.mrb[80].mxu1 }
 0x5ca   :  { %v2427_v16 = vadd.f32 %v2426_v42, %v7062_v30  ;;  %v2428_v24 = vpop.f32.mrb[69].mxu0  ;;  %v4044_v38 = vpop.f32.mrb[81].mxu1 }
 0x5cb   :  { %v2429_v44 = vadd.f32 %v2428_v24, %v7041_v48  ;;  %v2430_v34 = vpop.f32.mrb[70].mxu0  ;;  %v6326_v55 = vpop.f32.mrb[82].mxu1 }
 0x5cc   :  { %v2476_v3 = vadd.f32 %v2427_v16, %v7063_v61  ;;  %v2431_v12 = vadd.f32 %v2430_v34, %v7062_v30  ;;  %v2432_v19 = vpop.f32.mrb[71].mxu0  ;;  %v4045_v31 = vpop.f32.mrb[83].mxu1  ;;  %v6351_v61 = vld [vmem:[#allocation6 + $0x8] ss:$12 sps:$4 sm:$0xff]  }
 0x5cd   :  { %v2490_v8 = vadd.f32 %v2429_v44, %v7064_v13  ;;  %v2433_v46 = vadd.f32 %v2432_v19, %v7041_v48  ;;  %v6364_v19 = vld [vmem:[#allocation6 + $0x20] ss:$12 sps:$4 sm:$0xff]   ;;  %v6371_v13 = vld [vmem:[#allocation6 + $0x30] ss:$12 sps:$4 sm:$0xff]  }
 0x5ce   :  { %v4553_v33 = vpop.eup %4552  ;;  %v3635_v23 = vmul.f32 -1.442695, %v2476_v3  ;;  %v2477_v40 = vadd.f32 %v2431_v12, %v7065_v36  ;;  %v6361_v12 = vld [vmem:[#allocation6 + $0x18] ss:$12 sps:$4 sm:$0xff]   ;;  %v6367_v31 = vld [vmem:[#allocation6 + $0x34] ss:$12 sps:$4 sm:$0xff]  }
 0x5cf   :  { %v2491_v26 = vadd.f32 %v2433_v46, %v7066_v10  ;;  %v2385_v21 = vmul.f32 %v4553_v33, %v2383_v63  ;;  %v3637_v16 = vmul.f32 -1.442695, %v2490_v8  ;;  %v6374_v8 = vld [vmem:[#allocation6 + $0x38] ss:$12 sps:$4 sm:$0xff]   ;;  %v6381_v36 = vld [vmem:[#allocation6 + $0x48] ss:$12 sps:$4 sm:$0xff]  }
 0x5d0   :  { %v4555_v50 = vpop.eup %4554  ;;  %4556 = vpow2.f32 %v3635_v23  ;;  %v3636_v7 = vmul.f32 -1.442695, %v2477_v40  ;;  %v6377_v46 = vld [vmem:[#allocation6 + $0x4c] ss:$12 sps:$4 sm:$0xff]   ;;  %v6384_v40 = vld [vmem:[#allocation6 + $0x50] ss:$12 sps:$4 sm:$0xff]  }
 0x5d1   :  { %v2386_v60 = vmul.f32 %v4555_v50, %v2384_v6  ;;  %v2389_v42 = vadd.f32 %v2387_v9, %v2385_v21  ;;  %v3638_v38 = vmul.f32 -1.442695, %v2491_v26  ;;  %v2470_v9 = vadd.f32 %v6322_v37, %v5660_v43  ;;  %v6389_v10 = vld [vmem:[#allocation6 + $0x64] ss:$12 sps:$4 sm:$0xff]  }
 0x5d2   :  { %4558 = vpow2.f32 %v3636_v7  ;;  %v2473_v50 = vadd.f32 %v6326_v55, %v5660_v43  ;;  %v7067_v37 = vld [vmem:[#allocation69_spill] sm:$0xff]  ;;  %v7068_v55 = vld [vmem:[#allocation72_spill] sm:$0xff] }
 0x5d3   :  { %v2390_v24 = vadd.f32 %v2388_v2, %v2386_v60  ;;  %v6339_v44 = vsel %vm2260_vm8, %v2389_v42, %v6177_v15  ;;  %4560 = vpow2.f32 %v3637_v16  ;;  %v6395_v2 = vld [vmem:[#allocation6 + $0x60] ss:$12 sps:$4 sm:$0xff]   ;;  %v6398_v60 = vld [vmem:[#allocation6 + $0x68] ss:$12 sps:$4 sm:$0xff]  }
 0x5d4   :  { %4562 = vpow2.f32 %v3638_v38 }
 0x5d5   :  { %v6344_v32 = vsel %vm2261_vm3, %v2390_v24, %v6182_v20  ;;  %v6402_v24 = vld [vmem:[#allocation6 + $0x7c] ss:$12 sps:$4 sm:$0xff]  }
 0x5d6   :  { %v2522_v34 = vpack.c.bf16 %v6344_v32, %v6339_v44 }
 0x5d8   :  { %2556 = vmatmul.mubr.bf16.vlgmr.msra.gmra.mrb[20].mxu0 %v2522_v34  ;;  %4063 = vmatmul.mubr.bf16.vlgmr.msra.gmra.mrb[84].mxu1 %v2522_v34  ;;  %v6407_v34 = vld [vmem:[#allocation6 + $0x78] ss:$12 sps:$4 sm:$0xff]  }
 0x5d9   :  { %2651 = vmatpush1.bf16.msra.mxu0 %v6348_v14  ;;  %4067 = vmatpush3.bf16.msra.mxu1 %v6351_v61 }
 0x5da   :  { %v4557_v15 = vpop.eup %4556  ;;  %2652 = vmatprep.subr.bf16.mxu0 %v6354_v62  ;;  %4068 = vmatprep.subr.bf16.mxu1 %v6968_v11 }
 0x5db   :  { %v2484_v20 = vadd.f32 1.0, %v4557_v15  ;;  %2682 = vmatprep.mubr.bf16.mxu0 %v6969_v18  ;;  %4082 = vmatprep.mubr.msk.bf16.mxu1 %vm4895_vm7, %v6968_v11  ;;  %v6410_v15 = vld [vmem:[#allocation6 + $0x80] ss:$12 sps:$4 sm:$0xff]  }
 0x5dc   :  { %v4559_v47 = vpop.eup %4558 }
 0x5dd   :  { %4564 = vrcp.f32 %v2484_v20  ;;  %v2485_v3 = vadd.f32 1.0, %v4559_v47  ;;  %2653 = vmatpush1.bf16.msra.mxu0 %v6361_v12  ;;  %4069 = vmatpush3.bf16.msra.mxu1 %v6364_v19  ;;  %v4561_v63 = vpop.eup %4560  ;;  %v6413_v20 = vld [vmem:[#allocation6 + $0x94] ss:$12 sps:$4 sm:$0xff]   ;;  %v6417_v47 = vld [vmem:[#allocation6 + $0x90] ss:$12 sps:$4 sm:$0xff]  }
 0x5de   :  { %2654 = vmatprep.subr.bf16.mxu0 %v6367_v31  ;;  %4070 = vmatprep.subr.bf16.mxu1 %v6968_v11  ;;  %v4563_v33 = vpop.eup %4562  ;;  %v2498_v23 = vadd.f32 1.0, %v4561_v63 }
 0x5df   :  { %4566 = vrcp.f32 %v2485_v3  ;;  %v2499_v6 = vadd.f32 1.0, %v4563_v33  ;;  %v6420_v3 = vld [vmem:[#allocation6 + $0x98] ss:$12 sps:$4 sm:$0xff]  }
 0x5e0   :  { %4568 = vrcp.f32 %v2498_v23  ;;  %v6423_v33 = vld [vmem:[#allocation6 + $0xac] ss:$12 sps:$4 sm:$0xff]  }
 0x5e1   :  { %2655 = vmatpush1.bf16.msra.mxu0 %v6371_v13  ;;  %4071 = vmatpush3.bf16.msra.mxu1 %v6374_v8  ;;  %4570 = vrcp.f32 %v2499_v6  ;;  %7069 = vst [vmem:[#allocation13_spill] sm:$0xff] %v6423_v33  ;;  %v6427_v6 = vld [vmem:[#allocation6 + $0xa8] ss:$12 sps:$4 sm:$0xff]  }
 0x5e2   :  { %2656 = vmatprep.subr.bf16.mxu0 %v6377_v46  ;;  %4072 = vmatprep.subr.bf16.mxu1 %v6968_v11  ;;  %7070 = vst [vmem:[#allocation66_spill] sm:$0xff] %v6427_v6 }
 0x5e5   :  { %2657 = vmatpush1.bf16.msra.mxu0 %v6381_v36  ;;  %4073 = vmatpush3.bf16.msra.mxu1 %v6384_v40 }
 0x5e6   :  { %2658 = vmatprep.subr.bf16.mxu0 %v6389_v10  ;;  %4074 = vmatprep.subr.bf16.mxu1 %v6968_v11 }
 0x5e7   :  { %v4565_v26 = vpop.eup %4564 }
 0x5e8   :  { %v2504_v21 = vmul.f32 %v4565_v26, %v2470_v9  ;;  %v6430_v26 = vld [vmem:[#allocation6 + $0xb0] ss:$12 sps:$4 sm:$0xff]  }
 0x5e9   :  { %v4567_v7 = vpop.eup %4566  ;;  %2659 = vmatpush1.bf16.msra.mxu0 %v6395_v2  ;;  %4075 = vmatpush3.bf16.msra.mxu1 %v6398_v60 }
 0x5ea   :  { %v2506_v42 = vadd.f32 %v2504_v21, %v7067_v37  ;;  %v2505_v16 = vmul.f32 %v4567_v7, %v2473_v50  ;;  %2660 = vmatprep.subr.bf16.mxu0 %v6402_v24  ;;  %4076 = vmatprep.subr.bf16.mxu1 %v6968_v11  ;;  %v4569_v63 = vpop.eup %4568 }
 0x5eb   :  { %v4571_v23 = vpop.eup %4570  ;;  %v2510_v9 = vsub.f32 1.0, %v4569_v63  ;;  %v2514_v37 = vmul.f32 %v4569_v63, %v6240_v39  ;;  %v6480_v63 = vld [vmem:[#allocation3 + $0x78] ss:$12 sps:$4 sm:$0xff]  }
 0x5ec   :  { %4572 = vtanh.f32 %v2506_v42  ;;  %v2507_v38 = vadd.f32 %v2505_v16, %v7068_v55  ;;  %v2511_v50 = vsub.f32 1.0, %v4571_v23  ;;  %v2515_v55 = vmul.f32 %v4571_v23, %v6245_v1  ;;  %7075 = vst [vmem:[#allocation15_spill] sm:$0xff] %v6480_v63  ;;  %v6488_v23 = vld [vmem:[#allocation3 + $0x90] ss:$12 sps:$4 sm:$0xff]  }
 0x5ed   :  { %2661 = vmatpush1.bf16.msra.mxu0 %v6407_v34  ;;  %4077 = vmatpush3.bf16.msra.mxu1 %v6410_v15  ;;  %7077 = vst [vmem:[#allocation101_spill] sm:$0xff] %v6488_v23 }
 0x5ee   :  { %4574 = vtanh.f32 %v2507_v38  ;;  %2662 = vmatprep.subr.bf16.mxu0 %v6413_v20  ;;  %4078 = vmatprep.subr.bf16.mxu1 %v6968_v11 }
 0x5f1   :  { %2663 = vmatpush1.bf16.msra.mxu0 %v6417_v47  ;;  %4079 = vmatpush3.bf16.msra.mxu1 %v6420_v3 }
 0x5f2   :  { %2664 = vmatprep.subr.bf16.mxu0 %v6423_v33  ;;  %4080 = vmatprep.subr.bf16.mxu1 %v6968_v11 }
 0x5f5   :  { %2665 = vmatpush1.bf16.msra.mxu0 %v6427_v6  ;;  %4081 = vmatpush3.bf16.msra.mxu1 %v6430_v26 }
 0x5f6   :  { %v4573_v21 = vpop.eup %4572  ;;  %2781 = vmatprep.subr.bf16.mxu0 %v6226_v0  ;;  %4086 = vmatprep.subr.bf16.mxu1 %v6968_v11 }
 0x5f7   :  { %v2512_v7 = vmul.f32 %v4573_v21, %v2510_v9  ;;  %v6492_v21 = vld [vmem:[#allocation3 + $0xac] ss:$12 sps:$4 sm:$0xff]  }
 0x5f8   :  { %v4575_v42 = vpop.eup %4574  ;;  %7078 = vst [vmem:[#allocation16_spill] sm:$0xff] %v6492_v21 }
 0x5f9   :  { %v2513_v16 = vmul.f32 %v4575_v42, %v2511_v50  ;;  %v2516_v38 = vadd.f32 %v2514_v37, %v2512_v7  ;;  %v6496_v50 = vld [vmem:[#allocation3 + $0xa8] ss:$12 sps:$4 sm:$0xff]  }
 0x5fa   :  { %7079 = vst [vmem:[#allocation17_spill] sm:$0xff] %v6496_v50 }
 0x5fb   :  { %v2517_v33 = vadd.f32 %v2515_v55, %v2513_v16  ;;  %v6440_v6 = vsel %vm2246_vm1, %v2516_v38, %v6240_v39  ;;  %v6472_v39 = vld [vmem:[#allocation3 + $0x60] ss:$12 sps:$4 sm:$0xff]  }
 0x5fc   :  { %7073 = vst [vmem:[#allocation82_spill] sm:$0xff] %v6472_v39 }
 0x5fd   :  { %v6445_v0 = vsel %vm2247_vm4, %v2517_v33, %v6245_v1  ;;  %v6476_v1 = vld [vmem:[#allocation3 + $0x7c] ss:$12 sps:$4 sm:$0xff]   ;;  %v6484_v33 = vld [vmem:[#allocation3 + $0x94] ss:$12 sps:$4 sm:$0xff]  }
 0x5fe   :  { %v2649_v9 = vpack.c.bf16 %v6445_v0, %v6440_v6  ;;  %7074 = vst [vmem:[#allocation84_spill] sm:$0xff] %v6476_v1  ;;  %7076 = vst [vmem:[#allocation100_spill] sm:$0xff] %v6484_v33 }
 0x600   :  { %2683 = vmatmul.mubr.bf16.vlgmr.msra.gmra.mrb[72].mxu0 %v2649_v9  ;;  %4083 = vmatmul.mubr.bf16.vlgmr.msra.gmra.mrb[88].mxu1 %v2649_v9 }
 0x601   :  { %2782 = vmatpush1.bf16.msra.mxu0 %v6249_v35  ;;  %4087 = vmatpush3.bf16.msra.mxu1 %v6252_v5 }
 0x602   :  { %2783 = vmatprep.subr.bf16.mxu0 %v6255_v57  ;;  %4088 = vmatprep.subr.bf16.mxu1 %v6968_v11 }
 0x603   :  { %2813 = vmatprep.mubr.bf16.mxu0 %v6969_v18  ;;  %4102 = vmatprep.mubr.msk.bf16.mxu1 %vm4895_vm7, %v6968_v11 }
 0x605   :  { %2784 = vmatpush1.bf16.msra.mxu0 %v6262_v51  ;;  %4089 = vmatpush3.bf16.msra.mxu1 %v6265_v4 }
 0x606   :  { %2785 = vmatprep.subr.bf16.mxu0 %v6268_v53  ;;  %4090 = vmatprep.subr.bf16.mxu1 %v6968_v11 }
 0x609   :  { %2786 = vmatpush1.bf16.msra.mxu0 %v6272_v49  ;;  %4091 = vmatpush3.bf16.msra.mxu1 %v6275_v58 }
 0x60a   :  { %2787 = vmatprep.subr.bf16.mxu0 %v6278_v29  ;;  %4092 = vmatprep.subr.bf16.mxu1 %v6968_v11  ;;  %v7085_v29 = vld [vmem:[#allocation63_spill] sm:$0xff] }
 0x60d   :  { %2788 = vmatpush1.bf16.msra.mxu0 %v6464_v25  ;;  %4093 = vmatpush3.bf16.msra.mxu1 %v6283_v41 }
 0x60e   :  { %2789 = vmatprep.subr.bf16.mxu0 %v6468_v17  ;;  %4094 = vmatprep.subr.bf16.mxu1 %v6968_v11  ;;  %v7084_v17 = vld [vmem:[#allocation38_spill] sm:$0xff] }
 0x611   :  { %2790 = vmatpush1.bf16.msra.mxu0 %v6472_v39  ;;  %4095 = vmatpush3.bf16.msra.mxu1 %v6289_v22 }
 0x612   :  { %2791 = vmatprep.subr.bf16.mxu0 %v6476_v1  ;;  %4096 = vmatprep.subr.bf16.mxu1 %v6968_v11 }
 0x615   :  { %2792 = vmatpush1.bf16.msra.mxu0 %v6480_v63  ;;  %4097 = vmatpush3.bf16.msra.mxu1 %v6295_v52 }
 0x616   :  { %2793 = vmatprep.subr.bf16.mxu0 %v6484_v33  ;;  %4098 = vmatprep.subr.bf16.mxu1 %v6968_v11 }
 0x619   :  { %2794 = vmatpush1.bf16.msra.mxu0 %v6488_v23  ;;  %4099 = vmatpush3.bf16.msra.mxu1 %v6301_v54 }
 0x61a   :  { %2795 = vmatprep.subr.bf16.mxu0 %v6492_v21  ;;  %4100 = vmatprep.subr.bf16.mxu1 %v6968_v11 }
 0x61d   :  { %2796 = vmatpush1.bf16.msra.mxu0 %v6496_v50  ;;  %4101 = vmatpush3.bf16.msra.mxu1 %v6307_v56 }
 0x61e   :  { %2908 = vmatprep.subr.bf16.mxu0 %v6310_v59  ;;  %4106 = vmatprep.subr.bf16.mxu1 %v6968_v11 }
 0x6ab   :  { %v2557_v7 = vpop.f32.mrb[20].mxu0  ;;  %v2600_v37 = vpop.f32.mrb[84].mxu1 }
 0x6ac   :  { %v4209_v42 = vadd.f32 %v7057_v27, %v2557_v7  ;;  %v2559_v16 = vpop.f32.mrb[21].mxu0  ;;  %v4064_v55 = vpop.f32.mrb[85].mxu1 }
 0x6ad   :  { %v2561_v38 = vpop.f32.mrb[22].mxu0  ;;  %v2603_v9 = vpop.f32.mrb[86].mxu1  ;;  %v4211_v50 = vadd.f32 %v7058_v45, %v2559_v16  ;;  %v2601_v16 = vadd.f32 %v2600_v37, %v7059_v28 }
 0x6ae   :  { %v3639_v21 = vmul.f32 -1.442695, %v4209_v42  ;;  %v4213_v54 = vadd.f32 %v7057_v27, %v2561_v38  ;;  %v2563_v23 = vpop.f32.mrb[23].mxu0  ;;  %v4065_v33 = vpop.f32.mrb[87].mxu1 }
 0x6af   :  { %v4215_v59 = vadd.f32 %v7058_v45, %v2563_v23  ;;  %v3641_v52 = vmul.f32 -1.442695, %v4211_v50  ;;  %v7081_v23 = vld [vmem:[#allocation56_spill] sm:$0xff] }
 0x6b0   :  { %4576 = vpow2.f32 %v3639_v21  ;;  %v3640_v56 = vmul.f32 -1.442695, %v4213_v54 }
 0x6b1   :  { %v3642_v63 = vmul.f32 -1.442695, %v4215_v59 }
 0x6b2   :  { %4578 = vpow2.f32 %v3640_v56  ;;  %v2604_v56 = vadd.f32 %v2603_v9, %v7059_v28 }
 0x6b3   :  { %4580 = vpow2.f32 %v3641_v52  ;;  %v7080_v52 = vld [vmem:[#allocation52_spill] sm:$0xff] }
 0x6b4   :  { %4582 = vpow2.f32 %v3642_v63 }
 0x6ba   :  { %v4577_v7 = vpop.eup %4576 }
 0x6bb   :  { %v2615_v55 = vadd.f32 1.0, %v4577_v7 }
 0x6bc   :  { %v4579_v1 = vpop.eup %4578 }
 0x6bd   :  { %4584 = vrcp.f32 %v2615_v55  ;;  %v2616_v42 = vadd.f32 1.0, %v4579_v1  ;;  %v4581_v27 = vpop.eup %4580 }
 0x6be   :  { %v4583_v38 = vpop.eup %4582  ;;  %v2629_v33 = vadd.f32 1.0, %v4581_v27 }
 0x6bf   :  { %4586 = vrcp.f32 %v2616_v42  ;;  %v2630_v21 = vadd.f32 1.0, %v4583_v38 }
 0x6c0   :  { %4588 = vrcp.f32 %v2629_v33 }
 0x6c1   :  { %4590 = vrcp.f32 %v2630_v21 }
 0x6c7   :  { %v4585_v54 = vpop.eup %4584 }
 0x6c8   :  { %v2635_v22 = vmul.f32 %v4585_v54, %v2601_v16 }
 0x6c9   :  { %v4587_v59 = vpop.eup %4586 }
 0x6ca   :  { %v2637_v45 = vadd.f32 %v2635_v22, %v7080_v52  ;;  %v2636_v63 = vmul.f32 %v4587_v59, %v2604_v56  ;;  %v4589_v50 = vpop.eup %4588  ;;  %v7082_v56 = vld [vmem:[#allocation36_spill] sm:$0xff] }
 0x6cb   :  { %v4591_v37 = vpop.eup %4590  ;;  %v2641_v33 = vsub.f32 1.0, %v4589_v50  ;;  %v2645_v54 = vmul.f32 %v4589_v50, %v6339_v44 }
 0x6cc   :  { %4592 = vtanh.f32 %v2637_v45  ;;  %v2638_v1 = vadd.f32 %v2636_v63, %v7081_v23  ;;  %v2642_v23 = vsub.f32 1.0, %v4591_v37  ;;  %v2646_v25 = vmul.f32 %v4591_v37, %v6344_v32 }
 0x6ce   :  { %4594 = vtanh.f32 %v2638_v1  ;;  %v7083_v1 = vld [vmem:[#allocation59_spill] sm:$0xff] }
 0x6d3   :  { %v2684_v7 = vpop.f32.mrb[72].mxu0  ;;  %v6510_v55 = vpop.f32.mrb[88].mxu1 }
 0x6d4   :  { %v2685_v42 = vadd.f32 %v2684_v7, %v7062_v30  ;;  %v2686_v27 = vpop.f32.mrb[73].mxu0  ;;  %v4084_v38 = vpop.f32.mrb[89].mxu1 }
 0x6d5   :  { %v2687_v9 = vadd.f32 %v2686_v27, %v7041_v48  ;;  %v2688_v16 = vpop.f32.mrb[74].mxu0  ;;  %v6514_v22 = vpop.f32.mrb[90].mxu1 }
 0x6d6   :  { %v4593_v21 = vpop.eup %4592  ;;  %v2734_v59 = vadd.f32 %v2685_v42, %v7082_v56  ;;  %v2689_v52 = vadd.f32 %v2688_v16, %v7062_v30  ;;  %v2690_v45 = vpop.f32.mrb[75].mxu0 }
 0x6d7   :  { %v4085_v63 = vpop.f32.mrb[91].mxu1  ;;  %v2748_v7 = vadd.f32 %v2687_v9, %v7083_v1  ;;  %v2691_v38 = vadd.f32 %v2690_v45, %v7041_v48  ;;  %v2643_v28 = vmul.f32 %v4593_v21, %v2641_v33  ;;  %v2728_v21 = vadd.f32 %v6510_v55, %v5660_v43  ;;  %v7089_v55 = vld [vmem:[#allocation65_spill] sm:$0xff] }
 0x6d8   :  { %v4595_v39 = vpop.eup %4594  ;;  %v3643_v27 = vmul.f32 -1.442695, %v2734_v59  ;;  %v2735_v41 = vadd.f32 %v2689_v52, %v7084_v17 }
 0x6d9   :  { %v2749_v50 = vadd.f32 %v2691_v38, %v7085_v29  ;;  %v2644_v58 = vmul.f32 %v4595_v39, %v2642_v23  ;;  %v2647_v42 = vadd.f32 %v2645_v54, %v2643_v28  ;;  %v3645_v63 = vmul.f32 -1.442695, %v2748_v7  ;;  %v7088_v7 = vld [vmem:[#allocation61_spill] sm:$0xff] }
 0x6da   :  { %4596 = vpow2.f32 %v3643_v27  ;;  %v3644_v16 = vmul.f32 -1.442695, %v2735_v41  ;;  %v2731_v23 = vadd.f32 %v6514_v22, %v5660_v43  ;;  %v7090_v22 = vld [vmem:[#allocation13_spill] sm:$0xff] }
 0x6db   :  { %v2648_v56 = vadd.f32 %v2646_v25, %v2644_v58  ;;  %v6527_v45 = vsel %vm1948_vm15, %v2647_v42, %v6339_v44  ;;  %v3646_v39 = vmul.f32 -1.442695, %v2749_v50 }
 0x6dc   :  { %4598 = vpow2.f32 %v3644_v16  ;;  %v7091_v16 = vld [vmem:[#allocation66_spill] sm:$0xff] }
 0x6dd   :  { %v6532_v17 = vsel %vm1949_vm0, %v2648_v56, %v6344_v32  ;;  %4600 = vpow2.f32 %v3645_v63  ;;  %v7092_v63 = vld [vmem:[#allocation58_spill] sm:$0xff] }
 0x6de   :  { %v2780_v29 = vpack.c.bf16 %v6532_v17, %v6527_v45  ;;  %4602 = vpow2.f32 %v3646_v39 }
 0x6e0   :  { %2814 = vmatmul.mubr.bf16.vlgmr.msra.gmra.mrb[76].mxu0 %v2780_v29  ;;  %4103 = vmatmul.mubr.bf16.vlgmr.msra.gmra.mrb[92].mxu1 %v2780_v29 }
 0x6e1   :  { %2909 = vmatpush1.bf16.msra.mxu0 %v6348_v14  ;;  %4107 = vmatpush3.bf16.msra.mxu1 %v6351_v61 }
 0x6e2   :  { %2910 = vmatprep.subr.bf16.mxu0 %v6354_v62  ;;  %4108 = vmatprep.subr.bf16.mxu1 %v6968_v11 }
 0x6e3   :  { %2940 = vmatprep.mubr.bf16.mxu0 %v6969_v18  ;;  %4122 = vmatprep.mubr.msk.bf16.mxu1 %vm4895_vm7, %v6968_v11 }
 0x6e4   :  { %v4597_v58 = vpop.eup %4596 }
 0x6e5   :  { %v2742_v41 = vadd.f32 1.0, %v4597_v58  ;;  %2911 = vmatpush1.bf16.msra.mxu0 %v6361_v12  ;;  %4109 = vmatpush3.bf16.msra.mxu1 %v6364_v19 }
 0x6e6   :  { %v4599_v28 = vpop.eup %4598  ;;  %2912 = vmatprep.subr.bf16.mxu0 %v6367_v31  ;;  %4110 = vmatprep.subr.bf16.mxu1 %v6968_v11 }
 0x6e7   :  { %4604 = vrcp.f32 %v2742_v41  ;;  %v2743_v44 = vadd.f32 1.0, %v4599_v28  ;;  %v4601_v32 = vpop.eup %4600 }
 0x6e8   :  { %v4603_v25 = vpop.eup %4602  ;;  %v2756_v37 = vadd.f32 1.0, %v4601_v32 }
 0x6e9   :  { %4606 = vrcp.f32 %v2743_v44  ;;  %2913 = vmatpush1.bf16.msra.mxu0 %v6371_v13  ;;  %4111 = vmatpush3.bf16.msra.mxu1 %v6374_v8  ;;  %v2757_v54 = vadd.f32 1.0, %v4603_v25 }
 0x6ea   :  { %2914 = vmatprep.subr.bf16.mxu0 %v6377_v46  ;;  %4112 = vmatprep.subr.bf16.mxu1 %v6968_v11  ;;  %4608 = vrcp.f32 %v2756_v37 }
 0x6eb   :  { %4610 = vrcp.f32 %v2757_v54 }
 0x6ed   :  { %2915 = vmatpush1.bf16.msra.mxu0 %v6381_v36  ;;  %4113 = vmatpush3.bf16.msra.mxu1 %v6384_v40 }
 0x6ee   :  { %2916 = vmatprep.subr.bf16.mxu0 %v6389_v10  ;;  %4114 = vmatprep.subr.bf16.mxu1 %v6968_v11 }
 0x6f1   :  { %v4605_v59 = vpop.eup %4604  ;;  %2917 = vmatpush1.bf16.msra.mxu0 %v6395_v2  ;;  %4115 = vmatpush3.bf16.msra.mxu1 %v6398_v60 }
 0x6f2   :  { %v2762_v52 = vmul.f32 %v4605_v59, %v2728_v21  ;;  %2918 = vmatprep.subr.bf16.mxu0 %v6402_v24  ;;  %4116 = vmatprep.subr.bf16.mxu1 %v6968_v11 }
 0x6f3   :  { %v4607_v1 = vpop.eup %4606 }
 0x6f4   :  { %v2764_v38 = vadd.f32 %v2762_v52, %v7088_v7  ;;  %v2763_v27 = vmul.f32 %v4607_v1, %v2731_v23  ;;  %v4609_v42 = vpop.eup %4608  ;;  %v7104_v23 = vld [vmem:[#allocation33_spill] sm:$0xff]  ;;  %v7105_v1 = vld [vmem:[#allocation100_spill] sm:$0xff] }
 0x6f5   :  { %2919 = vmatpush1.bf16.msra.mxu0 %v6407_v34  ;;  %4117 = vmatpush3.bf16.msra.mxu1 %v6410_v15  ;;  %v4611_v56 = vpop.eup %4610  ;;  %v2768_v9 = vsub.f32 1.0, %v4609_v42  ;;  %v2772_v58 = vmul.f32 %v4609_v42, %v6440_v6  ;;  %v7106_v7 = vld [vmem:[#allocation101_spill] sm:$0xff] }
 0x6f6   :  { %4612 = vtanh.f32 %v2764_v38  ;;  %v2765_v50 = vadd.f32 %v2763_v27, %v7089_v55  ;;  %2920 = vmatprep.subr.bf16.mxu0 %v6413_v20  ;;  %4118 = vmatprep.subr.bf16.mxu1 %v6968_v11  ;;  %v2769_v29 = vsub.f32 1.0, %v4611_v56  ;;  %v2773_v44 = vmul.f32 %v4611_v56, %v6445_v0  ;;  %v7107_v38 = vld [vmem:[#allocation99_spill] sm:$0xff]  ;;  %v7108_v27 = vld [vmem:[#allocation16_spill] sm:$0xff]  ;;  %v7109_v55 = vld [vmem:[#allocation17_spill] sm:$0xff] }
 0x6f7   :  { %v7111_v42 = vld [vmem:[#allocation81_spill] sm:$0xff] }
 0x6f8   :  { %4614 = vtanh.f32 %v2765_v50  ;;  %v7110_v50 = vld [vmem:[#allocation62_spill] sm:$0xff]  ;;  %v7112_v56 = vld [vmem:[#allocation85_spill] sm:$0xff] }
 0x6f9   :  { %2921 = vmatpush1.bf16.msra.mxu0 %v6417_v47  ;;  %4119 = vmatpush3.bf16.msra.mxu1 %v6420_v3 }
 0x6fa   :  { %2922 = vmatprep.subr.bf16.mxu0 %v7090_v22  ;;  %4120 = vmatprep.subr.bf16.mxu1 %v6968_v11 }
 0x6fd   :  { %2923 = vmatpush1.bf16.msra.mxu0 %v7091_v16  ;;  %4121 = vmatpush3.bf16.msra.mxu1 %v6430_v26 }
 0x6fe   :  { %3039 = vmatprep.subr.bf16.mxu0 %v7092_v63  ;;  %4126 = vmatprep.subr.bf16.mxu1 %v6968_v11  ;;  %v7113_v63 = vld [vmem:[#allocation21_spill] sm:$0xff] }
 0x700   :  { %v4613_v33 = vpop.eup %4612 }
 0x701   :  { %v2770_v39 = vmul.f32 %v4613_v33, %v2768_v9  ;;  %v322_v9 = vadd.f32 %v7113_v63, %v7112_v56  ;;  %v7114_v33 = vld [vmem:[#allocation89_spill] sm:$0xff] }
 0x702   :  { %v4615_v41 = vpop.eup %4614 }
 0x703   :  { %v2771_v28 = vmul.f32 %v4615_v41, %v2769_v29  ;;  %v2774_v32 = vadd.f32 %v2772_v58, %v2770_v39  ;;  %v7115_v29 = vld [vmem:[#allocation22_spill] sm:$0xff]  ;;  %v7116_v58 = vld [vmem:[#allocation23_spill] sm:$0xff] }
 0x704   :  { %v324_v39 = vadd.f32 %v7115_v29, %v7114_v33  ;;  %v326_v41 = vadd.f32 %v7116_v58, %v7112_v56 }
 0x705   :  { %v2775_v25 = vadd.f32 %v2773_v44, %v2771_v28  ;;  %v6582_v21 = vsel %vm1934_vm13, %v2774_v32, %v6440_v6  ;;  %v7099_v6 = vld [vmem:[#allocation14_spill] sm:$0xff]  ;;  %v7117_v28 = vld [vmem:[#allocation24_spill] sm:$0xff] }
 0x706   :  { %v328_v44 = vadd.f32 %v7117_v28, %v7114_v33  ;;  %v7118_v32 = vld [vmem:[#allocation86_spill] sm:$0xff] }
 0x707   :  { %v6587_v59 = vsel %vm1935_vm14, %v2775_v25, %v6445_v0  ;;  %v7095_v0 = vld [vmem:[#allocation79_spill] sm:$0xff]  ;;  %v4217_v25 = vadd.f32 %v7118_v32, %v322_v9 }
 0x708   :  { %v2907_v52 = vpack.c.bf16 %v6587_v59, %v6582_v21 }
 0x70a   :  { %2941 = vmatmul.mubr.bf16.vlgmr.msra.gmra.mrb[80].mxu0 %v2907_v52  ;;  %4123 = vmatmul.mubr.bf16.vlgmr.msra.gmra.mrb[96].mxu1 %v2907_v52  ;;  %v7119_v52 = vld [vmem:[#allocation90_spill] sm:$0xff] }
 0x70b   :  { %3040 = vmatpush1.bf16.msra.mxu0 %v6249_v35  ;;  %4127 = vmatpush3.bf16.msra.mxu1 %v6252_v5  ;;  %v7096_v35 = vld [vmem:[#allocation78_spill] sm:$0xff]  ;;  %v7097_v5 = vld [vmem:[#allocation83_spill] sm:$0xff] }
 0x70c   :  { %3041 = vmatprep.subr.bf16.mxu0 %v6255_v57  ;;  %4128 = vmatprep.subr.bf16.mxu1 %v6968_v11  ;;  %v7098_v57 = vld [vmem:[#allocation80_spill] sm:$0xff] }
 0x70d   :  { %3071 = vmatprep.mubr.bf16.mxu0 %v6969_v18  ;;  %4142 = vmatprep.mubr.msk.bf16.mxu1 %vm4895_vm7, %v6968_v11 }
 0x70f   :  { %3042 = vmatpush1.bf16.msra.mxu0 %v6262_v51  ;;  %4129 = vmatpush3.bf16.msra.mxu1 %v6265_v4  ;;  %v7100_v51 = vld [vmem:[#allocation82_spill] sm:$0xff] }
 0x710   :  { %3043 = vmatprep.subr.bf16.mxu0 %v6268_v53  ;;  %4130 = vmatprep.subr.bf16.mxu1 %v6968_v11  ;;  %v7101_v4 = vld [vmem:[#allocation98_spill] sm:$0xff]  ;;  %v7102_v53 = vld [vmem:[#allocation84_spill] sm:$0xff] }
 0x713   :  { %3044 = vmatpush1.bf16.msra.mxu0 %v6272_v49  ;;  %4131 = vmatpush3.bf16.msra.mxu1 %v7095_v0  ;;  %v7103_v49 = vld [vmem:[#allocation15_spill] sm:$0xff]  ;;  %v4220_v0 = vadd.f32 %v7119_v52, %v324_v39 }
 0x714   :  { %3045 = vmatprep.subr.bf16.mxu0 %v7096_v35  ;;  %4132 = vmatprep.subr.bf16.mxu1 %v6968_v11 }
 0x717   :  { %3046 = vmatpush1.bf16.msra.mxu0 %v7097_v5  ;;  %4133 = vmatpush3.bf16.msra.mxu1 %v7098_v57 }
 0x718   :  { %3047 = vmatprep.subr.bf16.mxu0 %v7099_v6  ;;  %4134 = vmatprep.subr.bf16.mxu1 %v6968_v11  ;;  %v4223_v6 = vadd.f32 %v7118_v32, %v326_v41 }
 0x71b   :  { %3048 = vmatpush1.bf16.msra.mxu0 %v7100_v51  ;;  %4135 = vmatpush3.bf16.msra.mxu1 %v7101_v4 }
 0x71c   :  { %3049 = vmatprep.subr.bf16.mxu0 %v7102_v53  ;;  %4136 = vmatprep.subr.bf16.mxu1 %v6968_v11 }
 0x71f   :  { %3050 = vmatpush1.bf16.msra.mxu0 %v7103_v49  ;;  %4137 = vmatpush3.bf16.msra.mxu1 %v7104_v23  ;;  %v4226_v49 = vadd.f32 %v7119_v52, %v328_v44  ;;  %v7120_v44 = vld [vmem:[#allocation93_spill] sm:$0xff] }
 0x720   :  { %3051 = vmatprep.subr.bf16.mxu0 %v7105_v1  ;;  %4138 = vmatprep.subr.bf16.mxu1 %v6968_v11 }
 0x723   :  { %3052 = vmatpush1.bf16.msra.mxu0 %v7106_v7  ;;  %4139 = vmatpush3.bf16.msra.mxu1 %v7107_v38 }
 0x724   :  { %3053 = vmatprep.subr.bf16.mxu0 %v7108_v27  ;;  %4140 = vmatprep.subr.bf16.mxu1 %v6968_v11 }
 0x727   :  { %3054 = vmatpush1.bf16.msra.mxu0 %v7109_v55  ;;  %4141 = vmatpush3.bf16.msra.mxu1 %v7110_v50 }
 0x728   :  { %3166 = vmatprep.subr.bf16.mxu0 %v7111_v42  ;;  %4146 = vmatprep.subr.bf16.mxu1 %v6968_v11 }
 0x7b3   :  { %v2815_v37 = vpop.f32.mrb[76].mxu0  ;;  %v2858_v54 = vpop.f32.mrb[92].mxu1 }
 0x7b4   :  { %v4218_v35 = vadd.f32 %v4217_v25, %v2815_v37  ;;  %v2817_v5 = vpop.f32.mrb[77].mxu0  ;;  %v4104_v57 = vpop.f32.mrb[93].mxu1  ;;  %v2859_v25 = vadd.f32 %v2858_v54, %v7120_v44 }
 0x7b5   :  { %v4221_v51 = vadd.f32 %v4220_v0, %v2817_v5  ;;  %v2819_v4 = vpop.f32.mrb[78].mxu0  ;;  %v2861_v53 = vpop.f32.mrb[94].mxu1 }
 0x7b6   :  { %v3647_v23 = vmul.f32 -1.442695, %v4218_v35  ;;  %v4224_v1 = vadd.f32 %v4223_v6, %v2819_v4  ;;  %v2821_v7 = vpop.f32.mrb[79].mxu0  ;;  %v4105_v38 = vpop.f32.mrb[95].mxu1  ;;  %v2862_v5 = vadd.f32 %v2861_v53, %v7120_v44  ;;  %v7121_v6 = vld [vmem:[#allocation60_spill] sm:$0xff] }
 0x7b7   :  { %v4227_v27 = vadd.f32 %v4226_v49, %v2821_v7  ;;  %v3649_v50 = vmul.f32 -1.442695, %v4221_v51  ;;  %v7122_v49 = vld [vmem:[#allocation64_spill] sm:$0xff] }
 0x7b8   :  { %4616 = vpow2.f32 %v3647_v23  ;;  %v3648_v55 = vmul.f32 -1.442695, %v4224_v1 }
 0x7b9   :  { %v3650_v42 = vmul.f32 -1.442695, %v4227_v27 }
 0x7ba   :  { %4618 = vpow2.f32 %v3648_v55 }
 0x7bb   :  { %4620 = vpow2.f32 %v3649_v50 }
 0x7bc   :  { %4622 = vpow2.f32 %v3650_v42 }
 0x7c2   :  { %v4617_v63 = vpop.eup %4616 }
 0x7c3   :  { %v2873_v9 = vadd.f32 1.0, %v4617_v63 }
 0x7c4   :  { %v4619_v29 = vpop.eup %4618 }
 0x7c5   :  { %4624 = vrcp.f32 %v2873_v9  ;;  %v2874_v39 = vadd.f32 1.0, %v4619_v29  ;;  %v4621_v58 = vpop.eup %4620 }
 0x7c6   :  { %v4623_v41 = vpop.eup %4622  ;;  %v2887_v28 = vadd.f32 1.0, %v4621_v58 }
 0x7c7   :  { %4626 = vrcp.f32 %v2874_v39  ;;  %v2888_v37 = vadd.f32 1.0, %v4623_v41 }
 0x7c8   :  { %4628 = vrcp.f32 %v2887_v28 }
 0x7c9   :  { %4630 = vrcp.f32 %v2888_v37  ;;  %v7123_v37 = vld [vmem:[#allocation32_spill] sm:$0xff] }
 0x7cf   :  { %v4625_v0 = vpop.eup %4624 }
 0x7d0   :  { %v2893_v35 = vmul.f32 %v4625_v0, %v2859_v25 }
 0x7d1   :  { %v4627_v57 = vpop.eup %4626 }
 0x7d2   :  { %v2895_v51 = vadd.f32 %v2893_v35, %v7121_v6  ;;  %v2894_v4 = vmul.f32 %v4627_v57, %v2862_v5  ;;  %v4629_v1 = vpop.eup %4628  ;;  %v7124_v6 = vld [vmem:[#allocation51_spill] sm:$0xff] }
 0x7d3   :  { %v4631_v7 = vpop.eup %4630  ;;  %v2899_v38 = vsub.f32 1.0, %v4629_v1  ;;  %v2903_v63 = vmul.f32 %v4629_v1, %v6527_v45 }
 0x7d4   :  { %4632 = vtanh.f32 %v2895_v51  ;;  %v2896_v23 = vadd.f32 %v2894_v4, %v7122_v49  ;;  %v2900_v9 = vsub.f32 1.0, %v4631_v7  ;;  %v2904_v25 = vmul.f32 %v4631_v7, %v6532_v17 }
 0x7d6   :  { %4634 = vtanh.f32 %v2896_v23 }
 0x7dd   :  { %v2942_v27 = vpop.f32.mrb[80].mxu0  ;;  %v6642_v54 = vpop.f32.mrb[96].mxu1 }
 0x7de   :  { %v4633_v55 = vpop.eup %4632  ;;  %v2943_v50 = vadd.f32 %v2942_v27, %v7062_v30  ;;  %v2944_v42 = vpop.f32.mrb[81].mxu0  ;;  %v7125_v27 = vld [vmem:[#allocation34_spill] sm:$0xff] }
 0x7df   :  { %v4124_v53 = vpop.f32.mrb[97].mxu1  ;;  %v2945_v29 = vadd.f32 %v2944_v42, %v7041_v48  ;;  %v2946_v39 = vpop.f32.mrb[82].mxu0  ;;  %v2901_v41 = vmul.f32 %v4633_v55, %v2899_v38 }
 0x7e0   :  { %v6647_v58 = vpop.f32.mrb[98].mxu1  ;;  %v4635_v28 = vpop.eup %4634  ;;  %v2992_v0 = vadd.f32 %v2943_v50, %v7123_v37  ;;  %v2947_v35 = vadd.f32 %v2946_v39, %v7062_v30  ;;  %v7126_v53 = vld [vmem:[#allocation55_spill] sm:$0xff]  ;;  %v4374_v50 = vld [vmem:[#allocation8 + $0x78] sm:$0xff]  }
 0x7e1   :  { %v2948_v5 = vpop.f32.mrb[83].mxu0  ;;  %v4125_v57 = vpop.f32.mrb[99].mxu1  ;;  %v3006_v51 = vadd.f32 %v2945_v29, %v7124_v6  ;;  %v2902_v49 = vmul.f32 %v4635_v28, %v2900_v9  ;;  %v2905_v23 = vadd.f32 %v2903_v63, %v2901_v41  ;;  %v4360_v6 = vld [vmem:[#allocation8 + $0x40] sm:$0xff]   ;;  %v4375_v37 = vld [vmem:[#allocation8 + $0x38] sm:$0xff]  }
 0x7e2   :  { %v2949_v4 = vadd.f32 %v2948_v5, %v7041_v48  ;;  %v3651_v1 = vmul.f32 -1.442695, %v2992_v0  ;;  %v2993_v42 = vadd.f32 %v2947_v35, %v7125_v27  ;;  %v4368_v27 = vld [vmem:[#allocation8 + $0x60] sm:$0xff]  }
 0x7e3   :  { %v2906_v55 = vadd.f32 %v2904_v25, %v2902_v49  ;;  %v6659_v39 = vsel %vm1636_vm11, %v2905_v23, %v6527_v45  ;;  %v3653_v9 = vmul.f32 -1.442695, %v3006_v51  ;;  %v4361_v51 = vld [vmem:[#allocation8] sm:$0xff]   ;;  %v4363_v49 = vld [vmem:[#allocation8 + $0x8] sm:$0xff]   ;;  %v4365_v23 = vld [vmem:[#allocation8 + $0x10] sm:$0xff]  }
 0x7e4   :  { %v3007_v38 = vadd.f32 %v2949_v4, %v7126_v53  ;;  %4636 = vpow2.f32 %v3651_v1  ;;  %v3652_v7 = vmul.f32 -1.442695, %v2993_v42  ;;  %v4362_v4 = vld [vmem:[#allocation8 + $0x48] sm:$0xff]   ;;  %v4366_v1 = vld [vmem:[#allocation8 + $0x58] sm:$0xff]   ;;  %v4369_v42 = vld [vmem:[#allocation8 + $0x20] sm:$0xff]  }
 0x7e5   :  { %v6664_v29 = vsel %vm1637_vm12, %v2906_v55, %v6532_v17  ;;  %v4370_v53 = vld [vmem:[#allocation8 + $0x68] sm:$0xff]   ;;  %v4372_v55 = vld [vmem:[#allocation8 + $0x70] sm:$0xff]  }
 0x7e6   :  { %4638 = vpow2.f32 %v3652_v7  ;;  %v3038_v63 = vpack.c.bf16 %v6664_v29, %v6659_v39  ;;  %v3654_v41 = vmul.f32 -1.442695, %v3007_v38  ;;  %v4371_v38 = vld [vmem:[#allocation8 + $0x28] sm:$0xff]   ;;  %v4373_v7 = vld [vmem:[#allocation8 + $0x30] sm:$0xff]  }
 0x7e7   :  { %4640 = vpow2.f32 %v3653_v9 }
 0x7e8   :  { %3072 = vmatmul.mubr.bf16.vlgmr.msra.gmra.mrb[84].mxu0 %v3038_v63  ;;  %4143 = vmatmul.mubr.bf16.vlgmr.msra.gmra.mrb[100].mxu1 %v3038_v63  ;;  %4642 = vpow2.f32 %v3654_v41  ;;  %v7133_v63 = vld [vmem:[#allocation25_spill] sm:$0xff]  ;;  %v7134_v41 = vld [vmem:[#allocation26_spill] sm:$0xff] }
 0x7e9   :  { %3167 = vmatpush1.bf16.msra.mxu0 %v6348_v14  ;;  %4147 = vmatpush3.bf16.msra.mxu1 %v6351_v61  ;;  %v332_v9 = vadd.f32 %v7133_v63, %v7112_v56 }
 0x7ea   :  { %3168 = vmatprep.subr.bf16.mxu0 %v6354_v62  ;;  %4148 = vmatprep.subr.bf16.mxu1 %v6968_v11 }
 0x7eb   :  { %3198 = vmatprep.mubr.bf16.mxu0 %v6969_v18  ;;  %4162 = vmatprep.mubr.msk.bf16.mxu1 %vm4895_vm7, %v6968_v11 }
 0x7ed   :  { %3169 = vmatpush1.bf16.msra.mxu0 %v6361_v12  ;;  %4149 = vmatpush3.bf16.msra.mxu1 %v6364_v19 }
 0x7ee   :  { %v4637_v45 = vpop.eup %4636  ;;  %3170 = vmatprep.subr.bf16.mxu0 %v6367_v31  ;;  %4150 = vmatprep.subr.bf16.mxu1 %v6968_v11  ;;  %v2986_v31 = vadd.f32 %v6642_v54, %v5660_v43 }
 0x7ef   :  { %v3000_v14 = vadd.f32 1.0, %v4637_v45  ;;  %v334_v45 = vadd.f32 %v7134_v41, %v7114_v33 }
 0x7f0   :  { %v4639_v61 = vpop.eup %4638 }
 0x7f1   :  { %4644 = vrcp.f32 %v3000_v14  ;;  %v3001_v62 = vadd.f32 1.0, %v4639_v61  ;;  %3171 = vmatpush1.bf16.msra.mxu0 %v6371_v13  ;;  %4151 = vmatpush3.bf16.msra.mxu1 %v6374_v8  ;;  %v4641_v18 = vpop.eup %4640  ;;  %v7135_v14 = vld [vmem:[#allocation27_spill] sm:$0xff] }
 0x7f2   :  { %3172 = vmatprep.subr.bf16.mxu0 %v6377_v46  ;;  %4152 = vmatprep.subr.bf16.mxu1 %v6968_v11  ;;  %v4643_v12 = vpop.eup %4642  ;;  %v3014_v19 = vadd.f32 1.0, %v4641_v18  ;;  %v336_v61 = vadd.f32 %v7135_v14, %v7112_v56 }
 0x7f3   :  { %4646 = vrcp.f32 %v3001_v62  ;;  %v3015_v13 = vadd.f32 1.0, %v4643_v12  ;;  %v7136_v62 = vld [vmem:[#allocation28_spill] sm:$0xff]  ;;  %v4229_v12 = vadd.f32 %v7118_v32, %v332_v9 }
 0x7f4   :  { %4648 = vrcp.f32 %v3014_v19  ;;  %v338_v18 = vadd.f32 %v7136_v62, %v7114_v33 }
 0x7f5   :  { %3173 = vmatpush1.bf16.msra.mxu0 %v6381_v36  ;;  %4153 = vmatpush3.bf16.msra.mxu1 %v6384_v40  ;;  %v2989_v36 = vadd.f32 %v6647_v58, %v5660_v43  ;;  %4650 = vrcp.f32 %v3015_v13  ;;  %v4232_v13 = vadd.f32 %v7119_v52, %v334_v45 }
 0x7f6   :  { %3174 = vmatprep.subr.bf16.mxu0 %v6389_v10  ;;  %4154 = vmatprep.subr.bf16.mxu1 %v6968_v11  ;;  %v7129_v10 = vld [vmem:[#allocation53_spill] sm:$0xff] }
 0x7f9   :  { %3175 = vmatpush1.bf16.msra.mxu0 %v6395_v2  ;;  %4155 = vmatpush3.bf16.msra.mxu1 %v6398_v60 }
 0x7fa   :  { %3176 = vmatprep.subr.bf16.mxu0 %v6402_v24  ;;  %4156 = vmatprep.subr.bf16.mxu1 %v6968_v11  ;;  %v7130_v24 = vld [vmem:[#allocation57_spill] sm:$0xff] }
 0x7fb   :  { %v4645_v8 = vpop.eup %4644 }
 0x7fc   :  { %v3020_v46 = vmul.f32 %v4645_v8, %v2986_v31 }
 0x7fd   :  { %v4647_v40 = vpop.eup %4646  ;;  %3177 = vmatpush1.bf16.msra.mxu0 %v6407_v34  ;;  %4157 = vmatpush3.bf16.msra.mxu1 %v6410_v15 }
 0x7fe   :  { %v3022_v2 = vadd.f32 %v3020_v46, %v7129_v10  ;;  %v3021_v60 = vmul.f32 %v4647_v40, %v2989_v36  ;;  %3178 = vmatprep.subr.bf16.mxu0 %v6413_v20  ;;  %4158 = vmatprep.subr.bf16.mxu1 %v6968_v11  ;;  %v4649_v34 = vpop.eup %4648  ;;  %v4235_v40 = vadd.f32 %v7118_v32, %v336_v61 }
 0x7ff   :  { %v4651_v15 = vpop.eup %4650  ;;  %v3026_v20 = vsub.f32 1.0, %v4649_v34  ;;  %v3030_v25 = vmul.f32 %v4649_v34, %v6582_v21 }
 0x800   :  { %4652 = vtanh.f32 %v3022_v2  ;;  %v3023_v17 = vadd.f32 %v3021_v60, %v7130_v24  ;;  %v3027_v58 = vsub.f32 1.0, %v4651_v15  ;;  %v4238_v24 = vadd.f32 %v7119_v52, %v338_v18 }
 0x801   :  { %3179 = vmatpush1.bf16.msra.mxu0 %v6417_v47  ;;  %4159 = vmatpush3.bf16.msra.mxu1 %v6420_v3  ;;  %v3031_v3 = vmul.f32 %v4651_v15, %v6587_v59 }
 0x802   :  { %4654 = vtanh.f32 %v3023_v17  ;;  %3180 = vmatprep.subr.bf16.mxu0 %v7090_v22  ;;  %4160 = vmatprep.subr.bf16.mxu1 %v6968_v11 }
 0x805   :  { %3181 = vmatpush1.bf16.msra.mxu0 %v7091_v16  ;;  %4161 = vmatpush3.bf16.msra.mxu1 %v6430_v26 }
 0x806   :  { %3824 = vmatprep.subr.bf16.mxu0 %v4360_v6 }
 0x80a   :  { %v4653_v54 = vpop.eup %4652 }
 0x80b   :  { %v3028_v28 = vmul.f32 %v4653_v54, %v3026_v20 }
 0x80c   :  { %v4655_v47 = vpop.eup %4654 }
 0x80d   :  { %v3029_v0 = vmul.f32 %v4655_v47, %v3027_v58  ;;  %v3032_v35 = vadd.f32 %v3030_v25, %v3028_v28 }
 0x80f   :  { %v3033_v22 = vadd.f32 %v3031_v3, %v3029_v0  ;;  %v6712_v16 = vsel %vm1622_vm9, %v3032_v35, %v6582_v21  ;;  %v4364_v21 = vld [vmem:[#allocation8 + $0x50] sm:$0xff]  }
 0x811   :  { %v6717_v5 = vsel %vm1623_vm10, %v3033_v22, %v6587_v59  ;;  %v4367_v59 = vld [vmem:[#allocation8 + $0x18] sm:$0xff]  }
 0x812   :  { %v3165_v57 = vpack.c.bf16 %v6717_v5, %v6712_v16 }
 0x814   :  { %3199 = vmatmul.mubr.bf16.vlgmr.msra.gmra.mrb[88].mxu0 %v3165_v57  ;;  %4163 = vmatmul.mubr.bf16.vlgmr.msra.gmra.mrb[104].mxu1 %v3165_v57 }
 0x815   :  { %3825 = vmatpush3.bf16.msra.mxu0 %v4361_v51  ;;  %v7137_v51 = vld [vmem:[#allocation68_spill] sm:$0xff] }
 0x816   :  { %3826 = vmatprep.subr.bf16.mxu0 %v4362_v4 }
 0x819   :  { %3827 = vmatpush3.bf16.msra.mxu0 %v4363_v49 }
 0x81a   :  { %3828 = vmatprep.subr.bf16.mxu0 %v4364_v21  ;;  %v7138_v21 = vld [vmem:[#allocation71_spill] sm:$0xff] }
 0x81d   :  { %3829 = vmatpush3.bf16.msra.mxu0 %v4365_v23 }
 0x81e   :  { %3830 = vmatprep.subr.bf16.mxu0 %v4366_v1 }
 0x821   :  { %3831 = vmatpush3.bf16.msra.mxu0 %v4367_v59 }
 0x822   :  { %3832 = vmatprep.subr.bf16.mxu0 %v4368_v27 }
 0x825   :  { %3833 = vmatpush3.bf16.msra.mxu0 %v4369_v42 }
 0x826   :  { %3834 = vmatprep.subr.bf16.mxu0 %v4370_v53 }
 0x829   :  { %3835 = vmatpush3.bf16.msra.mxu0 %v4371_v38 }
 0x82a   :  { %3836 = vmatprep.subr.bf16.mxu0 %v4372_v55 }
 0x82d   :  { %3837 = vmatpush3.bf16.msra.mxu0 %v4373_v7 }
 0x82e   :  { %3838 = vmatprep.subr.bf16.mxu0 %v4374_v50 }
 0x831   :  { %3839 = vmatpush3.bf16.msra.mxu0 %v4375_v37 }
 0x8bb   :  { %v3073_v19 = vpop.f32.mrb[84].mxu0  ;;  %v3116_v31 = vpop.f32.mrb[100].mxu1 }
 0x8bc   :  { %v4230_v8 = vadd.f32 %v4229_v12, %v3073_v19  ;;  %v3075_v46 = vpop.f32.mrb[85].mxu0  ;;  %v4144_v36 = vpop.f32.mrb[101].mxu1  ;;  %v3117_v35 = vadd.f32 %v3116_v31, %v7120_v44  ;;  %v7139_v12 = vld [vmem:[#allocation29_spill] sm:$0xff] }
 0x8bd   :  { %v4233_v10 = vadd.f32 %v4232_v13, %v3075_v46  ;;  %v3077_v2 = vpop.f32.mrb[86].mxu0  ;;  %v3119_v60 = vpop.f32.mrb[102].mxu1  ;;  %v7140_v46 = vld [vmem:[#allocation43_spill] sm:$0xff] }
 0x8be   :  { %v3655_v56 = vmul.f32 -1.442695, %v4230_v8  ;;  %v4236_v17 = vadd.f32 %v4235_v40, %v3077_v2  ;;  %v3079_v34 = vpop.f32.mrb[87].mxu0  ;;  %v4145_v33 = vpop.f32.mrb[103].mxu1  ;;  %v3120_v57 = vadd.f32 %v3119_v60, %v7120_v44  ;;  %v7141_v60 = vld [vmem:[#allocation30_spill] sm:$0xff] }
 0x8bf   :  { %v4239_v15 = vadd.f32 %v4238_v24, %v3079_v34  ;;  %v3657_v54 = vmul.f32 -1.442695, %v4233_v10 }
 0x8c0   :  { %4656 = vpow2.f32 %v3655_v56  ;;  %v3656_v20 = vmul.f32 -1.442695, %v4236_v17  ;;  %v7142_v56 = vld [vmem:[#allocation47_spill] sm:$0xff] }
 0x8c1   :  { %v3658_v58 = vmul.f32 -1.442695, %v4239_v15 }
 0x8c2   :  { %4658 = vpow2.f32 %v3656_v20 }
 0x8c3   :  { %4660 = vpow2.f32 %v3657_v54 }
 0x8c4   :  { %4662 = vpow2.f32 %v3658_v58 }
 0x8ca   :  { %v4657_v28 = vpop.eup %4656 }
 0x8cb   :  { %v3131_v25 = vadd.f32 1.0, %v4657_v28 }
 0x8cc   :  { %v4659_v32 = vpop.eup %4658 }
 0x8cd   :  { %4664 = vrcp.f32 %v3131_v25  ;;  %v3132_v47 = vadd.f32 1.0, %v4659_v32  ;;  %v4661_v0 = vpop.eup %4660 }
 0x8ce   :  { %v4663_v52 = vpop.eup %4662  ;;  %v3145_v3 = vadd.f32 1.0, %v4661_v0 }
 0x8cf   :  { %4666 = vrcp.f32 %v3132_v47  ;;  %v3146_v22 = vadd.f32 1.0, %v4663_v52 }
 0x8d0   :  { %4668 = vrcp.f32 %v3145_v3 }
 0x8d1   :  { %4670 = vrcp.f32 %v3146_v22 }
 0x8d7   :  { %v4665_v11 = vpop.eup %4664 }
 0x8d8   :  { %v3151_v26 = vmul.f32 %v4665_v11, %v3117_v35 }
 0x8d9   :  { %v4667_v6 = vpop.eup %4666 }
 0x8da   :  { %v3153_v4 = vadd.f32 %v3151_v26, %v7137_v51  ;;  %v3152_v49 = vmul.f32 %v4667_v6, %v3120_v57  ;;  %v4669_v1 = vpop.eup %4668  ;;  %v7145_v57 = vld [vmem:[#allocation45_spill] sm:$0xff] }
 0x8db   :  { %v4671_v59 = vpop.eup %4670  ;;  %v3157_v27 = vsub.f32 1.0, %v4669_v1  ;;  %v3161_v50 = vmul.f32 %v4669_v1, %v6659_v39 }
 0x8dc   :  { %4672 = vtanh.f32 %v3153_v4  ;;  %v3154_v23 = vadd.f32 %v3152_v49, %v7138_v21  ;;  %v3158_v53 = vsub.f32 1.0, %v4671_v59  ;;  %v3162_v62 = vmul.f32 %v4671_v59, %v6664_v29  ;;  %v7146_v4 = vld [vmem:[#allocation49_spill] sm:$0xff] }
 0x8de   :  { %4674 = vtanh.f32 %v3154_v23 }
 0x8e6   :  { %v4673_v42 = vpop.eup %4672 }
 0x8e7   :  { %v3200_v38 = vpop.f32.mrb[88].mxu0  ;;  %v3243_v55 = vpop.f32.mrb[104].mxu1  ;;  %v3159_v7 = vmul.f32 %v4673_v42, %v3157_v27 }
 0x8e8   :  { %v4675_v44 = vpop.eup %4674  ;;  %v3201_v37 = vadd.f32 %v3200_v38, %v7062_v30  ;;  %v3202_v63 = vpop.f32.mrb[89].mxu0  ;;  %v3244_v3 = vadd.f32 %v3243_v55, %v5660_v43 }
 0x8e9   :  { %v4164_v9 = vpop.f32.mrb[105].mxu1  ;;  %v3203_v41 = vadd.f32 %v3202_v63, %v7041_v48  ;;  %v3204_v45 = vpop.f32.mrb[90].mxu0  ;;  %v3160_v61 = vmul.f32 %v4675_v44, %v3158_v53  ;;  %v3163_v18 = vadd.f32 %v3161_v50, %v3159_v7  ;;  %v7148_v63 = vld [vmem:[#allocation95_spill] sm:$0xff] }
 0x8ea   :  { %v3246_v14 = vpop.f32.mrb[106].mxu1  ;;  %v3250_v19 = vadd.f32 %v3201_v37, %v7139_v12  ;;  %v3205_v31 = vadd.f32 %v3204_v45, %v7062_v30  ;;  %v3206_v13 = vpop.f32.mrb[91].mxu0  ;;  %vm7149_vm7 = vcmp.eq.s32.totalorder %v7148_v63, 1 }
 0x8eb   :  { %v4165_v8 = vpop.f32.mrb[107].mxu1  ;;  %v3264_v36 = vadd.f32 %v3203_v41, %v7140_v46  ;;  %v3207_v40 = vadd.f32 %v3206_v13, %v7041_v48  ;;  %v3164_v10 = vadd.f32 %v3162_v62, %v3160_v61  ;;  %v3292_v33 = vsel %vm1324_vm5, %v3163_v18, %v6659_v39 }
 0x8ec   :  { %v3659_v2 = vmul.f32 -1.442695, %v3250_v19  ;;  %v3251_v24 = vadd.f32 %v3205_v31, %v7141_v60  ;;  %v3247_v11 = vadd.f32 %v3246_v14, %v5660_v43  ;;  %v3663_v14 = vld [vmem:[%s6789_s9] ss:$0 sm:$0xff] }
 0x8ed   :  { %v3265_v17 = vadd.f32 %v3207_v40, %v7142_v56  ;;  %v3293_v30 = vsel %vm1325_vm6, %v3164_v10, %v6664_v29  ;;  %v3661_v58 = vmul.f32 -1.442695, %v3264_v36 }
 0x8ee   :  { %4676 = vpow2.f32 %v3659_v2  ;;  %v3660_v20 = vmul.f32 -1.442695, %v3251_v24  ;;  %v3296_v54 = vpack.c.bf16 %v3293_v30, %v3292_v33 }
 0x8ef   :  { %v3662_v48 = vmul.f32 -1.442695, %v3265_v17 }
 0x8f0   :  { %4678 = vpow2.f32 %v3660_v20 }
 0x8f1   :  { %4680 = vpow2.f32 %v3661_v58 }
 0x8f2   :  { %4682 = vpow2.f32 %v3662_v48 }
 0x8f8   :  { %v4677_v28 = vpop.eup %4676 }
 0x8f9   :  { %v3258_v25 = vadd.f32 1.0, %v4677_v28 }
 0x8fa   :  { %v4679_v32 = vpop.eup %4678 }
 0x8fb   :  { %4684 = vrcp.f32 %v3258_v25  ;;  %v3259_v47 = vadd.f32 1.0, %v4679_v32  ;;  %v4681_v0 = vpop.eup %4680 }
 0x8fc   :  { %v4683_v39 = vpop.eup %4682  ;;  %v3272_v52 = vadd.f32 1.0, %v4681_v0 }
 0x8fd   :  { %4686 = vrcp.f32 %v3259_v47  ;;  %v3273_v29 = vadd.f32 1.0, %v4683_v39 }
 0x8fe   :  { %4688 = vrcp.f32 %v3272_v52 }
 0x8ff   :  { %4690 = vrcp.f32 %v3273_v29 }
 0x905   :  { %v4685_v35 = vpop.eup %4684 }
 0x906   :  { %v3278_v22 = vmul.f32 %v4685_v35, %v3244_v3 }
 0x907   :  { %v4687_v26 = vpop.eup %4686 }
 0x908   :  { %v3280_v6 = vadd.f32 %v3278_v22, %v7145_v57  ;;  %v3279_v51 = vmul.f32 %v4687_v26, %v3247_v11  ;;  %v4689_v21 = vpop.eup %4688 }
 0x909   :  { %v4691_v23 = vpop.eup %4690  ;;  %v3284_v1 = vsub.f32 1.0, %v4689_v21  ;;  %v3288_v53 = vmul.f32 %v4689_v21, %v6712_v16 }
 0x90a   :  { %4692 = vtanh.f32 %v3280_v6  ;;  %v3281_v49 = vadd.f32 %v3279_v51, %v7146_v4  ;;  %v3285_v27 = vsub.f32 1.0, %v4691_v23  ;;  %v3289_v43 = vmul.f32 %v4691_v23, %v6717_v5 }
 0x90c   :  { %4694 = vtanh.f32 %v3281_v49 }
 0x914   :  { %v4693_v59 = vpop.eup %4692 }
 0x915   :  { %v3286_v42 = vmul.f32 %v4693_v59, %v3284_v1 }
 0x916   :  { %v4695_v38 = vpop.eup %4694 }
 0x917   :  { %v3287_v55 = vmul.f32 %v4695_v38, %v3285_v27  ;;  %v3290_v7 = vadd.f32 %v3288_v53, %v3286_v42 }
 0x919   :  { %v3291_v50 = vadd.f32 %v3289_v43, %v3287_v55  ;;  %v3294_v37 = vsel %vm1310_vm2, %v3290_v7, %v6712_v16 }
 0x91b   :  { %v3295_v9 = vsel %vm7149_vm7, %v3291_v50, %v6717_v5 }
 0x91c   :  { %v3297_v41 = vpack.c.bf16 %v3295_v9, %v3294_v37 }
 0x91e   :  { %3465 = vmatprep.mubr.bf16.mxu0 %v3297_v41 }
 0x91f   :  { %3466 = vmatmul.mubr.bf16.vlgmr.msra.gmra.mrb[92].mxu0 %v3296_v54 }
 0x9f2   :  { %v3840_v45 = vpop.f32.mrb[92].mxu0 }
 0x9f3   :  { %v3841_v61 = vpop.f32.mrb[93].mxu0 }
 0x9f4   :  { %v3842_v62 = vadd.f32 %v3841_v61, %v3840_v45  ;;  %v3843_v18 = vpop.f32.mrb[94].mxu0 }
 0x9f5   :  { %v3844_v12 = vpop.f32.mrb[95].mxu0 }
 0x9f6   :  { %v3468_v19 = vadd.f32 %v3842_v62, %v3663_v14  ;;  %v3845_v16 = vadd.f32 %v3844_v12, %v3843_v18 }
 0x9f8   :  { %3474 = vst [vmem:[#allocation9] sm:$0xff] %v3468_v19  ;;  %v3471_v31 = vadd.f32 %v3845_v16, %v3663_v14 }
 0x9fa   :  { %3475 = vst [vmem:[#allocation9 + $0x8] sm:$0xff] %v3471_v31 }
 0x9fb   :  { %4869 = shalt.err (!%p4866_p0)
}
 0x9fc   :  { %s4870_s27 = scalar_lea.hbm %s6790_s10, 256 }
 0x9fd   :  { %p4871_p1 = scmp.ne.s32.totalorder %s6790_s10, %s4870_s27  ;;  %p4874_p2 = scmp.lt.u32.totalorder %s4870_s27, %s6790_s10 }
 0x9ff   :  { %p4876_p3 = pnand %p4874_p2, %p4871_p1 }
 0xa01   :  { %4879 = shalt.err (!%p4876_p3)
}
 0xa02   :  { %s4897_s2 = smov 128   ;;  %s4898_s16 = smov 8  }
 0xa03   :  { %3487 = dma.vmem_to_hbm [thread:$0]  %s3482_s22, 256, %s6790_s10, [#allocation5], %s4897_s2, %s4897_s2, %s4898_s16  }
 0xa04   :  { %4884 = dma.done.wait [#allocation5], 256  }
 0xa05   :  { %4885 = vsyncadd [#allocation5], 4294967040 }
 0xa06   :  { %3491 = vsyncpa [#allocation4], 1 }
 0xa07   :  { %3492 = vsyncpa [#allocation7], 1 }
 0xa08   :  { %3493 = vsyncpa [#allocation5], 1 }

</bundles_post_ra>
